<compile_context>
chip_gen: v5e
topology: v5e:2x2
jax: 0.10.0
libtpu: 0.0.40
codegen_flags: <defaults>
</compile_context>

<pallas_src>
import jax
import jax.numpy as jnp
from jax.experimental import pallas as pl
from jax.experimental.pallas import tpu as pltpu

# Original layer sizes (in, out), classifier included.
RAW_LAYER_DIMS = [(11, 64), (64, 128), (128, 256), (256, 512),
                  (512, 256), (256, 128), (128, 64), (64, 2)]
NUM_LAYERS = len(RAW_LAYER_DIMS)

IN_PAD = 128                       # pad 11-wide input to a full lane width
MAX_OUT = 512                      # widest layer -> packed-bias slab width
TILE_M = 256                       # batch tile (multiple of 256 and 128)

# Padded layer dims actually used by the kernel (only layer-1 K changes).
LAYER_DIMS = [(IN_PAD, 64)] + RAW_LAYER_DIMS[1:]


def dnn_kernel(x_ref, *refs):
    """Fused 8-layer MLP on one (TILE_M, IN_PAD) batch tile.

    refs = (w1..w8 [bf16, (in, out)], bias_slab [f32, (8, 512)], o_ref).
    bf16 inputs feed the MXU fast path; accumulation is f32; inter-layer
    activations are cast back to bf16 to keep vreg/VMEM pressure low.
    """
    w_refs = refs[:NUM_LAYERS]
    b_ref = refs[NUM_LAYERS]
    o_ref = refs[NUM_LAYERS + 1]

    h = x_ref[...]                               # bf16 (TILE_M, IN_PAD)
    for li, (_, fout) in enumerate(LAYER_DIMS):
        acc = jnp.dot(h, w_refs[li][...],
                      preferred_element_type=jnp.float32)   # f32 accumulate
        acc = acc + b_ref[li:li + 1, :fout]                  # (1, out) bias
        if li < NUM_LAYERS - 1:
            # ReLU (dropout == identity in eval), back to bf16 between layers.
            h = jnp.maximum(acc, 0.0).astype(jnp.bfloat16)
        else:
            o_ref[...] = acc.astype(o_ref.dtype)


def make_params(key):
    """Deterministic init. Weights bf16 (in, out); biases packed f32 (8, 512)."""
    ws = []
    b_slab = jnp.zeros((NUM_LAYERS, MAX_OUT), jnp.float32)
    for li, (fan_in, fan_out) in enumerate(RAW_LAYER_DIMS):
        key, kw, kb = jax.random.split(key, 3)
        bound = 1.0 / (fan_in ** 0.5)       # same scale family as nn.Linear
        w = jax.random.uniform(kw, (fan_in, fan_out), jnp.float32, -bound, bound)
        b = jax.random.uniform(kb, (fan_out,), jnp.float32, -bound, bound)
        if li == 0:                          # zero-pad K: 11 -> IN_PAD
            w = jnp.pad(w, ((0, IN_PAD - fan_in), (0, 0)))
        ws.append(w.astype(jnp.bfloat16))
        b_slab = b_slab.at[li, :fan_out].set(b)
    return ws, b_slab


def dnn_forward(x, ws, b_slab, *, tile_m=TILE_M):
    batch, feat = x.shape
    out_dim = LAYER_DIMS[-1][1]

    # Pad batch to a tile multiple and features to IN_PAD; cast to bf16.
    pad_rows = (-batch) % tile_m
    xp = jnp.pad(x.astype(jnp.bfloat16), ((0, pad_rows), (0, IN_PAD - feat)))
    padded_batch = batch + pad_rows
    grid = (pl.cdiv(padded_batch, tile_m),)

    in_specs = [pl.BlockSpec((tile_m, IN_PAD), lambda i: (i, 0))]
    # Weights + bias slab: full-array blocks pinned to (0, 0) -> DMA'd once,
    # VMEM-resident across every batch tile.
    for (fin, fout) in LAYER_DIMS:
        in_specs.append(pl.BlockSpec((fin, fout), lambda i: (0, 0)))
    in_specs.append(pl.BlockSpec((NUM_LAYERS, MAX_OUT), lambda i: (0, 0)))
    out_spec = pl.BlockSpec((tile_m, out_dim), lambda i: (i, 0))

    param_elems = sum(fi * fo for fi, fo in LAYER_DIMS)
    cost = pl.CostEstimate(
        flops=2 * padded_batch * param_elems,
        transcendentals=0,
        bytes_accessed=(param_elems * 2                 # bf16 weights
                        + NUM_LAYERS * MAX_OUT * 4      # f32 bias slab
                        + padded_batch * IN_PAD * 2     # bf16 input tiles
                        + padded_batch * out_dim * 4))  # f32 output

    out = pl.pallas_call(
        dnn_kernel,
        out_shape=jax.ShapeDtypeStruct((padded_batch, out_dim), jnp.float32),
        grid=grid,
        in_specs=in_specs,
        out_specs=out_spec,
        compiler_params=pltpu.CompilerParams(
            dimension_semantics=("parallel",)),
        cost_estimate=cost,
    )(xp, *ws, b_slab)
    return out[:batch]


def dnn_reference(x, ws, b_slab):
    """Pure-JAX reference emulating the kernel numerics (bf16 in, f32 accum)."""
    h = jnp.pad(x.astype(jnp.bfloat16), ((0, 0), (0, IN_PAD - x.shape[1])))
    for li, (_, fout) in enumerate(LAYER_DIMS):
        acc = jnp.dot(h, ws[li], preferred_element_type=jnp.float32)
        acc = acc + b_slab[li, :fout]
        if li < NUM_LAYERS - 1:
            h = jnp.maximum(acc, 0.0).astype(jnp.bfloat16)
        else:
            return acc
    return acc


if __name__ == "__main__":
    key = jax.random.PRNGKey(0)
    key, kx = jax.random.split(key)

    batch = 300                         # exercises padding + a 2-step grid
    x = jax.random.normal(kx, (batch, 11), jnp.float32)
    ws, b_slab = make_params(key)

    out = dnn_forward(x, ws, b_slab)
    out = jax.block_until_ready(out)

    ref = dnn_reference(x, ws, b_slab)
    assert out.shape == (batch, 2), out.shape
    assert jnp.allclose(out, ref, atol=2e-2, rtol=2e-2), "mismatch vs reference"

    print("KERNEL_OK")
</pallas_src>

<mosaic_0001>
module attributes {stable_mosaic.version = 11 : i64} {
  func.func @dnn_kernel(%arg0: i32, %arg1: memref<256x128xbf16, #tpu.memory_space<vmem>>, %arg2: memref<128x64xbf16, #tpu.memory_space<vmem>>, %arg3: memref<64x128xbf16, #tpu.memory_space<vmem>>, %arg4: memref<128x256xbf16, #tpu.memory_space<vmem>>, %arg5: memref<256x512xbf16, #tpu.memory_space<vmem>>, %arg6: memref<512x256xbf16, #tpu.memory_space<vmem>>, %arg7: memref<256x128xbf16, #tpu.memory_space<vmem>>, %arg8: memref<128x64xbf16, #tpu.memory_space<vmem>>, %arg9: memref<64x2xbf16, #tpu.memory_space<vmem>>, %arg10: memref<8x512xf32, #tpu.memory_space<vmem>>, %arg11: memref<256x2xf32, #tpu.memory_space<vmem>>) attributes {dimension_semantics = [#tpu.dimension_semantics<parallel>], iteration_bounds = array<i64: 2>, scalar_prefetch = 0 : i64, scratch_operands = 0 : i64, tpu.core_type = #tpu.core_type<tc>, window_params = [{transform_indices = @transform_0, window_bounds = array<i64: 256, 128>}, {pipeline_mode = #tpu.pipeline_mode<synchronous>, transform_indices = @transform_1, window_bounds = array<i64: 128, 64>}, {pipeline_mode = #tpu.pipeline_mode<synchronous>, transform_indices = @transform_2, window_bounds = array<i64: 64, 128>}, {pipeline_mode = #tpu.pipeline_mode<synchronous>, transform_indices = @transform_3, window_bounds = array<i64: 128, 256>}, {pipeline_mode = #tpu.pipeline_mode<synchronous>, transform_indices = @transform_4, window_bounds = array<i64: 256, 512>}, {pipeline_mode = #tpu.pipeline_mode<synchronous>, transform_indices = @transform_5, window_bounds = array<i64: 512, 256>}, {pipeline_mode = #tpu.pipeline_mode<synchronous>, transform_indices = @transform_6, window_bounds = array<i64: 256, 128>}, {pipeline_mode = #tpu.pipeline_mode<synchronous>, transform_indices = @transform_7, window_bounds = array<i64: 128, 64>}, {pipeline_mode = #tpu.pipeline_mode<synchronous>, transform_indices = @transform_8, window_bounds = array<i64: 64, 2>}, {pipeline_mode = #tpu.pipeline_mode<synchronous>, transform_indices = @transform_9, window_bounds = array<i64: 8, 512>}, {transform_indices = @transform_10, window_bounds = array<i64: 256, 2>}]} {
    %c0 = arith.constant 0 : index
    %c0_0 = arith.constant 0 : index
    %0 = vector.load %arg1[%c0, %c0_0] : memref<256x128xbf16, #tpu.memory_space<vmem>>, vector<256x128xbf16>
    %c0_1 = arith.constant 0 : index
    %c0_2 = arith.constant 0 : index
    %1 = vector.load %arg2[%c0_1, %c0_2] : memref<128x64xbf16, #tpu.memory_space<vmem>>, vector<128x64xbf16>
    %cst = arith.constant dense<0.000000e+00> : vector<256x64xf32>
    %2 = tpu.matmul %0, %1, %cst {dimension_numbers = #tpu.dot_dimension_numbers<[1], [0], [0], [1], [0, 0, 1, 1], [], []>} : vector<256x128xbf16>, vector<128x64xbf16>, vector<256x64xf32> -> vector<256x64xf32>
    %c0_3 = arith.constant 0 : index
    %c0_4 = arith.constant 0 : index
    %3 = vector.load %arg10[%c0_3, %c0_4] : memref<8x512xf32, #tpu.memory_space<vmem>>, vector<1x64xf32>
    %4 = vector.broadcast %3 : vector<1x64xf32> to vector<256x64xf32>
    %5 = arith.addf %2, %4 : vector<256x64xf32>
    %cst_5 = arith.constant 0.000000e+00 : f32
    %6 = vector.broadcast %cst_5 : f32 to vector<256x64xf32>
    %7 = arith.maximumf %5, %6 : vector<256x64xf32>
    %8 = arith.truncf %7 : vector<256x64xf32> to vector<256x64xbf16>
    %c0_6 = arith.constant 0 : index
    %c0_7 = arith.constant 0 : index
    %9 = vector.load %arg3[%c0_6, %c0_7] : memref<64x128xbf16, #tpu.memory_space<vmem>>, vector<64x128xbf16>
    %cst_8 = arith.constant dense<0.000000e+00> : vector<256x128xf32>
    %10 = tpu.matmul %8, %9, %cst_8 {dimension_numbers = #tpu.dot_dimension_numbers<[1], [0], [0], [1], [0, 0, 1, 1], [], []>} : vector<256x64xbf16>, vector<64x128xbf16>, vector<256x128xf32> -> vector<256x128xf32>
    %c1 = arith.constant 1 : index
    %c0_9 = arith.constant 0 : index
    %11 = vector.load %arg10[%c1, %c0_9] : memref<8x512xf32, #tpu.memory_space<vmem>>, vector<1x128xf32>
    %12 = vector.broadcast %11 : vector<1x128xf32> to vector<256x128xf32>
    %13 = arith.addf %10, %12 : vector<256x128xf32>
    %cst_10 = arith.constant 0.000000e+00 : f32
    %14 = vector.broadcast %cst_10 : f32 to vector<256x128xf32>
    %15 = arith.maximumf %13, %14 : vector<256x128xf32>
    %16 = arith.truncf %15 : vector<256x128xf32> to vector<256x128xbf16>
    %c0_11 = arith.constant 0 : index
    %c0_12 = arith.constant 0 : index
    %17 = vector.load %arg4[%c0_11, %c0_12] : memref<128x256xbf16, #tpu.memory_space<vmem>>, vector<128x256xbf16>
    %cst_13 = arith.constant dense<0.000000e+00> : vector<256x256xf32>
    %18 = tpu.matmul %16, %17, %cst_13 {dimension_numbers = #tpu.dot_dimension_numbers<[1], [0], [0], [1], [0, 0, 1, 1], [], []>} : vector<256x128xbf16>, vector<128x256xbf16>, vector<256x256xf32> -> vector<256x256xf32>
    %c2 = arith.constant 2 : index
    %c0_14 = arith.constant 0 : index
    %19 = vector.load %arg10[%c2, %c0_14] : memref<8x512xf32, #tpu.memory_space<vmem>>, vector<1x256xf32>
    %20 = vector.broadcast %19 : vector<1x256xf32> to vector<256x256xf32>
    %21 = arith.addf %18, %20 : vector<256x256xf32>
    %cst_15 = arith.constant 0.000000e+00 : f32
    %22 = vector.broadcast %cst_15 : f32 to vector<256x256xf32>
    %23 = arith.maximumf %21, %22 : vector<256x256xf32>
    %24 = arith.truncf %23 : vector<256x256xf32> to vector<256x256xbf16>
    %c0_16 = arith.constant 0 : index
    %c0_17 = arith.constant 0 : index
    %25 = vector.load %arg5[%c0_16, %c0_17] : memref<256x512xbf16, #tpu.memory_space<vmem>>, vector<256x512xbf16>
    %cst_18 = arith.constant dense<0.000000e+00> : vector<256x512xf32>
    %26 = tpu.matmul %24, %25, %cst_18 {dimension_numbers = #tpu.dot_dimension_numbers<[1], [0], [0], [1], [0, 0, 1, 1], [], []>} : vector<256x256xbf16>, vector<256x512xbf16>, vector<256x512xf32> -> vector<256x512xf32>
    %c3 = arith.constant 3 : index
    %c0_19 = arith.constant 0 : index
    %27 = vector.load %arg10[%c3, %c0_19] : memref<8x512xf32, #tpu.memory_space<vmem>>, vector<1x512xf32>
    %28 = vector.broadcast %27 : vector<1x512xf32> to vector<256x512xf32>
    %29 = arith.addf %26, %28 : vector<256x512xf32>
    %cst_20 = arith.constant 0.000000e+00 : f32
    %30 = vector.broadcast %cst_20 : f32 to vector<256x512xf32>
    %31 = arith.maximumf %29, %30 : vector<256x512xf32>
    %32 = arith.truncf %31 : vector<256x512xf32> to vector<256x512xbf16>
    %c0_21 = arith.constant 0 : index
    %c0_22 = arith.constant 0 : index
    %33 = vector.load %arg6[%c0_21, %c0_22] : memref<512x256xbf16, #tpu.memory_space<vmem>>, vector<512x256xbf16>
    %cst_23 = arith.constant dense<0.000000e+00> : vector<256x256xf32>
    %34 = tpu.matmul %32, %33, %cst_23 {dimension_numbers = #tpu.dot_dimension_numbers<[1], [0], [0], [1], [0, 0, 1, 1], [], []>} : vector<256x512xbf16>, vector<512x256xbf16>, vector<256x256xf32> -> vector<256x256xf32>
    %c4 = arith.constant 4 : index
    %c0_24 = arith.constant 0 : index
    %35 = vector.load %arg10[%c4, %c0_24] : memref<8x512xf32, #tpu.memory_space<vmem>>, vector<1x256xf32>
    %36 = vector.broadcast %35 : vector<1x256xf32> to vector<256x256xf32>
    %37 = arith.addf %34, %36 : vector<256x256xf32>
    %cst_25 = arith.constant 0.000000e+00 : f32
    %38 = vector.broadcast %cst_25 : f32 to vector<256x256xf32>
    %39 = arith.maximumf %37, %38 : vector<256x256xf32>
    %40 = arith.truncf %39 : vector<256x256xf32> to vector<256x256xbf16>
    %c0_26 = arith.constant 0 : index
    %c0_27 = arith.constant 0 : index
    %41 = vector.load %arg7[%c0_26, %c0_27] : memref<256x128xbf16, #tpu.memory_space<vmem>>, vector<256x128xbf16>
    %cst_28 = arith.constant dense<0.000000e+00> : vector<256x128xf32>
    %42 = tpu.matmul %40, %41, %cst_28 {dimension_numbers = #tpu.dot_dimension_numbers<[1], [0], [0], [1], [0, 0, 1, 1], [], []>} : vector<256x256xbf16>, vector<256x128xbf16>, vector<256x128xf32> -> vector<256x128xf32>
    %c5 = arith.constant 5 : index
    %c0_29 = arith.constant 0 : index
    %43 = vector.load %arg10[%c5, %c0_29] : memref<8x512xf32, #tpu.memory_space<vmem>>, vector<1x128xf32>
    %44 = vector.broadcast %43 : vector<1x128xf32> to vector<256x128xf32>
    %45 = arith.addf %42, %44 : vector<256x128xf32>
    %cst_30 = arith.constant 0.000000e+00 : f32
    %46 = vector.broadcast %cst_30 : f32 to vector<256x128xf32>
    %47 = arith.maximumf %45, %46 : vector<256x128xf32>
    %48 = arith.truncf %47 : vector<256x128xf32> to vector<256x128xbf16>
    %c0_31 = arith.constant 0 : index
    %c0_32 = arith.constant 0 : index
    %49 = vector.load %arg8[%c0_31, %c0_32] : memref<128x64xbf16, #tpu.memory_space<vmem>>, vector<128x64xbf16>
    %cst_33 = arith.constant dense<0.000000e+00> : vector<256x64xf32>
    %50 = tpu.matmul %48, %49, %cst_33 {dimension_numbers = #tpu.dot_dimension_numbers<[1], [0], [0], [1], [0, 0, 1, 1], [], []>} : vector<256x128xbf16>, vector<128x64xbf16>, vector<256x64xf32> -> vector<256x64xf32>
    %c6 = arith.constant 6 : index
    %c0_34 = arith.constant 0 : index
    %51 = vector.load %arg10[%c6, %c0_34] : memref<8x512xf32, #tpu.memory_space<vmem>>, vector<1x64xf32>
    %52 = vector.broadcast %51 : vector<1x64xf32> to vector<256x64xf32>
    %53 = arith.addf %50, %52 : vector<256x64xf32>
    %cst_35 = arith.constant 0.000000e+00 : f32
    %54 = vector.broadcast %cst_35 : f32 to vector<256x64xf32>
    %55 = arith.maximumf %53, %54 : vector<256x64xf32>
    %56 = arith.truncf %55 : vector<256x64xf32> to vector<256x64xbf16>
    %c0_36 = arith.constant 0 : index
    %c0_37 = arith.constant 0 : index
    %57 = vector.load %arg9[%c0_36, %c0_37] : memref<64x2xbf16, #tpu.memory_space<vmem>>, vector<64x2xbf16>
    %cst_38 = arith.constant dense<0.000000e+00> : vector<256x2xf32>
    %58 = tpu.matmul %56, %57, %cst_38 {dimension_numbers = #tpu.dot_dimension_numbers<[1], [0], [0], [1], [0, 0, 1, 1], [], []>} : vector<256x64xbf16>, vector<64x2xbf16>, vector<256x2xf32> -> vector<256x2xf32>
    %c7 = arith.constant 7 : index
    %c0_39 = arith.constant 0 : index
    %59 = vector.load %arg10[%c7, %c0_39] : memref<8x512xf32, #tpu.memory_space<vmem>>, vector<1x2xf32>
    %60 = vector.broadcast %59 : vector<1x2xf32> to vector<256x2xf32>
    %61 = arith.addf %58, %60 : vector<256x2xf32>
    %c0_40 = arith.constant 0 : index
    %c0_41 = arith.constant 0 : index
    %62 = vector.load %arg11[%c0_40, %c0_41] : memref<256x2xf32, #tpu.memory_space<vmem>>, vector<256x2xf32>
    tpu.vector_store %arg11[%c0_40, %c0_41], %61 {strides = array<i32>} : memref<256x2xf32, #tpu.memory_space<vmem>>, vector<256x2xf32>,
    return
  }
  func.func @transform_0(%arg0: i32) -> (i32, i32) {
    %c0_i32 = arith.constant 0 : i32
    %c0_i32_0 = arith.constant 0 : i32
    return %arg0, %c0_i32 : i32, i32
  }
  func.func @transform_1(%arg0: i32) -> (i32, i32) {
    %c0_i32 = arith.constant 0 : i32
    %c0_i32_0 = arith.constant 0 : i32
    %c0_i32_1 = arith.constant 0 : i32
    return %c0_i32, %c0_i32_0 : i32, i32
  }
  func.func @transform_2(%arg0: i32) -> (i32, i32) {
    %c0_i32 = arith.constant 0 : i32
    %c0_i32_0 = arith.constant 0 : i32
    %c0_i32_1 = arith.constant 0 : i32
    return %c0_i32, %c0_i32_0 : i32, i32
  }
  func.func @transform_3(%arg0: i32) -> (i32, i32) {
    %c0_i32 = arith.constant 0 : i32
    %c0_i32_0 = arith.constant 0 : i32
    %c0_i32_1 = arith.constant 0 : i32
    return %c0_i32, %c0_i32_0 : i32, i32
  }
  func.func @transform_4(%arg0: i32) -> (i32, i32) {
    %c0_i32 = arith.constant 0 : i32
    %c0_i32_0 = arith.constant 0 : i32
    %c0_i32_1 = arith.constant 0 : i32
    return %c0_i32, %c0_i32_0 : i32, i32
  }
  func.func @transform_5(%arg0: i32) -> (i32, i32) {
    %c0_i32 = arith.constant 0 : i32
    %c0_i32_0 = arith.constant 0 : i32
    %c0_i32_1 = arith.constant 0 : i32
    return %c0_i32, %c0_i32_0 : i32, i32
  }
  func.func @transform_6(%arg0: i32) -> (i32, i32) {
    %c0_i32 = arith.constant 0 : i32
    %c0_i32_0 = arith.constant 0 : i32
    %c0_i32_1 = arith.constant 0 : i32
    return %c0_i32, %c0_i32_0 : i32, i32
  }
  func.func @transform_7(%arg0: i32) -> (i32, i32) {
    %c0_i32 = arith.constant 0 : i32
    %c0_i32_0 = arith.constant 0 : i32
    %c0_i32_1 = arith.constant 0 : i32
    return %c0_i32, %c0_i32_0 : i32, i32
  }
  func.func @transform_8(%arg0: i32) -> (i32, i32) {
    %c0_i32 = arith.constant 0 : i32
    %c0_i32_0 = arith.constant 0 : i32
    %c0_i32_1 = arith.constant 0 : i32
    return %c0_i32, %c0_i32_0 : i32, i32
  }
  func.func @transform_9(%arg0: i32) -> (i32, i32) {
    %c0_i32 = arith.constant 0 : i32
    %c0_i32_0 = arith.constant 0 : i32
    %c0_i32_1 = arith.constant 0 : i32
    return %c0_i32, %c0_i32_0 : i32, i32
  }
  func.func @transform_10(%arg0: i32) -> (i32, i32) {
    %c0_i32 = arith.constant 0 : i32
    %c0_i32_0 = arith.constant 0 : i32
    return %arg0, %c0_i32 : i32, i32
  }
}

</mosaic_0001>

<bundles_post_ra>
// kernel: tpu_custom_call.1
= control target key start
LH: loop header
LB: loop body
LE: loop exit
PB: predicated region body
PF: predicated region fallthrough
CT: control target
= control target key end

     0   :  { %s7701_s0 = inlined_call_operand.hbm [shape: bf16[512,128], index: 0, kind: input, shape index: {}]   ;;  %s7702_s1 = inlined_call_operand.vmem [shape: bf16[128,64], index: 1, kind: input, shape index: {}]   ;;  %s7703_s2 = inlined_call_operand.vmem [shape: bf16[64,128], index: 2, kind: input, shape index: {}]   ;;  %s7704_s3 = inlined_call_operand.vmem [shape: bf16[128,256], index: 3, kind: input, shape index: {}]   ;;  %s7705_s4 = inlined_call_operand.hbm [shape: bf16[256,512], index: 4, kind: input, shape index: {}]   ;;  %s7706_s5 = inlined_call_operand.hbm [shape: bf16[512,256], index: 5, kind: input, shape index: {}]   ;;  %s7707_s6 = inlined_call_operand.hbm [shape: bf16[256,128], index: 6, kind: input, shape index: {}]   ;;  %s7708_s7 = inlined_call_operand.vmem [shape: bf16[128,64], index: 7, kind: input, shape index: {}]   ;;  %s7709_s8 = inlined_call_operand.vmem [shape: bf16[64,2], index: 8, kind: input, shape index: {}]   ;;  %s7710_s9 = inlined_call_operand.hbm [shape: f32[8,512], index: 9, kind: input, shape index: {}]   ;;  %s7711_s10 = inlined_call_operand.vmem [shape: f32[512,2], index: 10, kind: output, shape index: {}]  }
   0x1   :  { %7754 = sst [smem:[#allocation50_spill]] %s7705_s4 }
   0x2   :  { %7755 = sst [smem:[#allocation51_spill]] %s7706_s5 }
   0x3   :  { %15 = vsyncpa [#allocation3], 0 }
   0x4   :  { %17 = vsyncpa [#allocation3 + $0x1], 0 }
   0x5   :  { %18 = vsyncpa [#allocation5], 0 }
   0x6   :  { %19 = vsyncpa [#allocation8], 0  ;;  %s6138_s13 = smov 0   ;;  %s6140_s14 = smov 0  }
   0x7   :  { %s6142_s15 = smov 0   ;;  %s6144_s16 = smov 0  }
   0x8 LB: > { %s7712_s17 = sadd.s32 4294967295, %s6071_s16   ;;  %p45_p0 = scmp.ne.s32.totalorder %s6063_s14, %s6059_s13  ;;  %s6071_s16 = sphi %s6144_s16, %s7858_s16   ;;  %s6067_s15 = sphi %s6142_s15, %s7857_s15   ;;  %s6063_s14 = sphi %s6140_s14, %s7856_s14   ;;  %s6059_s13 = sphi %s6138_s13, %s7855_s13  }
   0x9   : > { %p6160_p1 = scmp.eq.s32.totalorder %s7712_s17, 0  ;;  %p4740_p2 = scmp.ge.s32.totalorder %s6071_s16, 1 }
   0xa   : > { %p271_p3 = scmp.lt.s32.totalorder %s6071_s16, 3  ;;  %s7758_s4 = sld [smem:[#allocation50_spill]] }
   0xb   : > { %p6168_p4 = por %p6160_p1, %p45_p0  ;;  %s6073_s24 = smov [#allocation4]  }
   0xc   : > { %p6175_p5 = pnand %p4740_p2, %p271_p3  ;;  %s293_s25 = sshll.u32 %s6073_s24, 4  ;;  %s294_s25 = int_to_ptr.vmem [resolvable:$true] %s293_s25 }
   0xd   : > { %s319_s29 = sshll.u32 %s7707_s6, 4  ;;  %s6074_s30 = smov 256   ;;  %s320_s29 = int_to_ptr.hbm [resolvable:$true] %s319_s29 }
   0xe   : > { %p5810_p6 = pneg %p6175_p5  ;;  %s6075_s11 = smov 16  }
   0xf   : > { %s6076_s12 = smov [#allocation7]   ;;  %s7713_s20 = smov 64  }
  0x10   : > { %s291_s22 = sshll.u32 %s7758_s4, 4  ;;  %p6183_p7 = pnand %p5810_p6, %p6160_p1  ;;  %s292_s22 = int_to_ptr.hbm [resolvable:$true] %s291_s22 }
  0x11   : > { %s321_s13 = sshll.u32 %s6076_s12, 4  ;;  %s7714_s21 = smov 4   ;;  %s322_s13 = int_to_ptr.vmem [resolvable:$true] %s321_s13 }
  0x12   : > { %5813 = dma.hbm_to_vmem [thread:$0]  (!%p6183_p7), %s292_s22, 8192, %s294_s25, [#allocation5], %s6074_s30, %s6074_s30, %s6075_s11  }
  0x13   : > { %5819 = dma.hbm_to_vmem [thread:$0]  (!%p6183_p7), %s320_s29, 2048, %s322_s13, [#allocation8], %s7713_s20, %s7713_s20, %s7714_s21  }
  0x14   : > { %s7761_s5 = sld [smem:[#allocation51_spill]]  ;;  %s6079_s22 = smov [#allocation6]  }
  0x15   : > { %s307_s25 = sshll.u32 %s6079_s22, 4  ;;  %s340_s12 = sshll.u32 %s7710_s9, 4  ;;  %s308_s25 = int_to_ptr.vmem [resolvable:$true] %s307_s25  ;;  %s341_s12 = int_to_ptr.hbm [resolvable:$true] %s340_s12 }
  0x16   : > { %s6080_s29 = smov 128   ;;  %s6081_s13 = smov 8  }
  0x17   : > { %s6082_s24 = smov [#allocation9]   ;;  %s6208_s22 = sadd.s32 1, %s6071_s16  }
  0x18   : > { %s342_s27 = sshll.u32 %s6082_s24, 4  ;;  %s32_s17 = sadd.s32 1, %s6067_s15  ;;  %s343_s27 = int_to_ptr.vmem [resolvable:$true] %s342_s27 }
  0x19   : > { %5822 = dma.hbm_to_vmem [thread:$0]  (!%p6183_p7), %s341_s12, 512, %s343_s27, [#allocation8]  }
  0x1a   : > { %s305_s28 = sshll.u32 %s7761_s5, 4  ;;  %s29_s30 = ssub.s32 %s6071_s16, %s6208_s22  ;;  %s306_s28 = int_to_ptr.hbm [resolvable:$true] %s305_s28 }
  0x1b   : > { %5816 = dma.hbm_to_vmem [thread:$0]  (!%p6183_p7), %s306_s28, 8192, %s308_s25, [#allocation5], %s6080_s29, %s6080_s29, %s6081_s13  }
  0x1c   : > { %p39_p8 = scmp.ne.s32.totalorder %s6067_s15, %s6063_s14  ;;  %p30_p9 = scmp.eq.s32.totalorder %s29_s30, 0 }
  0x1d   : > { %p40_p10 = scmp.eq.s32.totalorder %s6071_s16, 0  ;;  %s353_s11 = sand.u32 1, %s6067_s15  }
  0x1e   : > { %s6218_s20 = scalar_select %p30_p9, %s6067_s15, %s32_s17  }
  0x1f   : > { %p41_p11 = por %p40_p10, %p39_p8  ;;  %p5831_p12 = scmp.lt.s32.totalorder %s6071_s16, 2 }
  0x20   : > { %s4746_s28 = sshll.u32 %s353_s11, 7  ;;  %s5591_s25 = sshll.u32 %s6071_s16, 7 }
  0x21   : > { %s362_s26 = scalar_lea.hbm %s7701_s0, %s5591_s25  ;;  %s357_s24 = scalar_lea.vmem [#allocation2], %s4746_s28 }
  0x22   : > { %s363_s12 = sshll.u32 %s362_s26, 4  ;;  %s365_s27 = sshll.u32 %s357_s24, 4  ;;  %s364_s12 = int_to_ptr.hbm [resolvable:$true] %s363_s12  ;;  %s366_s27 = int_to_ptr.vmem [resolvable:$true] %s365_s27 }
  0x23   : > { %p6225_p13 = pnand %p5831_p12, %p41_p11  ;;  %s354_s17 = scalar_lea.sflag [#allocation3], %s353_s11 }
  0x24   : > { %s5999_s30 = sshra.s32 %s364_s12, 4  ;;  %s6006_s28 = scalar_lea.hbm %s7701_s0, 256  ;;  %s6000_s30 = int_to_ptr.hbm [resolvable:$true] %s5999_s30 }
  0x25   : > { %s6001_s4 = scalar_lea.hbm %s6000_s30, 128  ;;  %p6003_p2 = pneg %p6225_p13 }
  0x26   : > { %p6002_p0 = scmp.ne.s32.totalorder %s6000_s30, %s6001_s4  ;;  %p6007_p7 = scmp.lt.s32.totalorder %s6000_s30, %s7701_s0 }
  0x27   : > { %p6008_p8 = scmp.lt.s32.totalorder %s6006_s28, %s6001_s4 }
  0x28   : > { %p6004_p3 = pnand %p6003_p2, %p6002_p0 }
  0x29   : > { %p6009_p9 = por %p6008_p8, %p6007_p7 }
  0x2a   : > { %p6005_p6 = pneg %p6004_p3 }
  0x2c   : > { %p6010_p10 = pnand %p6009_p9, %p6005_p6 }
  0x2e   : > { %6013 = shalt.err (!%p6010_p10)
}
  0x2f   : > { %s7763_s11 = smov 4   ;;  %s7764_s24 = smov 64  }
  0x30   : > { %5826 = dma.hbm_to_vmem [thread:$0]  (!%p6225_p13), %s364_s12, 2048, %s366_s27, %s354_s17, %s7764_s24, %s7764_s24, %s7763_s11  }
  0x31   : > { %377 = sbr.rel (%p6175_p5) target bundleno = 2215 (0x8a7), region = 60 }
  0x36   : > { %s379_s25 = sand.u32 1, %s6063_s14  }
  0x37   : > { %s4750_s29 = sshll.u32 %s379_s25, 7  ;;  %s380_s5 = scalar_lea.sflag [#allocation3], %s379_s25 }
  0x38   : > { %s6245_s13 = scalar_lea.vmem [#allocation2], %s4750_s29 }
  0x39   : > { %6046 = dma.done.wait (%p6168_p4), %s380_s5, 2048  }
  0x3a   : > { %6048 = vsyncadd (%p6168_p4), %s380_s5, 4294965248 }
  0x3b   : > { %6050 = dma.done.wait (%p6160_p1), [#allocation5], 16384  }
  0x3c   : > { %6052 = vsyncadd (%p6160_p1), [#allocation5], 4294950912 }
  0x3d   : > { %6054 = dma.done.wait (%p6160_p1), [#allocation8], 2560  }
  0x3e   : > { %6056 = vsyncadd (%p6160_p1), [#allocation8], 4294964736  ;;  %v5615_v0 = vld [vmem:[%s7702_s1 + $0x38] sm:$0xff]  ;;  %v5614_v1 = vld [vmem:[%s7702_s1 + $0x30] sm:$0xff]  ;;  %vm812_vm0 = vcmask 523264   ;;  %s7854_s24 = sadd.s32 4294967295, %s6071_s16  }
  0x3f   : > { %642 = vmatpush.bf16.msra.mxu0 %v5615_v0  ;;  %v5613_v2 = vld [vmem:[%s7702_s1 + $0x28] sm:$0xff]  ;;  %v5612_v3 = vld [vmem:[%s7702_s1 + $0x20] sm:$0xff]  ;;  %v5611_v4 = vld [vmem:[%s7702_s1 + $0x18] sm:$0xff]  ;;  %s4755_s25 = sshll.u32 %s7854_s24, 5  ;;  %vm4600_vm1 = vcmask 15360  }
  0x40   : > { %v5610_v5 = vld [vmem:[%s7702_s1 + $0x10] sm:$0xff]  ;;  %v5609_v6 = vld [vmem:[%s7702_s1 + $0x8] sm:$0xff]  ;;  %v5608_v7 = vld [vmem:[%s7702_s1] sm:$0xff]  ;;  %p443_p1 = scmp.lt.s32.totalorder %s4755_s25, 63 }
  0x41   : > { %v5592_v8 = vld [vmem:[%s6245_s13] sm:$0xff]  ;;  %v5593_v9 = vld [vmem:[%s6245_s13 + $0x8] sm:$0xff]  ;;  %v5594_v10 = vld [vmem:[%s6245_s13 + $0x10] sm:$0xff] }
  0x42   : > { %v5595_v11 = vld [vmem:[%s6245_s13 + $0x18] sm:$0xff]  ;;  %v5596_v12 = vld [vmem:[%s6245_s13 + $0x20] sm:$0xff]  ;;  %v5597_v13 = vld [vmem:[%s6245_s13 + $0x28] sm:$0xff]  ;;  %s7860_s25 = smov (!%p443_p1, %s4755_s25), 63 }
  0x43   : > { %643 = vmatpush.bf16.msra.mxu0 %v5614_v1  ;;  %v5619_v14 = vld [vmem:[%s7703_s2 + $0x18] sm:$0xff]  ;;  %v5598_v15 = vld [vmem:[%s6245_s13 + $0x30] sm:$0xff]  ;;  %v5617_v17 = vld [vmem:[%s7703_s2 + $0x8] sm:$0xff]  ;;  %s4756_s29 = sshll.u32 %s7860_s25, 3 }
  0x44   : > { %865 = vmatpush.bf16.msra.mxu1 %v5619_v14  ;;  %v5618_v16 = vld [vmem:[%s7703_s2 + $0x10] sm:$0xff]  ;;  %v5616_v18 = vld [vmem:[%s7703_s2] sm:$0xff]  ;;  %v5599_v19 = vld [vmem:[%s6245_s13 + $0x38] sm:$0xff]  ;;  %s7569_s16 = scalar_lea.vmem %s7711_s10, %s4756_s29 }
  0x45   : > { %v5600_v20 = vld [vmem:[%s6245_s13 + $0x40] sm:$0xff]  ;;  %v5666_v29 = vld [vmem:[#allocation4 + $0xec] sm:$0xf0]  ;;  %v5601_v32 = vld [vmem:[%s6245_s13 + $0x48] sm:$0xff] }
  0x46   : > { %v6304_v22 = vld [vmem:[#allocation9] ss:$0 sm:$0xff]  ;;  %v5698_v34 = vld [vmem:[#allocation4 + $0x1ec] sm:$0xf0]  ;;  %v5603_v54 = vld [vmem:[%s6245_s13 + $0x58] sm:$0xff] }
  0x47   : > { %644 = vmatpush.bf16.msra.mxu0 %v5613_v2  ;;  %v5063_v28 = vld [vmem:[#allocation4 + $0xe0] sm:$0xf]  ;;  %v5602_v43 = vld [vmem:[%s6245_s13 + $0x50] sm:$0xff] }
  0x48   : > { %866 = vmatpush.bf16.msra.mxu1 %v5618_v16  ;;  %v5064_v30 = vor.u32 %v5666_v29, %v5063_v28  ;;  %v5191_v33 = vld [vmem:[#allocation4 + $0x1e0] sm:$0xf]  ;;  %v5662_v51 = vld [vmem:[#allocation4 + $0xcc] sm:$0xf0] }
  0x49   : > { %v5192_v36 = vor.u32 %v5698_v34, %v5191_v33  ;;  %v5047_v50 = vld [vmem:[#allocation4 + $0xc0] sm:$0xf]  ;;  %v5694_v56 = vld [vmem:[#allocation4 + $0x1cc] sm:$0xf0]  ;;  %v4937_v34 = vld [vmem:[%s7704_s3 + $0x68] sm:$0xf0] }
  0x4a   : > { %v5048_v52 = vor.u32 %v5662_v51, %v5047_v50  ;;  %v5175_v55 = vld [vmem:[#allocation4 + $0x1c0] sm:$0xf]  ;;  %v5690_v14 = vld [vmem:[#allocation4 + $0x1ac] sm:$0xf0] }
  0x4b   : > { %645 = vmatpush.bf16.msra.mxu0 %v5612_v3  ;;  %v5176_v58 = vor.u32 %v5694_v56, %v5175_v55  ;;  %v5604_v1 = vld [vmem:[%s6245_s13 + $0x60] sm:$0xff]  ;;  %v5626_v55 = vld [vmem:[%s7704_s3 + $0x34] sm:$0xf] }
  0x4c   : > { %867 = vmatpush.bf16.msra.mxu1 %v5617_v17 }
  0x4f   : > { %646 = vmatpush.bf16.msra.mxu0 %v5611_v4 }
  0x50   : > { %868 = vmatpush.bf16.msra.mxu1 %v5616_v18 }
  0x53   : > { %647 = vmatpush.bf16.msra.mxu0 %v5610_v5 }
  0x54   : > { %1770 = vmatpush.bf16.msrb.mxu1 %v5064_v30  ;;  %v4935_v30 = vld [vmem:[%s7704_s3 + $0x60] sm:$0xf] }
  0x57   : > { %648 = vmatpush.bf16.msra.mxu0 %v5609_v6 }
  0x58   : > { %1771 = vmatpush.bf16.msrb.mxu1 %v5048_v52 }
  0x5b   : > { %649 = vmatpush.bf16.msra.mxu0 %v5608_v7 }
  0x5e   : > { %650 = vmatmul.bf16.vlgmr.msra.gmra.mxu0 %v5592_v8  ;;  %v5031_v8 = vld [vmem:[#allocation4 + $0xa0] sm:$0xf] }
  0x5f   : > { %1859 = vmatpush.bf16.msrb.mxu0 %v5192_v36 }
  0x63   : > { %1860 = vmatpush.bf16.msrb.mxu0 %v5176_v58 }
  0x6e   : > { %655 = vmatmul.bf16.gmra.mxu0 %v5593_v9  ;;  %v5658_v9 = vld [vmem:[#allocation4 + $0xac] sm:$0xf0] }
  0x7e   : > { %660 = vmatmul.bf16.gmra.mxu0 %v5594_v10  ;;  %v5032_v10 = vor.u32 %v5658_v9, %v5031_v8 }
  0x80   : > { %1772 = vmatpush.bf16.msrb.mxu1 %v5032_v10  ;;  %v5686_v10 = vld [vmem:[#allocation4 + $0x18c] sm:$0xf0] }
  0x8e   : > { %665 = vmatmul.bf16.gmra.mxu0 %v5595_v11 }
  0x9e   : > { %670 = vmatmul.bf16.gmra.mxu0 %v5596_v12  ;;  %v5605_v12 = vld [vmem:[%s6245_s13 + $0x68] sm:$0xff] }
  0xae   : > { %675 = vmatmul.bf16.gmra.mxu0 %v5597_v13  ;;  %v5159_v13 = vld [vmem:[#allocation4 + $0x1a0] sm:$0xf] }
  0xaf   : > { %v5160_v16 = vor.u32 %v5690_v14, %v5159_v13  ;;  %v5623_v13 = vld [vmem:[%s7704_s3 + $0x14] sm:$0xf0]  ;;  %v5622_v14 = vld [vmem:[%s7704_s3 + $0x14] sm:$0xf] }
  0xb1   : > { %1861 = vmatpush.bf16.msrb.mxu0 %v5160_v16  ;;  %v4897_v16 = vld [vmem:[%s7704_s3 + $0x18] sm:$0xf0] }
  0xbe   : > { %680 = vmatmul.bf16.gmra.mxu0 %v5598_v15 }
  0xce   : > { %685 = vmatmul.bf16.gmra.mxu0 %v5599_v19 }
  0xdb   : > { %v651_v21 = vpop.f32.mrf.mxu0 }
  0xdc   : > { %v652_v23 = vadd.f32 %v651_v21, %v6304_v22  ;;  %v5635_v21 = vld [vmem:[%s7704_s3 + $0x74] sm:$0xf0] }
  0xde   : > { %690 = vmatmul.bf16.gmra.mxu0 %v5600_v20  ;;  %v731_v26 = vmax.f32 %v652_v23, 0.0  ;;  %v4943_v20 = vld [vmem:[%s7704_s3 + $0x70] sm:$0xf]  ;;  %v5634_v23 = vld [vmem:[%s7704_s3 + $0x74] sm:$0xf] }
  0xe3   : > { %v653_v24 = vpop.f32.mrf.mxu0 }
  0xe4   : > { %v654_v25 = vadd.f32 %v653_v24, %v6304_v22  ;;  %v4944_v24 = vor.u32 %v5635_v21, %v4943_v20  ;;  %v5620_v20 = vld [vmem:[%s7704_s3 + $0x4] sm:$0xf] }
  0xe6   : > { %v732_v27 = vmax.f32 %v654_v25, 0.0  ;;  %v4945_v25 = vld [vmem:[%s7704_s3 + $0x78] sm:$0xf0]  ;;  %1101 = vmatpush.bf16.msra.mxu2 %v4944_v24 }
  0xe7   : > { %v4948_v28 = vor.u32 %v5634_v23, %v4945_v25  ;;  %v4889_v23 = vld [vmem:[%s7704_s3 + $0x8] sm:$0xf0] }
  0xe8   : > { %v763_v31 = vpack.c.bf16 %v732_v27, %v731_v26  ;;  %v4892_v25 = vor.u32 %v5620_v20, %v4889_v23  ;;  %v4983_v23 = vld [vmem:[#allocation4 + $0x40] sm:$0xf] }
  0xe9   : > { %1190 = vmatpush.bf16.msra.mxu3 %v4948_v28 }
  0xea   : > { %4869 = vmatmul.msk.bf16.vlgmr.msra.gmra.mxu1 %vm812_vm0, %v763_v31  ;;  %v5633_v31 = vld [vmem:[%s7704_s3 + $0x64] sm:$0xf0] }
  0xeb   : > { %v656_v35 = vpop.f32.mrf.mxu0  ;;  %v4936_v33 = vor.u32 %v5633_v31, %v4935_v30  ;;  %v5664_v30 = vld [vmem:[#allocation4 + $0xe4] sm:$0xf]  ;;  %v5065_v31 = vld [vmem:[#allocation4 + $0xf0] sm:$0xf0] }
  0xec   : > { %v657_v37 = vadd.f32 %v656_v35, %v6304_v22  ;;  %v5606_v35 = vld [vmem:[%s6245_s13 + $0x70] sm:$0xff] }
  0xed   : > { %1102 = vmatpush.bf16.msra.mxu2 %v4936_v33 }
  0xee   : > { %695 = vmatmul.bf16.gmra.mxu0 %v5601_v32  ;;  %v733_v40 = vmax.f32 %v657_v37, 0.0  ;;  %v5632_v32 = vld [vmem:[%s7704_s3 + $0x64] sm:$0xf] }
  0xef   : > { %v4940_v36 = vor.u32 %v5632_v32, %v4937_v34  ;;  %v5068_v32 = vor.u32 %v5664_v30, %v5065_v31  ;;  %v5696_v34 = vld [vmem:[#allocation4 + $0x1e4] sm:$0xf] }
  0xf1   : > { %1191 = vmatpush.bf16.msra.mxu3 %v4940_v36 }
  0xf3   : > { %v658_v38 = vpop.f32.mrf.mxu0 }
  0xf4   : > { %v659_v39 = vadd.f32 %v658_v38, %v6304_v22  ;;  %v4927_v38 = vld [vmem:[%s7704_s3 + $0x50] sm:$0xf] }
  0xf6   : > { %v734_v41 = vmax.f32 %v659_v39, 0.0  ;;  %v5631_v39 = vld [vmem:[%s7704_s3 + $0x54] sm:$0xf0] }
  0xf8   : > { %v764_v42 = vpack.c.bf16 %v734_v41, %v733_v40  ;;  %v5630_v40 = vld [vmem:[%s7704_s3 + $0x54] sm:$0xf]  ;;  %v4928_v41 = vor.u32 %v5631_v39, %v4927_v38 }
  0xfa   : > { %4870 = vmatmul.msk.bf16.gmra.mxu1 %vm812_vm0, %v764_v42  ;;  %v4929_v42 = vld [vmem:[%s7704_s3 + $0x58] sm:$0xf0]  ;;  %1103 = vmatpush.bf16.msra.mxu2 %v4928_v41 }
  0xfb   : > { %v661_v44 = vpop.f32.mrf.mxu0 }
  0xfc   : > { %v662_v45 = vadd.f32 %v661_v44, %v6304_v22  ;;  %v4919_v44 = vld [vmem:[%s7704_s3 + $0x40] sm:$0xf] }
  0xfe   : > { %700 = vmatmul.bf16.gmra.mxu0 %v5602_v43  ;;  %v735_v48 = vmax.f32 %v662_v45, 0.0  ;;  %v4932_v43 = vor.u32 %v5630_v40, %v4929_v42  ;;  %v5629_v45 = vld [vmem:[%s7704_s3 + $0x44] sm:$0xf0] }
 0x100   : > { %1192 = vmatpush.bf16.msra.mxu3 %v4932_v43 }
 0x103   : > { %v663_v46 = vpop.f32.mrf.mxu0 }
 0x104   : > { %v664_v47 = vadd.f32 %v663_v46, %v6304_v22  ;;  %v5628_v46 = vld [vmem:[%s7704_s3 + $0x44] sm:$0xf] }
 0x106   : > { %v736_v49 = vmax.f32 %v664_v47, 0.0  ;;  %v4920_v47 = vor.u32 %v5629_v45, %v4919_v44  ;;  %v4999_v45 = vld [vmem:[#allocation4 + $0x60] sm:$0xf] }
 0x108   : > { %v765_v53 = vpack.c.bf16 %v736_v49, %v735_v48  ;;  %v4921_v48 = vld [vmem:[%s7704_s3 + $0x48] sm:$0xf0]  ;;  %1104 = vmatpush.bf16.msra.mxu2 %v4920_v47  ;;  %v6436_v47 = vld [vmem:[#allocation9 + $0x1] ss:$0 sm:$0xff] }
 0x109   : > { %v4924_v50 = vor.u32 %v5628_v46, %v4921_v48  ;;  %v5650_v46 = vld [vmem:[#allocation4 + $0x6c] sm:$0xf0] }
 0x10a   : > { %4871 = vmatmul.msk.bf16.gmra.mxu1 %vm812_vm0, %v765_v53  ;;  %v4911_v53 = vld [vmem:[%s7704_s3 + $0x30] sm:$0xf] }
 0x10b   : > { %v666_v57 = vpop.f32.mrf.mxu0  ;;  %1193 = vmatpush.bf16.msra.mxu3 %v4924_v50  ;;  %v5127_v50 = vld [vmem:[#allocation4 + $0x160] sm:$0xf] }
 0x10c   : > { %v667_v59 = vadd.f32 %v666_v57, %v6304_v22  ;;  %v4913_v57 = vld [vmem:[%s7704_s3 + $0x38] sm:$0xf0] }
 0x10e   : > { %705 = vmatmul.bf16.gmra.mxu0 %v5603_v54  ;;  %v737_v62 = vmax.f32 %v667_v59, 0.0  ;;  %v5627_v54 = vld [vmem:[%s7704_s3 + $0x34] sm:$0xf0] }
 0x10f   : > { %v4912_v56 = vor.u32 %v5627_v54, %v4911_v53 }
 0x111   : > { %1105 = vmatpush.bf16.msra.mxu2 %v4912_v56 }
 0x113   : > { %v668_v60 = vpop.f32.mrf.mxu0 }
 0x114   : > { %v669_v61 = vadd.f32 %v668_v60, %v6304_v22  ;;  %v4916_v60 = vor.u32 %v5626_v55, %v4913_v57 }
 0x116   : > { %v738_v63 = vmax.f32 %v669_v61, 0.0  ;;  %1194 = vmatpush.bf16.msra.mxu3 %v4916_v60 }
 0x118   : > { %v766_v0 = vpack.c.bf16 %v738_v63, %v737_v62  ;;  %v4903_v62 = vld [vmem:[%s7704_s3 + $0x20] sm:$0xf]  ;;  %v5625_v63 = vld [vmem:[%s7704_s3 + $0x24] sm:$0xf0] }
 0x11a   : > { %4872 = vmatmul.msk.bf16.gmra.mxu1 %vm812_vm0, %v766_v0  ;;  %v5624_v0 = vld [vmem:[%s7704_s3 + $0x24] sm:$0xf] }
 0x11b   : > { %v671_v2 = vpop.f32.mrf.mxu0 }
 0x11c   : > { %v672_v3 = vadd.f32 %v671_v2, %v6304_v22  ;;  %v4904_v2 = vor.u32 %v5625_v63, %v4903_v62 }
 0x11e   : > { %710 = vmatmul.bf16.gmra.mxu0 %v5604_v1  ;;  %v739_v6 = vmax.f32 %v672_v3, 0.0  ;;  %v5607_v1 = vld [vmem:[%s6245_s13 + $0x78] sm:$0xff]  ;;  %v4905_v3 = vld [vmem:[%s7704_s3 + $0x28] sm:$0xf0]  ;;  %1106 = vmatpush.bf16.msra.mxu2 %v4904_v2 }
 0x123   : > { %v673_v4 = vpop.f32.mrf.mxu0 }
 0x124   : > { %v674_v5 = vadd.f32 %v673_v4, %v6304_v22  ;;  %v5015_v4 = vld [vmem:[#allocation4 + $0x80] sm:$0xf] }
 0x126   : > { %v740_v7 = vmax.f32 %v674_v5, 0.0  ;;  %v5654_v5 = vld [vmem:[#allocation4 + $0x8c] sm:$0xf0] }
 0x127   : > { %v5016_v9 = vor.u32 %v5654_v5, %v5015_v4  ;;  %v5692_v5 = vld [vmem:[#allocation4 + $0x1c4] sm:$0xf] }
 0x128   : > { %v767_v11 = vpack.c.bf16 %v740_v7, %v739_v6  ;;  %v5143_v6 = vld [vmem:[#allocation4 + $0x180] sm:$0xf]  ;;  %v4908_v7 = vor.u32 %v5624_v0, %v4905_v3  ;;  %v5660_v0 = vld [vmem:[#allocation4 + $0xc4] sm:$0xf] }
 0x129   : > { %1773 = vmatpush.bf16.msrb.mxu1 %v5016_v9 }
 0x12a   : > { %4873 = vmatmul.msk.bf16.gmra.mxu1 %vm812_vm0, %v767_v11  ;;  %v5144_v11 = vor.u32 %v5686_v10, %v5143_v6  ;;  %1195 = vmatpush.bf16.msra.mxu3 %v4908_v7  ;;  %v5177_v6 = vld [vmem:[#allocation4 + $0x1d0] sm:$0xf0] }
 0x12b   : > { %v676_v15 = vpop.f32.mrf.mxu0 }
 0x12c   : > { %v677_v17 = vadd.f32 %v676_v15, %v6304_v22  ;;  %1862 = vmatpush.bf16.msrb.mxu0 %v5144_v11 }
 0x12e   : > { %715 = vmatmul.bf16.gmra.mxu0 %v5605_v12  ;;  %v741_v26 = vmax.f32 %v677_v17, 0.0  ;;  %v4895_v12 = vld [vmem:[%s7704_s3 + $0x10] sm:$0xf]  ;;  %v4900_v17 = vor.u32 %v5622_v14, %v4897_v16 }
 0x12f   : > { %v4896_v15 = vor.u32 %v5623_v13, %v4895_v12 }
 0x130   : > { %1196 = vmatpush.bf16.msra.mxu3 %v4900_v17 }
 0x131   : > { %1107 = vmatpush.bf16.msra.mxu2 %v4896_v15 }
 0x133   : > { %v678_v18 = vpop.f32.mrf.mxu0 }
 0x134   : > { %v679_v19 = vadd.f32 %v678_v18, %v6304_v22  ;;  %v4887_v18 = vld [vmem:[%s7704_s3] sm:$0xf]  ;;  %1197 = vmatpush.bf16.msra.mxu3 %v4892_v25 }
 0x136   : > { %v742_v27 = vmax.f32 %v679_v19, 0.0  ;;  %v5621_v19 = vld [vmem:[%s7704_s3 + $0x4] sm:$0xf0] }
 0x137   : > { %v4888_v21 = vor.u32 %v5621_v19, %v4887_v18 }
 0x138   : > { %v768_v29 = vpack.c.bf16 %v742_v27, %v741_v26 }
 0x139   : > { %1108 = vmatpush.bf16.msra.mxu2 %v4888_v21 }
 0x13a   : > { %4874 = vmatmul.msk.bf16.gmra.mxu1 %vm812_vm0, %v768_v29 }
 0x13b   : > { %v681_v37 = vpop.f32.mrf.mxu0 }
 0x13c   : > { %v682_v49 = vadd.f32 %v681_v37, %v6304_v22 }
 0x13d   : > { %1948 = vmatpush.bf16.msrb.mxu2 %v5068_v32 }
 0x13e   : > { %720 = vmatmul.bf16.gmra.mxu0 %v5606_v35  ;;  %v743_v58 = vmax.f32 %v682_v49, 0.0  ;;  %v5193_v35 = vld [vmem:[#allocation4 + $0x1f0] sm:$0xf0]  ;;  %v5000_v49 = vor.u32 %v5650_v46, %v4999_v45  ;;  %v5688_v46 = vld [vmem:[#allocation4 + $0x1a4] sm:$0xf] }
 0x13f   : > { %v5196_v37 = vor.u32 %v5696_v34, %v5193_v35 }
 0x140   : > { %1774 = vmatpush.bf16.msrb.mxu1 %v5000_v49 }
 0x141   : > { %2037 = vmatpush.bf16.msrb.mxu3 %v5196_v37 }
 0x143   : > { %v683_v51 = vpop.f32.mrf.mxu0 }
 0x144   : > { %v684_v52 = vadd.f32 %v683_v51, %v6304_v22  ;;  %v5682_v51 = vld [vmem:[#allocation4 + $0x16c] sm:$0xf0] }
 0x146   : > { %v744_v59 = vmax.f32 %v684_v52, 0.0  ;;  %v5128_v52 = vor.u32 %v5682_v51, %v5127_v50 }
 0x148   : > { %v769_v61 = vpack.c.bf16 %v744_v59, %v743_v58  ;;  %1863 = vmatpush.bf16.msrb.mxu0 %v5128_v52 }
 0x14a   : > { %4875 = vmatmul.msk.bf16.gmra.mxu1 %vm812_vm0, %v769_v61 }
 0x14b   : > { %v686_v8 = vpop.f32.mrf.mxu0 }
 0x14c   : > { %v687_v24 = vadd.f32 %v686_v8, %v6304_v22  ;;  %v5180_v8 = vor.u32 %v5692_v5, %v5177_v6  ;;  %v5674_v5 = vld [vmem:[#allocation4 + $0x12c] sm:$0xf0] }
 0x14e   : > { %725 = vmatmul.bf16.gmra.mxu0 %v5607_v1  ;;  %v745_v28 = vmax.f32 %v687_v24, 0.0  ;;  %v5049_v1 = vld [vmem:[#allocation4 + $0xd0] sm:$0xf0]  ;;  %2038 = vmatpush.bf16.msrb.mxu3 %v5180_v8  ;;  %v5646_v24 = vld [vmem:[#allocation4 + $0x4c] sm:$0xf0] }
 0x14f   : > { %v5052_v3 = vor.u32 %v5660_v0, %v5049_v1  ;;  %v4967_v0 = vld [vmem:[#allocation4 + $0x20] sm:$0xf]  ;;  %v5642_v1 = vld [vmem:[#allocation4 + $0x2c] sm:$0xf0] }
 0x151   : > { %1949 = vmatpush.bf16.msrb.mxu2 %v5052_v3  ;;  %v4968_v3 = vor.u32 %v5642_v1, %v4967_v0  ;;  %v5680_v1 = vld [vmem:[#allocation4 + $0x164] sm:$0xf] }
 0x153   : > { %v688_v26 = vpop.f32.mrf.mxu0 }
 0x154   : > { %v689_v27 = vadd.f32 %v688_v26, %v6304_v22  ;;  %v4984_v26 = vor.u32 %v5646_v24, %v4983_v23  ;;  %v5684_v24 = vld [vmem:[#allocation4 + $0x184] sm:$0xf] }
 0x156   : > { %v746_v29 = vmax.f32 %v689_v27, 0.0  ;;  %v5111_v27 = vld [vmem:[#allocation4 + $0x140] sm:$0xf]  ;;  %1775 = vmatpush.bf16.msrb.mxu1 %v4984_v26 }
 0x158   : > { %v770_v33 = vpack.c.bf16 %v746_v29, %v745_v28  ;;  %v5678_v28 = vld [vmem:[#allocation4 + $0x14c] sm:$0xf0] }
 0x159   : > { %v5112_v29 = vor.u32 %v5678_v28, %v5111_v27 }
 0x15a   : > { %4876 = vmatmul.msk.bf16.gmra.mxu1 %vm812_vm0, %v770_v33 }
 0x15b   : > { %v691_v36 = vpop.f32.mrf.mxu0  ;;  %1864 = vmatpush.bf16.msrb.mxu0 %v5112_v29  ;;  %1776 = vmatpush.bf16.msrb.mxu1 %v4968_v3 }
 0x15c   : > { %v692_v38 = vadd.f32 %v691_v36, %v6304_v22 }
 0x15e   : > { %v747_v41 = vmax.f32 %v692_v38, 0.0 }
 0x163   : > { %v693_v39 = vpop.f32.mrf.mxu0 }
 0x164   : > { %v694_v40 = vadd.f32 %v693_v39, %v6304_v22 }
 0x166   : > { %v748_v42 = vmax.f32 %v694_v40, 0.0 }
 0x167   : > { %v870_v43 = vpop.f32.mrf.mxu1 }
 0x168   : > { %v771_v44 = vpack.c.bf16 %v748_v42, %v747_v41  ;;  %v871_v53 = vadd.f32 %v870_v43, %v6436_v47  ;;  %v5656_v43 = vld [vmem:[#allocation4 + $0xa4] sm:$0xf] }
 0x16a   : > { %4877 = vmatmul.msk.bf16.gmra.mxu1 %vm812_vm0, %v771_v44  ;;  %v950_v56 = vmax.f32 %v871_v53, 0.0  ;;  %v5033_v44 = vld [vmem:[#allocation4 + $0xb0] sm:$0xf0] }
 0x16b   : > { %v696_v48 = vpop.f32.mrf.mxu0  ;;  %v5036_v45 = vor.u32 %v5656_v43, %v5033_v44 }
 0x16c   : > { %v697_v57 = vadd.f32 %v696_v48, %v6304_v22  ;;  %v5161_v48 = vld [vmem:[#allocation4 + $0x1b0] sm:$0xf0] }
 0x16d   : > { %1950 = vmatpush.bf16.msrb.mxu2 %v5036_v45  ;;  %v5164_v50 = vor.u32 %v5688_v46, %v5161_v48  ;;  %v5079_v45 = vld [vmem:[#allocation4 + $0x100] sm:$0xf]  ;;  %v5670_v46 = vld [vmem:[#allocation4 + $0x10c] sm:$0xf0] }
 0x16e   : > { %v749_v62 = vmax.f32 %v697_v57, 0.0  ;;  %v5080_v48 = vor.u32 %v5670_v46, %v5079_v45 }
 0x16f   : > { %v872_v54 = vpop.f32.mrf.mxu1  ;;  %2039 = vmatpush.bf16.msrb.mxu3 %v5164_v50 }
 0x170   : > { %v873_v55 = vadd.f32 %v872_v54, %v6436_v47 }
 0x172   : > { %v951_v58 = vmax.f32 %v873_v55, 0.0 }
 0x173   : > { %v698_v59 = vpop.f32.mrf.mxu0 }
 0x174   : > { %v699_v60 = vadd.f32 %v698_v59, %v6304_v22  ;;  %v982_v61 = vpack.c.bf16 %v951_v58, %v950_v56 }
 0x176   : > { %v750_v63 = vmax.f32 %v699_v60, 0.0  ;;  %1109 = vmatmul.bf16.vlgmr.msra.gmra.mxu2 %v982_v61  ;;  %1198 = vmatmul.bf16.vlgmr.msra.gmra.mxu3 %v982_v61 }
 0x177   : > { %v875_v2 = vpop.f32.mrf.mxu1 }
 0x178   : > { %v772_v4 = vpack.c.bf16 %v750_v63, %v749_v62  ;;  %v876_v9 = vadd.f32 %v875_v2, %v6436_v47 }
 0x17a   : > { %4878 = vmatmul.msk.bf16.gmra.mxu1 %vm812_vm0, %v772_v4  ;;  %v952_v12 = vmax.f32 %v876_v9, 0.0  ;;  %v5095_v4 = vld [vmem:[#allocation4 + $0x120] sm:$0xf] }
 0x17b   : > { %v701_v7 = vpop.f32.mrf.mxu0  ;;  %v5096_v6 = vor.u32 %v5674_v5, %v5095_v4 }
 0x17c   : > { %v702_v13 = vadd.f32 %v701_v7, %v6304_v22 }
 0x17d   : > { %1865 = vmatpush.bf16.msrb.mxu0 %v5096_v6 }
 0x17e   : > { %v751_v18 = vmax.f32 %v702_v13, 0.0 }
 0x17f   : > { %v877_v10 = vpop.f32.mrf.mxu1 }
 0x180   : > { %v878_v11 = vadd.f32 %v877_v10, %v6436_v47 }
 0x181   : > { %1866 = vmatpush.bf16.msrb.mxu0 %v5080_v48 }
 0x182   : > { %v953_v14 = vmax.f32 %v878_v11, 0.0 }
 0x183   : > { %v703_v15 = vpop.f32.mrf.mxu0 }
 0x184   : > { %v704_v16 = vadd.f32 %v703_v15, %v6304_v22  ;;  %v983_v17 = vpack.c.bf16 %v953_v14, %v952_v12 }
 0x186   : > { %v752_v19 = vmax.f32 %v704_v16, 0.0  ;;  %1114 = vmatmul.bf16.gmra.mxu2 %v983_v17  ;;  %1203 = vmatmul.bf16.gmra.mxu3 %v983_v17 }
 0x187   : > { %v880_v20 = vpop.f32.mrf.mxu1 }
 0x188   : > { %v773_v21 = vpack.c.bf16 %v752_v19, %v751_v18  ;;  %v881_v30 = vadd.f32 %v880_v20, %v6436_v47  ;;  %v5652_v20 = vld [vmem:[#allocation4 + $0x84] sm:$0xf] }
 0x18a   : > { %4879 = vmatmul.msk.bf16.gmra.mxu1 %vm812_vm0, %v773_v21  ;;  %v954_v33 = vmax.f32 %v881_v30, 0.0  ;;  %v5017_v21 = vld [vmem:[#allocation4 + $0x90] sm:$0xf0] }
 0x18b   : > { %v706_v25 = vpop.f32.mrf.mxu0  ;;  %v5020_v23 = vor.u32 %v5652_v20, %v5017_v21 }
 0x18c   : > { %v707_v34 = vadd.f32 %v706_v25, %v6304_v22  ;;  %v5145_v25 = vld [vmem:[#allocation4 + $0x190] sm:$0xf0] }
 0x18d   : > { %1951 = vmatpush.bf16.msrb.mxu2 %v5020_v23  ;;  %v5148_v27 = vor.u32 %v5684_v24, %v5145_v25  ;;  %v5644_v23 = vld [vmem:[#allocation4 + $0x44] sm:$0xf]  ;;  %v4985_v24 = vld [vmem:[#allocation4 + $0x50] sm:$0xf0] }
 0x18e   : > { %v753_v39 = vmax.f32 %v707_v34, 0.0 }
 0x18f   : > { %v882_v31 = vpop.f32.mrf.mxu1  ;;  %2040 = vmatpush.bf16.msrb.mxu3 %v5148_v27  ;;  %v1015_v27 = vld [vmem:[#allocation9 + $0x2] ss:$8 sm:$0x3] }
 0x190   : > { %v883_v32 = vadd.f32 %v882_v31, %v6436_v47 }
 0x192   : > { %v955_v35 = vmax.f32 %v883_v32, 0.0 }
 0x193   : > { %v708_v36 = vpop.f32.mrf.mxu0 }
 0x194   : > { %v709_v37 = vadd.f32 %v708_v36, %v6304_v22  ;;  %v984_v38 = vpack.c.bf16 %v955_v35, %v954_v33 }
 0x196   : > { %v754_v40 = vmax.f32 %v709_v37, 0.0  ;;  %1119 = vmatmul.bf16.gmra.mxu2 %v984_v38  ;;  %1208 = vmatmul.bf16.gmra.mxu3 %v984_v38 }
 0x197   : > { %v885_v41 = vpop.f32.mrf.mxu1 }
 0x198   : > { %v774_v42 = vpack.c.bf16 %v754_v40, %v753_v39  ;;  %v886_v51 = vadd.f32 %v885_v41, %v6436_v47  ;;  %v4951_v41 = vld [vmem:[#allocation4] sm:$0xf] }
 0x19a   : > { %4880 = vmatmul.msk.bf16.gmra.mxu1 %vm812_vm0, %v774_v42  ;;  %v956_v54 = vmax.f32 %v886_v51, 0.0  ;;  %v5638_v42 = vld [vmem:[#allocation4 + $0xc] sm:$0xf0] }
 0x19b   : > { %v711_v49 = vpop.f32.mrf.mxu0  ;;  %v4952_v44 = vor.u32 %v5638_v42, %v4951_v41 }
 0x19c   : > { %v712_v55 = vadd.f32 %v711_v49, %v6304_v22 }
 0x19d   : > { %1777 = vmatpush.bf16.msrb.mxu1 %v4952_v44 }
 0x19e   : > { %v755_v60 = vmax.f32 %v712_v55, 0.0 }
 0x19f   : > { %v887_v52 = vpop.f32.mrf.mxu1 }
 0x1a0   : > { %v888_v53 = vadd.f32 %v887_v52, %v6436_v47 }
 0x1a2   : > { %v957_v56 = vmax.f32 %v888_v53, 0.0 }
 0x1a3   : > { %v713_v57 = vpop.f32.mrf.mxu0 }
 0x1a4   : > { %v714_v58 = vadd.f32 %v713_v57, %v6304_v22  ;;  %v985_v59 = vpack.c.bf16 %v957_v56, %v956_v54 }
 0x1a6   : > { %v756_v61 = vmax.f32 %v714_v58, 0.0  ;;  %1124 = vmatmul.bf16.gmra.mxu2 %v985_v59  ;;  %1213 = vmatmul.bf16.gmra.mxu3 %v985_v59 }
 0x1a7   : > { %v890_v62 = vpop.f32.mrf.mxu1 }
 0x1a8   : > { %v775_v63 = vpack.c.bf16 %v756_v61, %v755_v60  ;;  %v891_v7 = vadd.f32 %v890_v62, %v6436_v47  ;;  %v5648_v60 = vld [vmem:[#allocation4 + $0x64] sm:$0xf]  ;;  %v5001_v61 = vld [vmem:[#allocation4 + $0x70] sm:$0xf0] }
 0x1aa   : > { %4881 = vmatmul.msk.bf16.gmra.mxu1 %vm812_vm0, %v775_v63  ;;  %v958_v10 = vmax.f32 %v891_v7, 0.0  ;;  %v5004_v63 = vor.u32 %v5648_v60, %v5001_v61  ;;  %v5183_v60 = vld [vmem:[#allocation4 + $0x1c8] sm:$0xf]  ;;  %v5695_v61 = vld [vmem:[#allocation4 + $0x1d4] sm:$0xf0] }
 0x1ab   : > { %v716_v2 = vpop.f32.mrf.mxu0 }
 0x1ac   : > { %v717_v11 = vadd.f32 %v716_v2, %v6304_v22  ;;  %1952 = vmatpush.bf16.msrb.mxu2 %v5004_v63  ;;  %v5129_v2 = vld [vmem:[#allocation4 + $0x170] sm:$0xf0] }
 0x1ad   : > { %v5132_v3 = vor.u32 %v5680_v1, %v5129_v2 }
 0x1ae   : > { %v757_v16 = vmax.f32 %v717_v11, 0.0  ;;  %v5667_v11 = vld [vmem:[#allocation4 + $0xf4] sm:$0xf0] }
 0x1af   : > { %v892_v8 = vpop.f32.mrf.mxu1  ;;  %2041 = vmatpush.bf16.msrb.mxu3 %v5132_v3 }
 0x1b0   : > { %v893_v9 = vadd.f32 %v892_v8, %v6436_v47 }
 0x1b2   : > { %v959_v12 = vmax.f32 %v893_v9, 0.0 }
 0x1b3   : > { %v718_v13 = vpop.f32.mrf.mxu0 }
 0x1b4   : > { %v719_v14 = vadd.f32 %v718_v13, %v6304_v22  ;;  %v986_v15 = vpack.c.bf16 %v959_v12, %v958_v10  ;;  %v5071_v10 = vld [vmem:[#allocation4 + $0xe8] sm:$0xf] }
 0x1b5   : > { %v5072_v12 = vor.u32 %v5667_v11, %v5071_v10  ;;  %v5199_v13 = vld [vmem:[#allocation4 + $0x1e8] sm:$0xf] }
 0x1b6   : > { %v758_v17 = vmax.f32 %v719_v14, 0.0  ;;  %1129 = vmatmul.bf16.gmra.mxu2 %v986_v15  ;;  %1218 = vmatmul.bf16.gmra.mxu3 %v986_v15  ;;  %v5699_v14 = vld [vmem:[#allocation4 + $0x1f4] sm:$0xf0] }
 0x1b7   : > { %v895_v18 = vpop.f32.mrf.mxu1  ;;  %2126 = vmatpush.bf16.msra.mxu1 %v5072_v12  ;;  %v5200_v15 = vor.u32 %v5699_v14, %v5199_v13 }
 0x1b8   : > { %v776_v19 = vpack.c.bf16 %v758_v17, %v757_v16  ;;  %v896_v28 = vadd.f32 %v895_v18, %v6436_v47 }
 0x1b9   : > { %2215 = vmatpush.bf16.msra.mxu0 %v5200_v15 }
 0x1ba   : > { %4882 = vmatmul.msk.bf16.gmra.mxu1 %vm812_vm0, %v776_v19  ;;  %v960_v31 = vmax.f32 %v896_v28, 0.0 }
 0x1bb   : > { %v721_v26 = vpop.f32.mrf.mxu0 }
 0x1bc   : > { %v722_v32 = vadd.f32 %v721_v26, %v6304_v22  ;;  %v4988_v26 = vor.u32 %v5644_v23, %v4985_v24  ;;  %v5672_v23 = vld [vmem:[#allocation4 + $0x124] sm:$0xf]  ;;  %v5097_v24 = vld [vmem:[#allocation4 + $0x130] sm:$0xf0] }
 0x1be   : > { %v759_v37 = vmax.f32 %v722_v32, 0.0  ;;  %1953 = vmatpush.bf16.msrb.mxu2 %v4988_v26  ;;  %v6477_v32 = vperm.slane %v1015_v27, 0 }
 0x1bf   : > { %v897_v29 = vpop.f32.mrf.mxu1 }
 0x1c0   : > { %v898_v30 = vadd.f32 %v897_v29, %v6436_v47 }
 0x1c2   : > { %v961_v33 = vmax.f32 %v898_v30, 0.0  ;;  %v5676_v30 = vld [vmem:[#allocation4 + $0x144] sm:$0xf] }
 0x1c3   : > { %v723_v34 = vpop.f32.mrf.mxu0 }
 0x1c4   : > { %v724_v35 = vadd.f32 %v723_v34, %v6304_v22  ;;  %v987_v36 = vpack.c.bf16 %v961_v33, %v960_v31  ;;  %v5113_v31 = vld [vmem:[#allocation4 + $0x150] sm:$0xf0]  ;;  %v6479_v34 = vperm.slane %v1015_v27, 1 }
 0x1c5   : > { %v5116_v33 = vor.u32 %v5676_v30, %v5113_v31 }
 0x1c6   : > { %v760_v38 = vmax.f32 %v724_v35, 0.0  ;;  %1134 = vmatmul.bf16.gmra.mxu2 %v987_v36  ;;  %1223 = vmatmul.bf16.gmra.mxu3 %v987_v36 }
 0x1c7   : > { %v900_v39 = vpop.f32.mrf.mxu1  ;;  %2042 = vmatpush.bf16.msrb.mxu3 %v5116_v33 }
 0x1c8   : > { %v777_v40 = vpack.c.bf16 %v760_v38, %v759_v37  ;;  %v901_v49 = vadd.f32 %v900_v39, %v6436_v47 }
 0x1ca   : > { %4883 = vmatmul.msk.bf16.gmra.mxu1 %vm812_vm0, %v777_v40  ;;  %v962_v52 = vmax.f32 %v901_v49, 0.0 }
 0x1cb   : > { %v726_v43 = vpop.f32.mrf.mxu0 }
 0x1cc   : > { %v727_v53 = vadd.f32 %v726_v43, %v6304_v22 }
 0x1ce   : > { %v761_v58 = vmax.f32 %v727_v53, 0.0 }
 0x1cf   : > { %v902_v50 = vpop.f32.mrf.mxu1 }
 0x1d0   : > { %v903_v51 = vadd.f32 %v902_v50, %v6436_v47 }
 0x1d2   : > { %v963_v54 = vmax.f32 %v903_v51, 0.0 }
 0x1d3   : > { %v728_v55 = vpop.f32.mrf.mxu0 }
 0x1d4   : > { %v729_v56 = vadd.f32 %v728_v55, %v6304_v22  ;;  %v988_v57 = vpack.c.bf16 %v963_v54, %v962_v52 }
 0x1d6   : > { %v762_v59 = vmax.f32 %v729_v56, 0.0  ;;  %1139 = vmatmul.bf16.gmra.mxu2 %v988_v57  ;;  %1228 = vmatmul.bf16.gmra.mxu3 %v988_v57  ;;  %v5055_v57 = vld [vmem:[#allocation4 + $0xc8] sm:$0xf] }
 0x1d7   : > { %v905_v62 = vpop.f32.mrf.mxu1 }
 0x1d8   : > { %v778_v0 = vpack.c.bf16 %v762_v59, %v761_v58  ;;  %v906_v4 = vadd.f32 %v905_v62, %v6436_v47  ;;  %v5663_v58 = vld [vmem:[#allocation4 + $0xd4] sm:$0xf0]  ;;  %v5184_v62 = vor.u32 %v5695_v61, %v5183_v60 }
 0x1d9   : > { %v5056_v59 = vor.u32 %v5663_v58, %v5055_v57 }
 0x1da   : > { %4884 = vmatmul.msk.bf16.gmra.mxu1 %vm812_vm0, %v778_v0  ;;  %v964_v6 = vmax.f32 %v906_v4, 0.0  ;;  %2216 = vmatpush.bf16.msra.mxu0 %v5184_v62 }
 0x1db   : > { %2127 = vmatpush.bf16.msra.mxu1 %v5056_v59 }
 0x1df   : > { %v907_v22 = vpop.f32.mrf.mxu1 }
 0x1e0   : > { %v908_v5 = vadd.f32 %v907_v22, %v6436_v47 }
 0x1e2   : > { %v965_v7 = vmax.f32 %v908_v5, 0.0 }
 0x1e4   : > { %v989_v8 = vpack.c.bf16 %v965_v7, %v964_v6 }
 0x1e6   : > { %1144 = vmatmul.bf16.gmra.mxu2 %v989_v8  ;;  %1233 = vmatmul.bf16.gmra.mxu3 %v989_v8 }
 0x1e7   : > { %v910_v9 = vpop.f32.mrf.mxu1 }
 0x1e8   : > { %v911_v16 = vadd.f32 %v910_v9, %v6436_v47 }
 0x1ea   : > { %v966_v19 = vmax.f32 %v911_v16, 0.0  ;;  %v5640_v16 = vld [vmem:[#allocation4 + $0x24] sm:$0xf] }
 0x1ef   : > { %v912_v17 = vpop.f32.mrf.mxu1 }
 0x1f0   : > { %v913_v18 = vadd.f32 %v912_v17, %v6436_v47  ;;  %v4969_v17 = vld [vmem:[#allocation4 + $0x30] sm:$0xf0] }
 0x1f2   : > { %v967_v20 = vmax.f32 %v913_v18, 0.0 }
 0x1f4   : > { %v990_v21 = vpack.c.bf16 %v967_v20, %v966_v19  ;;  %v4972_v19 = vor.u32 %v5640_v16, %v4969_v17 }
 0x1f6   : > { %1149 = vmatmul.bf16.gmra.mxu2 %v990_v21  ;;  %1238 = vmatmul.bf16.gmra.mxu3 %v990_v21 }
 0x1f7   : > { %v915_v25 = vpop.f32.mrf.mxu1  ;;  %1954 = vmatpush.bf16.msrb.mxu2 %v4972_v19  ;;  %v5668_v19 = vld [vmem:[#allocation4 + $0x104] sm:$0xf] }
 0x1f8   : > { %v916_v35 = vadd.f32 %v915_v25, %v6436_v47  ;;  %v5100_v25 = vor.u32 %v5672_v23, %v5097_v24 }
 0x1f9   : > { %v1110_v28 = vpop.f32.mrf.mxu2  ;;  %v1199_v29 = vpop.f32.mrf.mxu3 }
 0x1fa   : > { %v1111_v36 = vadd.f32 %v1110_v28, %v6477_v32  ;;  %v1200_v38 = vadd.f32 %v1199_v29, %v6479_v34  ;;  %v968_v42 = vmax.f32 %v916_v35, 0.0  ;;  %2043 = vmatpush.bf16.msrb.mxu3 %v5100_v25 }
 0x1fc   : > { %v1279_v46 = vmax.f32 %v1111_v36, 0.0  ;;  %v1280_v48 = vmax.f32 %v1200_v38, 0.0 }
 0x1ff   : > { %v917_v37 = vpop.f32.mrf.mxu1 }
 0x200   : > { %v918_v39 = vadd.f32 %v917_v37, %v6436_v47 }
 0x201   : > { %v1112_v40 = vpop.f32.mrf.mxu2  ;;  %v1201_v41 = vpop.f32.mrf.mxu3 }
 0x202   : > { %v969_v43 = vmax.f32 %v918_v39, 0.0  ;;  %v1113_v44 = vadd.f32 %v1112_v40, %v6477_v32  ;;  %v1202_v45 = vadd.f32 %v1201_v41, %v6479_v34 }
 0x204   : > { %v1281_v49 = vmax.f32 %v1113_v44, 0.0  ;;  %v1282_v50 = vmax.f32 %v1202_v45, 0.0  ;;  %v991_v51 = vpack.c.bf16 %v969_v43, %v968_v42 }
 0x206   : > { %v6487_v52 = vpack.c.bf16 %v1281_v49, %v1279_v46  ;;  %v6489_v53 = vpack.c.bf16 %v1282_v50, %v1280_v48  ;;  %1154 = vmatmul.bf16.gmra.mxu2 %v991_v51  ;;  %1243 = vmatmul.bf16.gmra.mxu3 %v991_v51  ;;  %v5039_v50 = vld [vmem:[#allocation4 + $0xa8] sm:$0xf]  ;;  %v5659_v51 = vld [vmem:[#allocation4 + $0xb4] sm:$0xf0] }
 0x207   : > { %v920_v54 = vpop.f32.mrf.mxu1 }
 0x208   : > { %1778 = vmatmul.bf16.vlgmr.msrb.gmra.mxu1 %v6487_v52  ;;  %1867 = vmatmul.bf16.vlgmr.msrb.gmra.mxu0 %v6489_v53  ;;  %v921_v63 = vadd.f32 %v920_v54, %v6436_v47  ;;  %v5040_v54 = vor.u32 %v5659_v51, %v5039_v50 }
 0x209   : > { %v1115_v55 = vpop.f32.mrf.mxu2  ;;  %v1204_v56 = vpop.f32.mrf.mxu3 }
 0x20a   : > { %v1116_v0 = vadd.f32 %v1115_v55, %v6477_v32  ;;  %v1205_v2 = vadd.f32 %v1204_v56, %v6479_v34  ;;  %v970_v5 = vmax.f32 %v921_v63, 0.0  ;;  %v5167_v55 = vld [vmem:[#allocation4 + $0x1a8] sm:$0xf]  ;;  %v5691_v56 = vld [vmem:[#allocation4 + $0x1b4] sm:$0xf0]  ;;  %2128 = vmatpush.bf16.msra.mxu1 %v5040_v54 }
 0x20b   : > { %v5168_v57 = vor.u32 %v5691_v56, %v5167_v55  ;;  %v5151_v54 = vld [vmem:[#allocation4 + $0x188] sm:$0xf]  ;;  %v5687_v55 = vld [vmem:[#allocation4 + $0x194] sm:$0xf0] }
 0x20c   : > { %v1283_v9 = vmax.f32 %v1116_v0, 0.0  ;;  %v1284_v10 = vmax.f32 %v1205_v2, 0.0  ;;  %v5152_v56 = vor.u32 %v5687_v55, %v5151_v54  ;;  %v5135_v55 = vld [vmem:[#allocation4 + $0x168] sm:$0xf] }
 0x20d   : > { %2217 = vmatpush.bf16.msra.mxu0 %v5168_v57 }
 0x20f   : > { %v922_v1 = vpop.f32.mrf.mxu1 }
 0x210   : > { %v923_v3 = vadd.f32 %v922_v1, %v6436_v47 }
 0x211   : > { %v1117_v4 = vpop.f32.mrf.mxu2  ;;  %v1206_v22 = vpop.f32.mrf.mxu3  ;;  %2218 = vmatpush.bf16.msra.mxu0 %v5152_v56  ;;  %v5683_v56 = vld [vmem:[#allocation4 + $0x174] sm:$0xf0] }
 0x212   : > { %v971_v6 = vmax.f32 %v923_v3, 0.0  ;;  %v1118_v7 = vadd.f32 %v1117_v4, %v6477_v32  ;;  %v1207_v8 = vadd.f32 %v1206_v22, %v6479_v34 }
 0x214   : > { %v1285_v11 = vmax.f32 %v1118_v7, 0.0  ;;  %v1286_v12 = vmax.f32 %v1207_v8, 0.0  ;;  %v992_v13 = vpack.c.bf16 %v971_v6, %v970_v5 }
 0x216   : > { %v6499_v14 = vpack.c.bf16 %v1285_v11, %v1283_v9  ;;  %v6501_v15 = vpack.c.bf16 %v1286_v12, %v1284_v10  ;;  %1159 = vmatmul.bf16.gmra.mxu2 %v992_v13  ;;  %1248 = vmatmul.bf16.gmra.mxu3 %v992_v13  ;;  %v5636_v11 = vld [vmem:[#allocation4 + $0x4] sm:$0xf]  ;;  %v4953_v12 = vld [vmem:[#allocation4 + $0x10] sm:$0xf0] }
 0x217   : > { %v925_v18 = vpop.f32.mrf.mxu1  ;;  %v4956_v16 = vor.u32 %v5636_v11, %v4953_v12  ;;  %v5665_v12 = vld [vmem:[#allocation4 + $0xec] sm:$0xf] }
 0x218   : > { %1783 = vmatmul.bf16.gmra.mxu1 %v6499_v14  ;;  %1872 = vmatmul.bf16.gmra.mxu0 %v6501_v15  ;;  %v926_v26 = vadd.f32 %v925_v18, %v6436_v47 }
 0x219   : > { %v1120_v20 = vpop.f32.mrf.mxu2  ;;  %v1209_v21 = vpop.f32.mrf.mxu3  ;;  %1955 = vmatpush.bf16.msrb.mxu2 %v4956_v16 }
 0x21a   : > { %v1121_v27 = vadd.f32 %v1120_v20, %v6477_v32  ;;  %v1210_v29 = vadd.f32 %v1209_v21, %v6479_v34  ;;  %v972_v35 = vmax.f32 %v926_v26, 0.0  ;;  %v5081_v20 = vld [vmem:[#allocation4 + $0x110] sm:$0xf0] }
 0x21b   : > { %v5084_v21 = vor.u32 %v5668_v19, %v5081_v20  ;;  %v5201_v19 = vld [vmem:[#allocation4 + $0x1f8] sm:$0xf0] }
 0x21c   : > { %v1287_v39 = vmax.f32 %v1121_v27, 0.0  ;;  %v1288_v40 = vmax.f32 %v1210_v29, 0.0 }
 0x21d   : > { %2044 = vmatpush.bf16.msrb.mxu3 %v5084_v21 }
 0x21f   : > { %v927_v28 = vpop.f32.mrf.mxu1 }
 0x220   : > { %v928_v30 = vadd.f32 %v927_v28, %v6436_v47 }
 0x221   : > { %v1122_v31 = vpop.f32.mrf.mxu2  ;;  %v1211_v33 = vpop.f32.mrf.mxu3 }
 0x222   : > { %v973_v36 = vmax.f32 %v928_v30, 0.0  ;;  %v1123_v37 = vadd.f32 %v1122_v31, %v6477_v32  ;;  %v1212_v38 = vadd.f32 %v1211_v33, %v6479_v34 }
 0x224   : > { %v1289_v41 = vmax.f32 %v1123_v37, 0.0  ;;  %v1290_v42 = vmax.f32 %v1212_v38, 0.0  ;;  %v993_v43 = vpack.c.bf16 %v973_v36, %v972_v35 }
 0x226   : > { %v6511_v44 = vpack.c.bf16 %v1289_v41, %v1287_v39  ;;  %v6513_v45 = vpack.c.bf16 %v1290_v42, %v1288_v40  ;;  %1164 = vmatmul.bf16.gmra.mxu2 %v993_v43  ;;  %1253 = vmatmul.bf16.gmra.mxu3 %v993_v43 }
 0x227   : > { %v930_v46 = vpop.f32.mrf.mxu1 }
 0x228   : > { %1788 = vmatmul.bf16.gmra.mxu1 %v6511_v44  ;;  %1877 = vmatmul.bf16.gmra.mxu0 %v6513_v45  ;;  %v931_v58 = vadd.f32 %v930_v46, %v6436_v47  ;;  %v5023_v46 = vld [vmem:[#allocation4 + $0x88] sm:$0xf] }
 0x229   : > { %v1125_v48 = vpop.f32.mrf.mxu2  ;;  %v1214_v49 = vpop.f32.mrf.mxu3 }
 0x22a   : > { %v1126_v59 = vadd.f32 %v1125_v48, %v6477_v32  ;;  %v1215_v61 = vadd.f32 %v1214_v49, %v6479_v34  ;;  %v974_v1 = vmax.f32 %v931_v58, 0.0  ;;  %v5655_v48 = vld [vmem:[#allocation4 + $0x94] sm:$0xf0] }
 0x22b   : > { %v5024_v51 = vor.u32 %v5655_v48, %v5023_v46 }
 0x22c   : > { %v1291_v22 = vmax.f32 %v1126_v59, 0.0  ;;  %v1292_v5 = vmax.f32 %v1215_v61, 0.0 }
 0x22d   : > { %2129 = vmatpush.bf16.msra.mxu1 %v5024_v51  ;;  %v5651_v51 = vld [vmem:[#allocation4 + $0x74] sm:$0xf0] }
 0x22f   : > { %v932_v60 = vpop.f32.mrf.mxu1 }
 0x230   : > { %v933_v62 = vadd.f32 %v932_v60, %v6436_v47 }
 0x231   : > { %v1127_v63 = vpop.f32.mrf.mxu2  ;;  %v1216_v0 = vpop.f32.mrf.mxu3 }
 0x232   : > { %v975_v2 = vmax.f32 %v933_v62, 0.0  ;;  %v1128_v3 = vadd.f32 %v1127_v63, %v6477_v32  ;;  %v1217_v4 = vadd.f32 %v1216_v0, %v6479_v34 }
 0x234   : > { %v1293_v6 = vmax.f32 %v1128_v3, 0.0  ;;  %v1294_v7 = vmax.f32 %v1217_v4, 0.0  ;;  %v994_v8 = vpack.c.bf16 %v975_v2, %v974_v1 }
 0x236   : > { %v6523_v9 = vpack.c.bf16 %v1293_v6, %v1291_v22  ;;  %v6525_v10 = vpack.c.bf16 %v1294_v7, %v1292_v5  ;;  %1169 = vmatmul.bf16.gmra.mxu2 %v994_v8  ;;  %1258 = vmatmul.bf16.gmra.mxu3 %v994_v8 }
 0x237   : > { %v935_v13 = vpop.f32.mrf.mxu1 }
 0x238   : > { %1793 = vmatmul.bf16.gmra.mxu1 %v6523_v9  ;;  %1882 = vmatmul.bf16.gmra.mxu0 %v6525_v10  ;;  %v936_v23 = vadd.f32 %v935_v13, %v6436_v47  ;;  %v5073_v13 = vld [vmem:[#allocation4 + $0xf8] sm:$0xf0] }
 0x239   : > { %v1130_v17 = vpop.f32.mrf.mxu2  ;;  %v1219_v18 = vpop.f32.mrf.mxu3 }
 0x23a   : > { %v1131_v24 = vadd.f32 %v1130_v17, %v6477_v32  ;;  %v1220_v26 = vadd.f32 %v1219_v18, %v6479_v34  ;;  %v976_v30 = vmax.f32 %v936_v23, 0.0  ;;  %v5076_v17 = vor.u32 %v5665_v12, %v5073_v13  ;;  %v5697_v18 = vld [vmem:[#allocation4 + $0x1ec] sm:$0xf]  ;;  %v5057_v12 = vld [vmem:[#allocation4 + $0xd8] sm:$0xf0] }
 0x23b   : > { %v5204_v23 = vor.u32 %v5697_v18, %v5201_v19  ;;  %v5693_v13 = vld [vmem:[#allocation4 + $0x1cc] sm:$0xf]  ;;  %v6577_v19 = vld [vmem:[#allocation9 + $0x3] ss:$8 sm:$0xf] }
 0x23c   : > { %v1295_v36 = vmax.f32 %v1131_v24, 0.0  ;;  %v1296_v37 = vmax.f32 %v1220_v26, 0.0  ;;  %2304 = vmatpush.bf16.msra.mxu2 %v5076_v17  ;;  %v5185_v17 = vld [vmem:[#allocation4 + $0x1d8] sm:$0xf0] }
 0x23d   : > { %2393 = vmatpush.bf16.msra.mxu3 %v5204_v23  ;;  %v5188_v18 = vor.u32 %v5693_v13, %v5185_v17 }
 0x23f   : > { %v937_v25 = vpop.f32.mrf.mxu1 }
 0x240   : > { %v938_v27 = vadd.f32 %v937_v25, %v6436_v47 }
 0x241   : > { %v1132_v28 = vpop.f32.mrf.mxu2  ;;  %v1221_v29 = vpop.f32.mrf.mxu3  ;;  %2394 = vmatpush.bf16.msra.mxu3 %v5188_v18 }
 0x242   : > { %v977_v31 = vmax.f32 %v938_v27, 0.0  ;;  %v1133_v33 = vadd.f32 %v1132_v28, %v6477_v32  ;;  %v1222_v35 = vadd.f32 %v1221_v29, %v6479_v34 }
 0x244   : > { %v1297_v38 = vmax.f32 %v1133_v33, 0.0  ;;  %v1298_v39 = vmax.f32 %v1222_v35, 0.0  ;;  %v995_v40 = vpack.c.bf16 %v977_v31, %v976_v30 }
 0x246   : > { %v6535_v41 = vpack.c.bf16 %v1297_v38, %v1295_v36  ;;  %v6537_v42 = vpack.c.bf16 %v1298_v39, %v1296_v37  ;;  %1174 = vmatmul.bf16.gmra.mxu2 %v995_v40  ;;  %1263 = vmatmul.bf16.gmra.mxu3 %v995_v40 }
 0x247   : > { %v940_v43 = vpop.f32.mrf.mxu1 }
 0x248   : > { %1798 = vmatmul.bf16.gmra.mxu1 %v6535_v41  ;;  %1887 = vmatmul.bf16.gmra.mxu0 %v6537_v42  ;;  %v941_v57 = vadd.f32 %v940_v43, %v6436_v47 }
 0x249   : > { %v1135_v49 = vpop.f32.mrf.mxu2  ;;  %v1224_v50 = vpop.f32.mrf.mxu3 }
 0x24a   : > { %v1136_v58 = vadd.f32 %v1135_v49, %v6477_v32  ;;  %v1225_v60 = vadd.f32 %v1224_v50, %v6479_v34  ;;  %v978_v0 = vmax.f32 %v941_v57, 0.0  ;;  %v5007_v50 = vld [vmem:[#allocation4 + $0x68] sm:$0xf]  ;;  %v5136_v57 = vor.u32 %v5683_v56, %v5135_v55 }
 0x24b   : > { %v5008_v54 = vor.u32 %v5651_v51, %v5007_v50  ;;  %v5119_v51 = vld [vmem:[#allocation4 + $0x148] sm:$0xf] }
 0x24c   : > { %v1299_v4 = vmax.f32 %v1136_v58, 0.0  ;;  %v1300_v22 = vmax.f32 %v1225_v60, 0.0  ;;  %2219 = vmatpush.bf16.msra.mxu0 %v5136_v57 }
 0x24d   : > { %2130 = vmatpush.bf16.msra.mxu1 %v5008_v54  ;;  %v5679_v54 = vld [vmem:[#allocation4 + $0x154] sm:$0xf0] }
 0x24e   : > { %v5120_v57 = vor.u32 %v5679_v54, %v5119_v51 }
 0x24f   : > { %v942_v59 = vpop.f32.mrf.mxu1 }
 0x250   : > { %v943_v61 = vadd.f32 %v942_v59, %v6436_v47  ;;  %2220 = vmatpush.bf16.msra.mxu0 %v5120_v57 }
 0x251   : > { %v1137_v62 = vpop.f32.mrf.mxu2  ;;  %v1226_v63 = vpop.f32.mrf.mxu3 }
 0x252   : > { %v979_v1 = vmax.f32 %v943_v61, 0.0  ;;  %v1138_v2 = vadd.f32 %v1137_v62, %v6477_v32  ;;  %v1227_v3 = vadd.f32 %v1226_v63, %v6479_v34 }
 0x254   : > { %v1301_v5 = vmax.f32 %v1138_v2, 0.0  ;;  %v1302_v6 = vmax.f32 %v1227_v3, 0.0  ;;  %v996_v7 = vpack.c.bf16 %v979_v1, %v978_v0 }
 0x256   : > { %v6547_v8 = vpack.c.bf16 %v1301_v5, %v1299_v4  ;;  %v6549_v11 = vpack.c.bf16 %v1302_v6, %v1300_v22  ;;  %1179 = vmatmul.bf16.gmra.mxu2 %v996_v7  ;;  %1268 = vmatmul.bf16.gmra.mxu3 %v996_v7  ;;  %v5661_v7 = vld [vmem:[#allocation4 + $0xcc] sm:$0xf] }
 0x257   : > { %v945_v16 = vpop.f32.mrf.mxu1 }
 0x258   : > { %1803 = vmatmul.bf16.gmra.mxu1 %v6547_v8  ;;  %1892 = vmatmul.bf16.gmra.mxu0 %v6549_v11  ;;  %v946_v24 = vadd.f32 %v945_v16, %v6436_v47  ;;  %v5060_v16 = vor.u32 %v5661_v7, %v5057_v12 }
 0x259   : > { %v1140_v20 = vpop.f32.mrf.mxu2  ;;  %v1229_v21 = vpop.f32.mrf.mxu3 }
 0x25a   : > { %v1141_v25 = vadd.f32 %v1140_v20, %v6477_v32  ;;  %v1230_v27 = vadd.f32 %v1229_v21, %v6479_v34  ;;  %v980_v31 = vmax.f32 %v946_v24, 0.0  ;;  %2305 = vmatpush.bf16.msra.mxu2 %v5060_v16 }
 0x25c   : > { %v1303_v37 = vmax.f32 %v1141_v25, 0.0  ;;  %v1304_v38 = vmax.f32 %v1230_v27, 0.0  ;;  %v6584_v27 = vperm.slane %v6577_v19, 0 }
 0x25f   : > { %v947_v26 = vpop.f32.mrf.mxu1 }
 0x260   : > { %v948_v28 = vadd.f32 %v947_v26, %v6436_v47 }
 0x261   : > { %v1142_v29 = vpop.f32.mrf.mxu2  ;;  %v1231_v30 = vpop.f32.mrf.mxu3 }
 0x262   : > { %v981_v33 = vmax.f32 %v948_v28, 0.0  ;;  %v1143_v35 = vadd.f32 %v1142_v29, %v6477_v32  ;;  %v1232_v36 = vadd.f32 %v1231_v30, %v6479_v34 }
 0x264   : > { %v1305_v39 = vmax.f32 %v1143_v35, 0.0  ;;  %v1306_v40 = vmax.f32 %v1232_v36, 0.0  ;;  %v997_v43 = vpack.c.bf16 %v981_v33, %v980_v31 }
 0x266   : > { %v6559_v46 = vpack.c.bf16 %v1305_v39, %v1303_v37  ;;  %v6561_v48 = vpack.c.bf16 %v1306_v40, %v1304_v38  ;;  %1184 = vmatmul.bf16.gmra.mxu2 %v997_v43  ;;  %1273 = vmatmul.bf16.gmra.mxu3 %v997_v43 }
 0x268   : > { %1808 = vmatmul.bf16.gmra.mxu1 %v6559_v46  ;;  %1897 = vmatmul.bf16.gmra.mxu0 %v6561_v48 }
 0x269   : > { %v1145_v47 = vpop.f32.mrf.mxu2  ;;  %v1234_v49 = vpop.f32.mrf.mxu3 }
 0x26a   : > { %v1146_v58 = vadd.f32 %v1145_v47, %v6477_v32  ;;  %v1235_v59 = vadd.f32 %v1234_v49, %v6479_v34  ;;  %v4991_v47 = vld [vmem:[#allocation4 + $0x48] sm:$0xf]  ;;  %v5647_v49 = vld [vmem:[#allocation4 + $0x54] sm:$0xf0] }
 0x26b   : > { %v4992_v50 = vor.u32 %v5647_v49, %v4991_v47 }
 0x26c   : > { %v1307_v0 = vmax.f32 %v1146_v58, 0.0  ;;  %v1308_v1 = vmax.f32 %v1235_v59, 0.0 }
 0x26d   : > { %2131 = vmatpush.bf16.msra.mxu1 %v4992_v50 }
 0x271   : > { %v1147_v60 = vpop.f32.mrf.mxu2  ;;  %v1236_v61 = vpop.f32.mrf.mxu3 }
 0x272   : > { %v1148_v62 = vadd.f32 %v1147_v60, %v6477_v32  ;;  %v1237_v63 = vadd.f32 %v1236_v61, %v6479_v34 }
 0x274   : > { %v1309_v2 = vmax.f32 %v1148_v62, 0.0  ;;  %v1310_v3 = vmax.f32 %v1237_v63, 0.0 }
 0x276   : > { %v6569_v4 = vpack.c.bf16 %v1309_v2, %v1307_v0  ;;  %v6571_v22 = vpack.c.bf16 %v1310_v3, %v1308_v1  ;;  %1956 = vmatmul.bf16.vlgmr.msrb.gmra.mxu2 %v6487_v52  ;;  %2045 = vmatmul.bf16.vlgmr.msrb.gmra.mxu3 %v6489_v53 }
 0x278   : > { %1813 = vmatmul.bf16.gmra.mxu1 %v6569_v4  ;;  %1902 = vmatmul.bf16.gmra.mxu0 %v6571_v22 }
 0x279   : > { %v1150_v5 = vpop.f32.mrf.mxu2  ;;  %v1239_v6 = vpop.f32.mrf.mxu3 }
 0x27a   : > { %v1151_v20 = vadd.f32 %v1150_v5, %v6477_v32  ;;  %v1240_v21 = vadd.f32 %v1239_v6, %v6479_v34 }
 0x27c   : > { %v1311_v28 = vmax.f32 %v1151_v20, 0.0  ;;  %v1312_v29 = vmax.f32 %v1240_v21, 0.0 }
 0x281   : > { %v1152_v23 = vpop.f32.mrf.mxu2  ;;  %v1241_v24 = vpop.f32.mrf.mxu3 }
 0x282   : > { %v1153_v25 = vadd.f32 %v1152_v23, %v6477_v32  ;;  %v1242_v26 = vadd.f32 %v1241_v24, %v6479_v34 }
 0x284   : > { %v1313_v30 = vmax.f32 %v1153_v25, 0.0  ;;  %v1314_v31 = vmax.f32 %v1242_v26, 0.0  ;;  %v5657_v26 = vld [vmem:[#allocation4 + $0xac] sm:$0xf] }
 0x285   : > { %v1779_v33 = vpop.f32.mrf.mxu1  ;;  %v1868_v35 = vpop.f32.mrf.mxu0 }
 0x286   : > { %v6586_v36 = vpack.c.bf16 %v1313_v30, %v1311_v28  ;;  %v6588_v37 = vpack.c.bf16 %v1314_v31, %v1312_v29  ;;  %v1780_v38 = vadd.f32 %v1779_v33, %v6584_v27  ;;  %1961 = vmatmul.bf16.gmra.mxu2 %v6499_v14  ;;  %2050 = vmatmul.bf16.gmra.mxu3 %v6501_v15  ;;  %v5041_v28 = vld [vmem:[#allocation4 + $0xb8] sm:$0xf0]  ;;  %v5689_v30 = vld [vmem:[#allocation4 + $0x1ac] sm:$0xf] }
 0x287   : > { %v5044_v29 = vor.u32 %v5657_v26, %v5041_v28  ;;  %v5169_v31 = vld [vmem:[#allocation4 + $0x1b8] sm:$0xf0] }
 0x288   : > { %v1869_v39 = vadd.f32 %v1868_v35, %v1780_v38  ;;  %1818 = vmatmul.bf16.gmra.mxu1 %v6586_v36  ;;  %1907 = vmatmul.bf16.gmra.mxu0 %v6588_v37  ;;  %v5172_v33 = vor.u32 %v5689_v30, %v5169_v31 }
 0x289   : > { %v1155_v40 = vpop.f32.mrf.mxu2  ;;  %v1244_v43 = vpop.f32.mrf.mxu3  ;;  %2306 = vmatpush.bf16.msra.mxu2 %v5044_v29 }
 0x28a   : > { %v1156_v59 = vadd.f32 %v1155_v40, %v6477_v32  ;;  %v1245_v60 = vadd.f32 %v1244_v43, %v6479_v34  ;;  %v2482_v0 = vmax.f32 %v1869_v39, 0.0  ;;  %2395 = vmatpush.bf16.msra.mxu3 %v5172_v33 }
 0x28c   : > { %v1315_v5 = vmax.f32 %v1156_v59, 0.0  ;;  %v1316_v6 = vmax.f32 %v1245_v60, 0.0 }
 0x28d   : > { %v1781_v55 = vpop.f32.mrf.mxu1  ;;  %v1870_v56 = vpop.f32.mrf.mxu0 }
 0x28e   : > { %v1782_v58 = vadd.f32 %v1781_v55, %v6584_v27 }
 0x290   : > { %v1871_v61 = vadd.f32 %v1870_v56, %v1782_v58 }
 0x291   : > { %v1157_v62 = vpop.f32.mrf.mxu2  ;;  %v1246_v63 = vpop.f32.mrf.mxu3 }
 0x292   : > { %v2486_v1 = vmax.f32 %v1871_v61, 0.0  ;;  %v1158_v2 = vadd.f32 %v1157_v62, %v6477_v32  ;;  %v1247_v3 = vadd.f32 %v1246_v63, %v6479_v34 }
 0x294   : > { %v6600_v7 = vpack.c.bf16 %v2486_v1, %v2482_v0  ;;  %v1317_v12 = vmax.f32 %v1158_v2, 0.0  ;;  %v1318_v13 = vmax.f32 %v1247_v3, 0.0 }
 0x295   : > { %v1784_v16 = vpop.f32.mrf.mxu1  ;;  %v1873_v17 = vpop.f32.mrf.mxu0 }
 0x296   : > { %v6602_v18 = vpack.c.bf16 %v1317_v12, %v1315_v5  ;;  %v6604_v20 = vpack.c.bf16 %v1318_v13, %v1316_v6  ;;  %v1785_v21 = vadd.f32 %v1784_v16, %v6584_v27  ;;  %1966 = vmatmul.bf16.gmra.mxu2 %v6511_v44  ;;  %2055 = vmatmul.bf16.gmra.mxu3 %v6513_v45  ;;  %v4975_v12 = vld [vmem:[#allocation4 + $0x28] sm:$0xf]  ;;  %v5643_v13 = vld [vmem:[#allocation4 + $0x34] sm:$0xf0] }
 0x297   : > { %v4976_v16 = vor.u32 %v5643_v13, %v4975_v12 }
 0x298   : > { %v1874_v23 = vadd.f32 %v1873_v17, %v1785_v21  ;;  %1823 = vmatmul.bf16.gmra.mxu1 %v6602_v18  ;;  %1912 = vmatmul.bf16.gmra.mxu0 %v6604_v20  ;;  %v5103_v17 = vld [vmem:[#allocation4 + $0x128] sm:$0xf]  ;;  %v5675_v21 = vld [vmem:[#allocation4 + $0x134] sm:$0xf0] }
 0x299   : > { %v1160_v24 = vpop.f32.mrf.mxu2  ;;  %v1249_v25 = vpop.f32.mrf.mxu3  ;;  %2132 = vmatpush.bf16.msra.mxu1 %v4976_v16 }
 0x29a   : > { %v1161_v40 = vadd.f32 %v1160_v24, %v6477_v32  ;;  %v1250_v43 = vadd.f32 %v1249_v25, %v6479_v34  ;;  %v2490_v51 = vmax.f32 %v1874_v23, 0.0  ;;  %v5104_v25 = vor.u32 %v5675_v21, %v5103_v17 }
 0x29c   : > { %v1319_v57 = vmax.f32 %v1161_v40, 0.0  ;;  %v1320_v58 = vmax.f32 %v1250_v43, 0.0  ;;  %2221 = vmatpush.bf16.msra.mxu0 %v5104_v25 }
 0x29d   : > { %v1786_v35 = vpop.f32.mrf.mxu1  ;;  %v1875_v38 = vpop.f32.mrf.mxu0 }
 0x29e   : > { %v1787_v39 = vadd.f32 %v1786_v35, %v6584_v27 }
 0x2a0   : > { %v1876_v47 = vadd.f32 %v1875_v38, %v1787_v39 }
 0x2a1   : > { %v1162_v49 = vpop.f32.mrf.mxu2  ;;  %v1251_v50 = vpop.f32.mrf.mxu3 }
 0x2a2   : > { %v2494_v54 = vmax.f32 %v1876_v47, 0.0  ;;  %v1163_v55 = vadd.f32 %v1162_v49, %v6477_v32  ;;  %v1252_v56 = vadd.f32 %v1251_v50, %v6479_v34 }
 0x2a4   : > { %v1321_v59 = vmax.f32 %v1163_v55, 0.0  ;;  %v1322_v60 = vmax.f32 %v1252_v56, 0.0  ;;  %v6616_v61 = vpack.c.bf16 %v2494_v54, %v2490_v51 }
 0x2a5   : > { %v1789_v62 = vpop.f32.mrf.mxu1  ;;  %v1878_v63 = vpop.f32.mrf.mxu0 }
 0x2a6   : > { %v6618_v0 = vpack.c.bf16 %v1321_v59, %v1319_v57  ;;  %v6620_v1 = vpack.c.bf16 %v1322_v60, %v1320_v58  ;;  %v1790_v2 = vadd.f32 %v1789_v62, %v6584_v27  ;;  %1971 = vmatmul.bf16.gmra.mxu2 %v6523_v9  ;;  %2060 = vmatmul.bf16.gmra.mxu3 %v6525_v10 }
 0x2a8   : > { %v1879_v3 = vadd.f32 %v1878_v63, %v1790_v2  ;;  %1828 = vmatmul.bf16.gmra.mxu1 %v6618_v0  ;;  %1917 = vmatmul.bf16.gmra.mxu0 %v6620_v1  ;;  %v5653_v63 = vld [vmem:[#allocation4 + $0x8c] sm:$0xf]  ;;  %v5025_v2 = vld [vmem:[#allocation4 + $0x98] sm:$0xf0] }
 0x2a9   : > { %v1165_v5 = vpop.f32.mrf.mxu2  ;;  %v1254_v6 = vpop.f32.mrf.mxu3 }
 0x2aa   : > { %v1166_v28 = vadd.f32 %v1165_v5, %v6477_v32  ;;  %v1255_v29 = vadd.f32 %v1254_v6, %v6479_v34  ;;  %v2498_v35 = vmax.f32 %v1879_v3, 0.0  ;;  %v5028_v3 = vor.u32 %v5653_v63, %v5025_v2  ;;  %v5685_v5 = vld [vmem:[#allocation4 + $0x18c] sm:$0xf]  ;;  %v5153_v6 = vld [vmem:[#allocation4 + $0x198] sm:$0xf0] }
 0x2ab   : > { %v5156_v12 = vor.u32 %v5685_v5, %v5153_v6  ;;  %v5087_v2 = vld [vmem:[#allocation4 + $0x108] sm:$0xf] }
 0x2ac   : > { %v1323_v43 = vmax.f32 %v1166_v28, 0.0  ;;  %v1324_v47 = vmax.f32 %v1255_v29, 0.0  ;;  %2307 = vmatpush.bf16.msra.mxu2 %v5028_v3  ;;  %v5671_v3 = vld [vmem:[#allocation4 + $0x114] sm:$0xf0] }
 0x2ad   : > { %v1791_v23 = vpop.f32.mrf.mxu1  ;;  %v1880_v24 = vpop.f32.mrf.mxu0  ;;  %2396 = vmatpush.bf16.msra.mxu3 %v5156_v12  ;;  %v5088_v12 = vor.u32 %v5671_v3, %v5087_v2  ;;  %v5681_v3 = vld [vmem:[#allocation4 + $0x16c] sm:$0xf] }
 0x2ae   : > { %v1792_v26 = vadd.f32 %v1791_v23, %v6584_v27 }
 0x2af   : > { %2222 = vmatpush.bf16.msra.mxu0 %v5088_v12 }
 0x2b0   : > { %v1881_v30 = vadd.f32 %v1880_v24, %v1792_v26 }
 0x2b1   : > { %v1167_v31 = vpop.f32.mrf.mxu2  ;;  %v1256_v33 = vpop.f32.mrf.mxu3 }
 0x2b2   : > { %v2502_v38 = vmax.f32 %v1881_v30, 0.0  ;;  %v1168_v39 = vadd.f32 %v1167_v31, %v6477_v32  ;;  %v1257_v40 = vadd.f32 %v1256_v33, %v6479_v34 }
 0x2b4   : > { %v1325_v49 = vmax.f32 %v1168_v39, 0.0  ;;  %v1326_v50 = vmax.f32 %v1257_v40, 0.0  ;;  %v6632_v51 = vpack.c.bf16 %v2502_v38, %v2498_v35 }
 0x2b5   : > { %v1794_v54 = vpop.f32.mrf.mxu1  ;;  %v1883_v55 = vpop.f32.mrf.mxu0 }
 0x2b6   : > { %v6634_v56 = vpack.c.bf16 %v1325_v49, %v1323_v43  ;;  %v6636_v57 = vpack.c.bf16 %v1326_v50, %v1324_v47  ;;  %v1795_v58 = vadd.f32 %v1794_v54, %v6584_v27  ;;  %1976 = vmatmul.bf16.gmra.mxu2 %v6535_v41  ;;  %2065 = vmatmul.bf16.gmra.mxu3 %v6537_v42 }
 0x2b8   : > { %v1884_v59 = vadd.f32 %v1883_v55, %v1795_v58  ;;  %1833 = vmatmul.bf16.gmra.mxu1 %v6634_v56  ;;  %1922 = vmatmul.bf16.gmra.mxu0 %v6636_v57 }
 0x2b9   : > { %v1170_v60 = vpop.f32.mrf.mxu2  ;;  %v1259_v62 = vpop.f32.mrf.mxu3 }
 0x2ba   : > { %v1171_v21 = vadd.f32 %v1170_v60, %v6477_v32  ;;  %v1260_v23 = vadd.f32 %v1259_v62, %v6479_v34  ;;  %v2506_v28 = vmax.f32 %v1884_v59, 0.0  ;;  %v4959_v60 = vld [vmem:[#allocation4 + $0x8] sm:$0xf]  ;;  %v5639_v62 = vld [vmem:[#allocation4 + $0x14] sm:$0xf0] }
 0x2bb   : > { %v4960_v63 = vor.u32 %v5639_v62, %v4959_v60  ;;  %v5649_v62 = vld [vmem:[#allocation4 + $0x6c] sm:$0xf] }
 0x2bc   : > { %v1327_v33 = vmax.f32 %v1171_v21, 0.0  ;;  %v1328_v35 = vmax.f32 %v1260_v23, 0.0 }
 0x2bd   : > { %v1796_v13 = vpop.f32.mrf.mxu1  ;;  %v1885_v16 = vpop.f32.mrf.mxu0  ;;  %2133 = vmatpush.bf16.msra.mxu1 %v4960_v63  ;;  %v5009_v63 = vld [vmem:[#allocation4 + $0x78] sm:$0xf0] }
 0x2be   : > { %v1797_v17 = vadd.f32 %v1796_v13, %v6584_v27  ;;  %v5012_v2 = vor.u32 %v5649_v62, %v5009_v63 }
 0x2c0   : > { %v1886_v24 = vadd.f32 %v1885_v16, %v1797_v17  ;;  %2308 = vmatpush.bf16.msra.mxu2 %v5012_v2 }
 0x2c1   : > { %v1172_v25 = vpop.f32.mrf.mxu2  ;;  %v1261_v26 = vpop.f32.mrf.mxu3 }
 0x2c2   : > { %v2510_v29 = vmax.f32 %v1886_v24, 0.0  ;;  %v1173_v30 = vadd.f32 %v1172_v25, %v6477_v32  ;;  %v1262_v31 = vadd.f32 %v1261_v26, %v6479_v34 }
 0x2c4   : > { %v1329_v38 = vmax.f32 %v1173_v30, 0.0  ;;  %v1330_v39 = vmax.f32 %v1262_v31, 0.0  ;;  %v6648_v40 = vpack.c.bf16 %v2510_v29, %v2506_v28 }
 0x2c5   : > { %v1799_v43 = vpop.f32.mrf.mxu1  ;;  %v1888_v47 = vpop.f32.mrf.mxu0 }
 0x2c6   : > { %v6650_v49 = vpack.c.bf16 %v1329_v38, %v1327_v33  ;;  %v6652_v50 = vpack.c.bf16 %v1330_v39, %v1328_v35  ;;  %v1800_v54 = vadd.f32 %v1799_v43, %v6584_v27  ;;  %1981 = vmatmul.bf16.gmra.mxu2 %v6547_v8  ;;  %2070 = vmatmul.bf16.gmra.mxu3 %v6549_v11 }
 0x2c8   : > { %v1889_v55 = vadd.f32 %v1888_v47, %v1800_v54  ;;  %1838 = vmatmul.bf16.gmra.mxu1 %v6650_v49  ;;  %1927 = vmatmul.bf16.gmra.mxu0 %v6652_v50 }
 0x2c9   : > { %v1175_v58 = vpop.f32.mrf.mxu2  ;;  %v1264_v59 = vpop.f32.mrf.mxu3 }
 0x2ca   : > { %v1176_v16 = vadd.f32 %v1175_v58, %v6477_v32  ;;  %v1265_v17 = vadd.f32 %v1264_v59, %v6479_v34  ;;  %v2514_v25 = vmax.f32 %v1889_v55, 0.0 }
 0x2cc   : > { %v1331_v30 = vmax.f32 %v1176_v16, 0.0  ;;  %v1332_v31 = vmax.f32 %v1265_v17, 0.0 }
 0x2cd   : > { %v1801_v5 = vpop.f32.mrf.mxu1  ;;  %v1890_v6 = vpop.f32.mrf.mxu0 }
 0x2ce   : > { %v1802_v13 = vadd.f32 %v1801_v5, %v6584_v27  ;;  %v5137_v5 = vld [vmem:[#allocation4 + $0x178] sm:$0xf0] }
 0x2d0   : > { %v1891_v21 = vadd.f32 %v1890_v6, %v1802_v13  ;;  %v5140_v6 = vor.u32 %v5681_v3, %v5137_v5  ;;  %v5263_v5 = vld [vmem:[#allocation6 + $0x70] sm:$0xf] }
 0x2d1   : > { %v1177_v23 = vpop.f32.mrf.mxu2  ;;  %v1266_v24 = vpop.f32.mrf.mxu3 }
 0x2d2   : > { %v2518_v26 = vmax.f32 %v1891_v21, 0.0  ;;  %v1178_v28 = vadd.f32 %v1177_v23, %v6477_v32  ;;  %v1267_v29 = vadd.f32 %v1266_v24, %v6479_v34  ;;  %2397 = vmatpush.bf16.msra.mxu3 %v5140_v6  ;;  %v5715_v6 = vld [vmem:[#allocation6 + $0x74] sm:$0xf0] }
 0x2d4   : > { %v1333_v33 = vmax.f32 %v1178_v28, 0.0  ;;  %v1334_v35 = vmax.f32 %v1267_v29, 0.0  ;;  %v6664_v38 = vpack.c.bf16 %v2518_v26, %v2514_v25 }
 0x2d5   : > { %v1804_v39 = vpop.f32.mrf.mxu1  ;;  %v1893_v43 = vpop.f32.mrf.mxu0 }
 0x2d6   : > { %v6666_v47 = vpack.c.bf16 %v1333_v33, %v1331_v30  ;;  %v6668_v54 = vpack.c.bf16 %v1334_v35, %v1332_v31  ;;  %v1805_v58 = vadd.f32 %v1804_v39, %v6584_v27  ;;  %1986 = vmatmul.bf16.gmra.mxu2 %v6559_v46  ;;  %2075 = vmatmul.bf16.gmra.mxu3 %v6561_v48 }
 0x2d8   : > { %v1894_v55 = vadd.f32 %v1893_v43, %v1805_v58  ;;  %1843 = vmatmul.bf16.gmra.mxu1 %v6666_v47  ;;  %1932 = vmatmul.bf16.gmra.mxu0 %v6668_v54 }
 0x2d9   : > { %v1180_v59 = vpop.f32.mrf.mxu2  ;;  %v1269_v60 = vpop.f32.mrf.mxu3 }
 0x2da   : > { %v1181_v17 = vadd.f32 %v1180_v59, %v6477_v32  ;;  %v1270_v21 = vadd.f32 %v1269_v60, %v6479_v34  ;;  %v2522_v26 = vmax.f32 %v1894_v55, 0.0 }
 0x2dc   : > { %v1335_v31 = vmax.f32 %v1181_v17, 0.0  ;;  %v1336_v33 = vmax.f32 %v1270_v21, 0.0  ;;  %v5327_v21 = vld [vmem:[#allocation6 + $0xf0] sm:$0xf] }
 0x2dd   : > { %v1806_v12 = vpop.f32.mrf.mxu1  ;;  %v1895_v13 = vpop.f32.mrf.mxu0 }
 0x2de   : > { %v1807_v16 = vadd.f32 %v1806_v12, %v6584_v27  ;;  %v5264_v12 = vor.u32 %v5715_v6, %v5263_v5 }
 0x2e0   : > { %v1896_v23 = vadd.f32 %v1895_v13, %v1807_v16  ;;  %3065 = vmatpush.bf16.msrb.mxu1 %v5264_v12 }
 0x2e1   : > { %v1182_v24 = vpop.f32.mrf.mxu2  ;;  %v1271_v25 = vpop.f32.mrf.mxu3 }
 0x2e2   : > { %v2526_v28 = vmax.f32 %v1896_v23, 0.0  ;;  %v1183_v29 = vadd.f32 %v1182_v24, %v6477_v32  ;;  %v1272_v30 = vadd.f32 %v1271_v25, %v6479_v34  ;;  %v5731_v23 = vld [vmem:[#allocation6 + $0xf4] sm:$0xf0] }
 0x2e3   : > { %v5328_v25 = vor.u32 %v5731_v23, %v5327_v21  ;;  %v5645_v23 = vld [vmem:[#allocation4 + $0x4c] sm:$0xf] }
 0x2e4   : > { %v1337_v35 = vmax.f32 %v1183_v29, 0.0  ;;  %v1338_v39 = vmax.f32 %v1272_v30, 0.0  ;;  %v6680_v43 = vpack.c.bf16 %v2526_v28, %v2522_v26 }
 0x2e5   : > { %v1809_v58 = vpop.f32.mrf.mxu1  ;;  %v1898_v62 = vpop.f32.mrf.mxu0  ;;  %3154 = vmatpush.bf16.msrb.mxu0 %v5328_v25 }
 0x2e6   : > { %7765 = vst [vmem:[#allocation13_spill] sm:$0xff] %v6680_v43  ;;  %v6682_v59 = vpack.c.bf16 %v1337_v35, %v1335_v31  ;;  %v6684_v60 = vpack.c.bf16 %v1338_v39, %v1336_v33  ;;  %v1810_v63 = vadd.f32 %v1809_v58, %v6584_v27  ;;  %1991 = vmatmul.bf16.gmra.mxu2 %v6569_v4 }
 0x2e7   : > { %2080 = vmatmul.bf16.gmra.mxu3 %v6571_v22 }
 0x2e8   : > { %v1899_v55 = vadd.f32 %v1898_v62, %v1810_v63  ;;  %1848 = vmatmul.bf16.gmra.mxu1 %v6682_v59  ;;  %1937 = vmatmul.bf16.gmra.mxu0 %v6684_v60 }
 0x2e9   : > { %v1185_v2 = vpop.f32.mrf.mxu2  ;;  %v1274_v3 = vpop.f32.mrf.mxu3 }
 0x2ea   : > { %v1186_v24 = vadd.f32 %v1185_v2, %v6477_v32  ;;  %v1275_v26 = vadd.f32 %v1274_v3, %v6479_v34  ;;  %v2530_v31 = vmax.f32 %v1899_v55, 0.0 }
 0x2ec   : > { %v1339_v58 = vmax.f32 %v1186_v24, 0.0  ;;  %v1340_v62 = vmax.f32 %v1275_v26, 0.0  ;;  %v4993_v24 = vld [vmem:[#allocation4 + $0x58] sm:$0xf0]  ;;  %v5677_v26 = vld [vmem:[#allocation4 + $0x14c] sm:$0xf] }
 0x2ed   : > { %v1811_v13 = vpop.f32.mrf.mxu1  ;;  %v1900_v16 = vpop.f32.mrf.mxu0  ;;  %v4996_v25 = vor.u32 %v5645_v23, %v4993_v24 }
 0x2ee   : > { %v1812_v17 = vadd.f32 %v1811_v13, %v6584_v27 }
 0x2ef   : > { %2309 = vmatpush.bf16.msra.mxu2 %v4996_v25 }
 0x2f0   : > { %v1901_v28 = vadd.f32 %v1900_v16, %v1812_v17 }
 0x2f1   : > { %v1187_v29 = vpop.f32.mrf.mxu2  ;;  %v1276_v30 = vpop.f32.mrf.mxu3 }
 0x2f2   : > { %v2534_v33 = vmax.f32 %v1901_v28, 0.0  ;;  %v1188_v35 = vadd.f32 %v1187_v29, %v6477_v32  ;;  %v1277_v39 = vadd.f32 %v1276_v30, %v6479_v34  ;;  %v6706_v32 = vperm.slane %v6577_v19, 1  ;;  %v5121_v28 = vld [vmem:[#allocation4 + $0x158] sm:$0xf0] }
 0x2f3   : > { %v5124_v30 = vor.u32 %v5677_v26, %v5121_v28 }
 0x2f4   : > { %v1341_v63 = vmax.f32 %v1188_v35, 0.0  ;;  %v1342_v5 = vmax.f32 %v1277_v39, 0.0  ;;  %v6696_v6 = vpack.c.bf16 %v2534_v33, %v2530_v31 }
 0x2f5   : > { %v1814_v2 = vpop.f32.mrf.mxu1  ;;  %v1903_v12 = vpop.f32.mrf.mxu0  ;;  %2398 = vmatpush.bf16.msra.mxu3 %v5124_v30  ;;  %v5255_v30 = vld [vmem:[#allocation6 + $0x60] sm:$0xf] }
 0x2f6   : > { %7766 = vst [vmem:[#allocation14_spill] sm:$0xff] %v6696_v6  ;;  %v6698_v13 = vpack.c.bf16 %v1341_v63, %v1339_v58  ;;  %v6700_v3 = vpack.c.bf16 %v1342_v5, %v1340_v62  ;;  %v1815_v16 = vadd.f32 %v1814_v2, %v6584_v27  ;;  %1996 = vmatmul.bf16.gmra.mxu2 %v6586_v36 }
 0x2f7   : > { %2085 = vmatmul.bf16.gmra.mxu3 %v6588_v37 }
 0x2f8   : > { %v1904_v34 = vadd.f32 %v1903_v12, %v1815_v16  ;;  %1853 = vmatmul.bf16.gmra.mxu1 %v6698_v13  ;;  %1942 = vmatmul.bf16.gmra.mxu0 %v6700_v3 }
 0x2f9   : > { %v1957_v55 = vpop.f32.mrf.mxu2  ;;  %v2046_v17 = vpop.f32.mrf.mxu3 }
 0x2fa   : > { %v1958_v21 = vadd.f32 %v1957_v55, %v6706_v32  ;;  %v2538_v62 = vmax.f32 %v1904_v34, 0.0 }
 0x2fc   : > { %v2047_v29 = vadd.f32 %v2046_v17, %v1958_v21 }
 0x2fd   : > { %v1816_v31 = vpop.f32.mrf.mxu1  ;;  %v1905_v33 = vpop.f32.mrf.mxu0 }
 0x2fe   : > { %v1817_v19 = vadd.f32 %v1816_v31, %v6584_v27  ;;  %v2483_v17 = vmax.f32 %v2047_v29, 0.0  ;;  %v5713_v29 = vld [vmem:[#allocation6 + $0x64] sm:$0xf0] }
 0x2ff   : > { %v5256_v31 = vor.u32 %v5713_v29, %v5255_v30 }
 0x300   : > { %v1906_v35 = vadd.f32 %v1905_v33, %v1817_v19 }
 0x301   : > { %v1959_v39 = vpop.f32.mrf.mxu2  ;;  %v2048_v58 = vpop.f32.mrf.mxu3  ;;  %3066 = vmatpush.bf16.msrb.mxu1 %v5256_v31 }
 0x302   : > { %v2542_v63 = vmax.f32 %v1906_v35, 0.0  ;;  %v1960_v5 = vadd.f32 %v1959_v39, %v6706_v32 }
 0x304   : > { %v2049_v2 = vadd.f32 %v2048_v58, %v1960_v5  ;;  %v6713_v12 = vpack.c.bf16 %v2542_v63, %v2538_v62  ;;  %v5319_v58 = vld [vmem:[#allocation6 + $0xe0] sm:$0xf]  ;;  %v5729_v62 = vld [vmem:[#allocation6 + $0xe4] sm:$0xf0] }
 0x305   : > { %v1819_v16 = vpop.f32.mrf.mxu1  ;;  %v1908_v55 = vpop.f32.mrf.mxu0  ;;  %v5320_v63 = vor.u32 %v5729_v62, %v5319_v58  ;;  %v5641_v62 = vld [vmem:[#allocation4 + $0x2c] sm:$0xf] }
 0x306   : > { %7767 = vst [vmem:[#allocation15_spill] sm:$0xff] %v6713_v12  ;;  %v2487_v21 = vmax.f32 %v2049_v2, 0.0  ;;  %v1820_v23 = vadd.f32 %v1819_v16, %v6584_v27  ;;  %2001 = vmatmul.bf16.gmra.mxu2 %v6602_v18 }
 0x307   : > { %2090 = vmatmul.bf16.gmra.mxu3 %v6604_v20  ;;  %3155 = vmatpush.bf16.msrb.mxu0 %v5320_v63 }
 0x308   : > { %v6718_v24 = vpack.c.bf16 %v2487_v21, %v2483_v17  ;;  %v1909_v25 = vadd.f32 %v1908_v55, %v1820_v23  ;;  %2134 = vmatmul.bf16.vlgmr.msra.gmra.mxu1 %v6487_v52  ;;  %2223 = vmatmul.bf16.vlgmr.msra.gmra.mxu0 %v6489_v53 }
 0x309   : > { %v1962_v34 = vpop.f32.mrf.mxu2  ;;  %v2051_v26 = vpop.f32.mrf.mxu3 }
 0x30a   : > { %v1963_v28 = vadd.f32 %v1962_v34, %v6706_v32  ;;  %v2546_v55 = vmax.f32 %v1909_v25, 0.0 }
 0x30c   : > { %v2052_v33 = vadd.f32 %v2051_v26, %v1963_v28 }
 0x30d   : > { %v1821_v19 = vpop.f32.mrf.mxu1  ;;  %v1910_v35 = vpop.f32.mrf.mxu0 }
 0x30e   : > { %v1822_v39 = vadd.f32 %v1821_v19, %v6584_v27  ;;  %v2491_v30 = vmax.f32 %v2052_v33, 0.0  ;;  %v4977_v33 = vld [vmem:[#allocation4 + $0x38] sm:$0xf0] }
 0x30f   : > { %v4980_v63 = vor.u32 %v5641_v62, %v4977_v33 }
 0x310   : > { %v1911_v5 = vadd.f32 %v1910_v35, %v1822_v39 }
 0x311   : > { %v1964_v2 = vpop.f32.mrf.mxu2  ;;  %v2053_v16 = vpop.f32.mrf.mxu3  ;;  %2310 = vmatpush.bf16.msra.mxu2 %v4980_v63 }
 0x312   : > { %v2550_v17 = vmax.f32 %v1911_v5, 0.0  ;;  %v1965_v21 = vadd.f32 %v1964_v2, %v6706_v32  ;;  %v5673_v5 = vld [vmem:[#allocation4 + $0x12c] sm:$0xf]  ;;  %v5105_v2 = vld [vmem:[#allocation4 + $0x138] sm:$0xf0] }
 0x314   : > { %v2054_v23 = vadd.f32 %v2053_v16, %v1965_v21  ;;  %v6725_v34 = vpack.c.bf16 %v2550_v17, %v2546_v55  ;;  %v5108_v55 = vor.u32 %v5673_v5, %v5105_v2 }
 0x315   : > { %v1824_v26 = vpop.f32.mrf.mxu1  ;;  %v1913_v28 = vpop.f32.mrf.mxu0 }
 0x316   : > { %7768 = vst [vmem:[#allocation16_spill] sm:$0xff] %v6725_v34  ;;  %v2495_v29 = vmax.f32 %v2054_v23, 0.0  ;;  %v1825_v31 = vadd.f32 %v1824_v26, %v6584_v27  ;;  %2006 = vmatmul.bf16.gmra.mxu2 %v6618_v0  ;;  %2399 = vmatpush.bf16.msra.mxu3 %v5108_v55 }
 0x317   : > { %2095 = vmatmul.bf16.gmra.mxu3 %v6620_v1 }
 0x318   : > { %v1914_v19 = vadd.f32 %v1913_v28, %v1825_v31  ;;  %2139 = vmatmul.bf16.gmra.mxu1 %v6499_v14  ;;  %2228 = vmatmul.bf16.gmra.mxu0 %v6501_v15  ;;  %v6732_v25 = vpack.c.bf16 %v2495_v29, %v2491_v30 }
 0x319   : > { %v1967_v35 = vpop.f32.mrf.mxu2  ;;  %v2056_v39 = vpop.f32.mrf.mxu3 }
 0x31a   : > { %v1968_v58 = vadd.f32 %v1967_v35, %v6706_v32  ;;  %v2554_v29 = vmax.f32 %v1914_v19, 0.0 }
 0x31c   : > { %v2057_v16 = vadd.f32 %v2056_v39, %v1968_v58 }
 0x31d   : > { %v1826_v17 = vpop.f32.mrf.mxu1  ;;  %v1915_v21 = vpop.f32.mrf.mxu0 }
 0x31e   : > { %v1827_v23 = vadd.f32 %v1826_v17, %v6584_v27  ;;  %v2499_v39 = vmax.f32 %v2057_v16, 0.0  ;;  %v5711_v16 = vld [vmem:[#allocation6 + $0x54] sm:$0xf0] }
 0x320   : > { %v1916_v26 = vadd.f32 %v1915_v21, %v1827_v23  ;;  %v5247_v21 = vld [vmem:[#allocation6 + $0x50] sm:$0xf] }
 0x321   : > { %v1969_v28 = vpop.f32.mrf.mxu2  ;;  %v2058_v30 = vpop.f32.mrf.mxu3 }
 0x322   : > { %v2558_v31 = vmax.f32 %v1916_v26, 0.0  ;;  %v1970_v35 = vadd.f32 %v1969_v28, %v6706_v32 }
 0x324   : > { %v2059_v34 = vadd.f32 %v2058_v30, %v1970_v35  ;;  %v6737_v12 = vpack.c.bf16 %v2558_v31, %v2554_v29  ;;  %v5311_v29 = vld [vmem:[#allocation6 + $0xd0] sm:$0xf]  ;;  %v5727_v31 = vld [vmem:[#allocation6 + $0xd4] sm:$0xf0] }
 0x325   : > { %v1829_v62 = vpop.f32.mrf.mxu1  ;;  %v1918_v33 = vpop.f32.mrf.mxu0  ;;  %v5312_v35 = vor.u32 %v5727_v31, %v5311_v29  ;;  %v5637_v31 = vld [vmem:[#allocation4 + $0xc] sm:$0xf] }
 0x326   : > { %7769 = vst [vmem:[#allocation17_spill] sm:$0xff] %v6737_v12  ;;  %v2503_v58 = vmax.f32 %v2059_v34, 0.0  ;;  %v1830_v5 = vadd.f32 %v1829_v62, %v6584_v27  ;;  %2011 = vmatmul.bf16.gmra.mxu2 %v6634_v56  ;;  %v5248_v34 = vor.u32 %v5711_v16, %v5247_v21 }
 0x327   : > { %2100 = vmatmul.bf16.gmra.mxu3 %v6636_v57  ;;  %3156 = vmatpush.bf16.msrb.mxu0 %v5312_v35  ;;  %v5669_v35 = vld [vmem:[#allocation4 + $0x10c] sm:$0xf] }
 0x328   : > { %v1919_v63 = vadd.f32 %v1918_v33, %v1830_v5  ;;  %2144 = vmatmul.bf16.gmra.mxu1 %v6511_v44  ;;  %2233 = vmatmul.bf16.gmra.mxu0 %v6513_v45  ;;  %v6744_v19 = vpack.c.bf16 %v2503_v58, %v2499_v39 }
 0x329   : > { %v1972_v2 = vpop.f32.mrf.mxu2  ;;  %v2061_v55 = vpop.f32.mrf.mxu3  ;;  %3067 = vmatpush.bf16.msrb.mxu1 %v5248_v34 }
 0x32a   : > { %v1973_v17 = vadd.f32 %v1972_v2, %v6706_v32  ;;  %v2562_v58 = vmax.f32 %v1919_v63, 0.0 }
 0x32c   : > { %v2062_v23 = vadd.f32 %v2061_v55, %v1973_v17 }
 0x32d   : > { %v1831_v26 = vpop.f32.mrf.mxu1  ;;  %v1920_v28 = vpop.f32.mrf.mxu0 }
 0x32e   : > { %v1832_v30 = vadd.f32 %v1831_v26, %v6584_v27  ;;  %v2507_v21 = vmax.f32 %v2062_v23, 0.0  ;;  %v4961_v23 = vld [vmem:[#allocation4 + $0x18] sm:$0xf0] }
 0x330   : > { %v1921_v62 = vadd.f32 %v1920_v28, %v1832_v30 }
 0x331   : > { %v1974_v33 = vpop.f32.mrf.mxu2  ;;  %v2063_v39 = vpop.f32.mrf.mxu3 }
 0x332   : > { %v2566_v5 = vmax.f32 %v1921_v62, 0.0  ;;  %v1975_v2 = vadd.f32 %v1974_v33, %v6706_v32  ;;  %v5089_v62 = vld [vmem:[#allocation4 + $0x118] sm:$0xf0] }
 0x334   : > { %v2064_v12 = vadd.f32 %v2063_v39, %v1975_v2  ;;  %v6749_v6 = vpack.c.bf16 %v2566_v5, %v2562_v58  ;;  %v5092_v39 = vor.u32 %v5669_v35, %v5089_v62 }
 0x335   : > { %v1834_v55 = vpop.f32.mrf.mxu1  ;;  %v1923_v17 = vpop.f32.mrf.mxu0 }
 0x336   : > { %7770 = vst [vmem:[#allocation18_spill] sm:$0xff] %v6749_v6  ;;  %v2511_v16 = vmax.f32 %v2064_v12, 0.0  ;;  %v1835_v34 = vadd.f32 %v1834_v55, %v6584_v27  ;;  %2016 = vmatmul.bf16.gmra.mxu2 %v6650_v49  ;;  %v4964_v12 = vor.u32 %v5637_v31, %v4961_v23  ;;  %2400 = vmatpush.bf16.msra.mxu3 %v5092_v39 }
 0x337   : > { %2105 = vmatmul.bf16.gmra.mxu3 %v6652_v50 }
 0x338   : > { %v1924_v26 = vadd.f32 %v1923_v17, %v1835_v34  ;;  %2149 = vmatmul.bf16.gmra.mxu1 %v6523_v9  ;;  %2238 = vmatmul.bf16.gmra.mxu0 %v6525_v10  ;;  %v6756_v63 = vpack.c.bf16 %v2511_v16, %v2507_v21 }
 0x339   : > { %v1977_v28 = vpop.f32.mrf.mxu2  ;;  %v2066_v30 = vpop.f32.mrf.mxu3  ;;  %2311 = vmatpush.bf16.msra.mxu2 %v4964_v12 }
 0x33a   : > { %v1978_v29 = vadd.f32 %v1977_v28, %v6706_v32  ;;  %v2570_v16 = vmax.f32 %v1924_v26, 0.0 }
 0x33c   : > { %v2067_v33 = vadd.f32 %v2066_v30, %v1978_v29 }
 0x33d   : > { %v1836_v58 = vpop.f32.mrf.mxu1  ;;  %v1925_v5 = vpop.f32.mrf.mxu0 }
 0x33e   : > { %v1837_v2 = vadd.f32 %v1836_v58, %v6584_v27  ;;  %v2515_v30 = vmax.f32 %v2067_v33, 0.0  ;;  %v5709_v33 = vld [vmem:[#allocation6 + $0x44] sm:$0xf0] }
 0x340   : > { %v1926_v55 = vadd.f32 %v1925_v5, %v1837_v2  ;;  %v5239_v5 = vld [vmem:[#allocation6 + $0x40] sm:$0xf] }
 0x341   : > { %v1979_v17 = vpop.f32.mrf.mxu2  ;;  %v2068_v21 = vpop.f32.mrf.mxu3 }
 0x342   : > { %v2574_v34 = vmax.f32 %v1926_v55, 0.0  ;;  %v1980_v28 = vadd.f32 %v1979_v17, %v6706_v32 }
 0x344   : > { %v2069_v6 = vadd.f32 %v2068_v21, %v1980_v28  ;;  %v6761_v43 = vpack.c.bf16 %v2574_v34, %v2570_v16  ;;  %v5303_v16 = vld [vmem:[#allocation6 + $0xc0] sm:$0xf]  ;;  %v5725_v34 = vld [vmem:[#allocation6 + $0xc4] sm:$0xf0] }
 0x345   : > { %v1839_v31 = vpop.f32.mrf.mxu1  ;;  %v1928_v23 = vpop.f32.mrf.mxu0  ;;  %v5304_v28 = vor.u32 %v5725_v34, %v5303_v16  ;;  %v5391_v34 = vld [vmem:[#allocation6 + $0x170] sm:$0xf] }
 0x346   : > { %7771 = vst [vmem:[#allocation19_spill] sm:$0xff] %v6761_v43  ;;  %v2519_v29 = vmax.f32 %v2069_v6, 0.0  ;;  %v1840_v35 = vadd.f32 %v1839_v31, %v6584_v27  ;;  %2021 = vmatmul.bf16.gmra.mxu2 %v6666_v47  ;;  %v5240_v6 = vor.u32 %v5709_v33, %v5239_v5 }
 0x347   : > { %2110 = vmatmul.bf16.gmra.mxu3 %v6668_v54  ;;  %3157 = vmatpush.bf16.msrb.mxu0 %v5304_v28  ;;  %v5455_v28 = vld [vmem:[#allocation6 + $0x1f0] sm:$0xf] }
 0x348   : > { %v1929_v12 = vadd.f32 %v1928_v23, %v1840_v35  ;;  %2154 = vmatmul.bf16.gmra.mxu1 %v6535_v41  ;;  %2243 = vmatmul.bf16.gmra.mxu0 %v6537_v42  ;;  %v6768_v26 = vpack.c.bf16 %v2519_v29, %v2515_v30 }
 0x349   : > { %v1982_v62 = vpop.f32.mrf.mxu2  ;;  %v2071_v39 = vpop.f32.mrf.mxu3  ;;  %3068 = vmatpush.bf16.msrb.mxu1 %v5240_v6 }
 0x34a   : > { %7772 = vst [vmem:[#allocation20_spill] sm:$0xff] %v6768_v26  ;;  %v1983_v58 = vadd.f32 %v1982_v62, %v6706_v32  ;;  %v2578_v29 = vmax.f32 %v1929_v12, 0.0 }
 0x34c   : > { %v2072_v2 = vadd.f32 %v2071_v39, %v1983_v58 }
 0x34d   : > { %v1841_v55 = vpop.f32.mrf.mxu1  ;;  %v1930_v17 = vpop.f32.mrf.mxu0 }
 0x34e   : > { %v1842_v21 = vadd.f32 %v1841_v55, %v6584_v27  ;;  %v2523_v5 = vmax.f32 %v2072_v2, 0.0  ;;  %v5747_v2 = vld [vmem:[#allocation6 + $0x174] sm:$0xf0] }
 0x350   : > { %v1931_v31 = vadd.f32 %v1930_v17, %v1842_v21 }
 0x351   : > { %v1984_v23 = vpop.f32.mrf.mxu2  ;;  %v2073_v30 = vpop.f32.mrf.mxu3 }
 0x352   : > { %v2582_v35 = vmax.f32 %v1931_v31, 0.0  ;;  %v1985_v62 = vadd.f32 %v1984_v23, %v6706_v32  ;;  %v5763_v31 = vld [vmem:[#allocation6 + $0x1f4] sm:$0xf0] }
 0x354   : > { %v2074_v43 = vadd.f32 %v2073_v30, %v1985_v62  ;;  %v6773_v26 = vpack.c.bf16 %v2582_v35, %v2578_v29  ;;  %v5456_v30 = vor.u32 %v5763_v31, %v5455_v28 }
 0x355   : > { %v1844_v39 = vpop.f32.mrf.mxu1  ;;  %v1933_v58 = vpop.f32.mrf.mxu0 }
 0x356   : > { %7773 = vst [vmem:[#allocation21_spill] sm:$0xff] %v6773_v26  ;;  %v2527_v33 = vmax.f32 %v2074_v43, 0.0  ;;  %v1845_v6 = vadd.f32 %v1844_v39, %v6584_v27  ;;  %2026 = vmatmul.bf16.gmra.mxu2 %v6682_v59  ;;  %v5392_v43 = vor.u32 %v5747_v2, %v5391_v34  ;;  %3332 = vmatpush.bf16.msrb.mxu3 %v5456_v30 }
 0x357   : > { %2115 = vmatmul.bf16.gmra.mxu3 %v6684_v60 }
 0x358   : > { %v1934_v55 = vadd.f32 %v1933_v58, %v1845_v6  ;;  %2159 = vmatmul.bf16.gmra.mxu1 %v6547_v8  ;;  %2248 = vmatmul.bf16.gmra.mxu0 %v6549_v11  ;;  %v6780_v12 = vpack.c.bf16 %v2527_v33, %v2523_v5 }
 0x359   : > { %v1987_v17 = vpop.f32.mrf.mxu2  ;;  %v2076_v21 = vpop.f32.mrf.mxu3  ;;  %3243 = vmatpush.bf16.msrb.mxu2 %v5392_v43 }
 0x35a   : > { %7774 = vst [vmem:[#allocation22_spill] sm:$0xff] %v6780_v12  ;;  %v1988_v16 = vadd.f32 %v1987_v17, %v6706_v32  ;;  %v2586_v33 = vmax.f32 %v1934_v55, 0.0 }
 0x35c   : > { %v2077_v23 = vadd.f32 %v2076_v21, %v1988_v16 }
 0x35d   : > { %v1846_v29 = vpop.f32.mrf.mxu1  ;;  %v1935_v35 = vpop.f32.mrf.mxu0 }
 0x35e   : > { %v1847_v62 = vadd.f32 %v1846_v29, %v6584_v27  ;;  %v2531_v21 = vmax.f32 %v2077_v23, 0.0  ;;  %v5707_v23 = vld [vmem:[#allocation6 + $0x34] sm:$0xf0] }
 0x360   : > { %v1936_v39 = vadd.f32 %v1935_v35, %v1847_v62  ;;  %v5231_v35 = vld [vmem:[#allocation6 + $0x30] sm:$0xf] }
 0x361   : > { %v1989_v58 = vpop.f32.mrf.mxu2  ;;  %v2078_v5 = vpop.f32.mrf.mxu3 }
 0x362   : > { %v2590_v6 = vmax.f32 %v1936_v39, 0.0  ;;  %v1990_v17 = vadd.f32 %v1989_v58, %v6706_v32 }
 0x364   : > { %v2079_v26 = vadd.f32 %v2078_v5, %v1990_v17  ;;  %v6785_v12 = vpack.c.bf16 %v2590_v6, %v2586_v33  ;;  %v5295_v33 = vld [vmem:[#allocation6 + $0xb0] sm:$0xf]  ;;  %v5723_v6 = vld [vmem:[#allocation6 + $0xb4] sm:$0xf0] }
 0x365   : > { %v1849_v34 = vpop.f32.mrf.mxu1  ;;  %v1938_v2 = vpop.f32.mrf.mxu0  ;;  %v5296_v17 = vor.u32 %v5723_v6, %v5295_v33  ;;  %v5383_v6 = vld [vmem:[#allocation6 + $0x160] sm:$0xf] }
 0x366   : > { %7775 = vst [vmem:[#allocation23_spill] sm:$0xff] %v6785_v12  ;;  %v2535_v16 = vmax.f32 %v2079_v26, 0.0  ;;  %v1850_v28 = vadd.f32 %v1849_v34, %v6584_v27  ;;  %2031 = vmatmul.bf16.gmra.mxu2 %v6698_v13  ;;  %v5232_v26 = vor.u32 %v5707_v23, %v5231_v35 }
 0x367   : > { %2120 = vmatmul.bf16.gmra.mxu3 %v6700_v3  ;;  %3158 = vmatpush.bf16.msrb.mxu0 %v5296_v17  ;;  %v5447_v17 = vld [vmem:[#allocation6 + $0x1e0] sm:$0xf] }
 0x368   : > { %v1939_v43 = vadd.f32 %v1938_v2, %v1850_v28  ;;  %2164 = vmatmul.bf16.gmra.mxu1 %v6559_v46  ;;  %2253 = vmatmul.bf16.gmra.mxu0 %v6561_v48  ;;  %v6792_v55 = vpack.c.bf16 %v2535_v16, %v2531_v21 }
 0x369   : > { %v1992_v31 = vpop.f32.mrf.mxu2  ;;  %3069 = vmatpush.bf16.msrb.mxu1 %v5232_v26 }
 0x36a   : > { %7776 = vst [vmem:[#allocation24_spill] sm:$0xff] %v6792_v55  ;;  %v2081_v30 = vpop.f32.mrf.mxu3  ;;  %v1993_v29 = vadd.f32 %v1992_v31, %v6706_v32  ;;  %v2594_v16 = vmax.f32 %v1939_v43, 0.0 }
 0x36c   : > { %v2082_v62 = vadd.f32 %v2081_v30, %v1993_v29 }
 0x36d   : > { %v1851_v39 = vpop.f32.mrf.mxu1  ;;  %v1940_v58 = vpop.f32.mrf.mxu0 }
 0x36e   : > { %v1852_v5 = vadd.f32 %v1851_v39, %v6584_v27  ;;  %v2539_v35 = vmax.f32 %v2082_v62, 0.0  ;;  %v5745_v62 = vld [vmem:[#allocation6 + $0x164] sm:$0xf0] }
 0x370   : > { %v1941_v34 = vadd.f32 %v1940_v58, %v1852_v5 }
 0x371   : > { %v1994_v2 = vpop.f32.mrf.mxu2 }
 0x372   : > { %v2083_v21 = vpop.f32.mrf.mxu3  ;;  %v2598_v28 = vmax.f32 %v1941_v34, 0.0  ;;  %v1995_v31 = vadd.f32 %v1994_v2, %v6706_v32  ;;  %v5761_v34 = vld [vmem:[#allocation6 + $0x1e4] sm:$0xf0] }
 0x374   : > { %v2084_v12 = vadd.f32 %v2083_v21, %v1995_v31  ;;  %v6797_v55 = vpack.c.bf16 %v2598_v28, %v2594_v16 }
 0x375   : > { %v1854_v30 = vpop.f32.mrf.mxu1  ;;  %v1943_v29 = vpop.f32.mrf.mxu0 }
 0x376   : > { %7777 = vst [vmem:[#allocation25_spill] sm:$0xff] %v6797_v55  ;;  %v2543_v23 = vmax.f32 %v2084_v12, 0.0  ;;  %v1855_v26 = vadd.f32 %v1854_v30, %v6584_v27  ;;  %2312 = vmatmul.bf16.vlgmr.msra.gmra.mxu2 %v6487_v52  ;;  %v5384_v12 = vor.u32 %v5745_v62, %v5383_v6  ;;  %v5448_v52 = vor.u32 %v5761_v34, %v5447_v17 }
 0x377   : > { %2401 = vmatmul.bf16.vlgmr.msra.gmra.mxu3 %v6489_v53 }
 0x378   : > { %v1944_v39 = vadd.f32 %v1943_v29, %v1855_v26  ;;  %2169 = vmatmul.bf16.gmra.mxu1 %v6569_v4  ;;  %2258 = vmatmul.bf16.gmra.mxu0 %v6571_v22  ;;  %v6804_v43 = vpack.c.bf16 %v2543_v23, %v2539_v35  ;;  %v6809_v26 = vld [vmem:[#allocation9 + $0x3] ss:$8 sm:$0xf] }
 0x379   : > { %v1997_v58 = vpop.f32.mrf.mxu2  ;;  %3244 = vmatpush.bf16.msrb.mxu2 %v5384_v12  ;;  %3333 = vmatpush.bf16.msrb.mxu3 %v5448_v52 }
 0x37a   : > { %7778 = vst [vmem:[#allocation26_spill] sm:$0xff] %v6804_v43  ;;  %v2086_v5 = vpop.f32.mrf.mxu3  ;;  %v1998_v33 = vadd.f32 %v1997_v58, %v6706_v32  ;;  %v2602_v29 = vmax.f32 %v1944_v39, 0.0  ;;  %v6812_v58 = vperm.slane %v6809_v26, 2 }
 0x37c   : > { %v2087_v2 = vadd.f32 %v2086_v5, %v1998_v33 }
 0x37d   : > { %v1856_v21 = vpop.f32.mrf.mxu1  ;;  %v1945_v53 = vpop.f32.mrf.mxu0 }
 0x37e   : > { %v1857_v16 = vadd.f32 %v1856_v21, %v6584_v27  ;;  %v2547_v12 = vmax.f32 %v2087_v2, 0.0  ;;  %v5705_v2 = vld [vmem:[#allocation6 + $0x24] sm:$0xf0] }
 0x380   : > { %v1946_v28 = vadd.f32 %v1945_v53, %v1857_v16  ;;  %v5223_v16 = vld [vmem:[#allocation6 + $0x20] sm:$0xf] }
 0x381   : > { %v1999_v31 = vpop.f32.mrf.mxu2 }
 0x382   : > { %v2088_v30 = vpop.f32.mrf.mxu3  ;;  %v2606_v35 = vmax.f32 %v1946_v28, 0.0  ;;  %v2000_v23 = vadd.f32 %v1999_v31, %v6706_v32  ;;  %v5224_v28 = vor.u32 %v5705_v2, %v5223_v16 }
 0x384   : > { %v2089_v5 = vadd.f32 %v2088_v30, %v2000_v23  ;;  %v6814_v33 = vpack.c.bf16 %v2606_v35, %v2602_v29  ;;  %3070 = vmatpush.bf16.msrb.mxu1 %v5224_v28  ;;  %v5721_v35 = vld [vmem:[#allocation6 + $0xa4] sm:$0xf0] }
 0x385   : > { %v2135_v6 = vpop.f32.mrf.mxu1  ;;  %v2224_v62 = vpop.f32.mrf.mxu0 }
 0x386   : > { %7779 = vst [vmem:[#allocation27_spill] sm:$0xff] %v6814_v33  ;;  %v2551_v27 = vmax.f32 %v2089_v5, 0.0  ;;  %v2136_v17 = vadd.f32 %v2135_v6, %v6812_v58  ;;  %2317 = vmatmul.bf16.gmra.mxu2 %v6499_v14 }
 0x387   : > { %2406 = vmatmul.bf16.gmra.mxu3 %v6501_v15  ;;  %v5287_v15 = vld [vmem:[#allocation6 + $0xa0] sm:$0xf] }
 0x388   : > { %v2225_v39 = vadd.f32 %v2224_v62, %v2136_v17  ;;  %2174 = vmatmul.bf16.gmra.mxu1 %v6586_v36  ;;  %2263 = vmatmul.bf16.gmra.mxu0 %v6588_v37  ;;  %v6821_v34 = vpack.c.bf16 %v2551_v27, %v2547_v12  ;;  %v5288_v23 = vor.u32 %v5721_v35, %v5287_v15 }
 0x389   : > { %v2002_v52 = vpop.f32.mrf.mxu2 }
 0x38a   : > { %7780 = vst [vmem:[#allocation28_spill] sm:$0xff] %v6821_v34  ;;  %v2091_v21 = vpop.f32.mrf.mxu3  ;;  %v2003_v53 = vadd.f32 %v2002_v52, %v6706_v32  ;;  %3159 = vmatpush.bf16.msrb.mxu0 %v5288_v23  ;;  %v2484_v12 = vmax.f32 %v2225_v39, 0.0  ;;  %v5375_v23 = vld [vmem:[#allocation6 + $0x150] sm:$0xf] }
 0x38c   : > { %v2092_v31 = vadd.f32 %v2091_v21, %v2003_v53 }
 0x38d   : > { %v2137_v30 = vpop.f32.mrf.mxu1  ;;  %v2226_v29 = vpop.f32.mrf.mxu0 }
 0x38e   : > { %v2138_v14 = vadd.f32 %v2137_v30, %v6812_v58  ;;  %v2555_v2 = vmax.f32 %v2092_v31, 0.0  ;;  %v5743_v31 = vld [vmem:[#allocation6 + $0x154] sm:$0xf0] }
 0x390   : > { %v2227_v5 = vadd.f32 %v2226_v29, %v2138_v14 }
 0x391   : > { %v2004_v6 = vpop.f32.mrf.mxu2 }
 0x392   : > { %v2093_v62 = vpop.f32.mrf.mxu3  ;;  %v2488_v27 = vmax.f32 %v2227_v5, 0.0  ;;  %v2005_v17 = vadd.f32 %v2004_v6, %v6706_v32  ;;  %v5376_v5 = vor.u32 %v5743_v31, %v5375_v23  ;;  %v5439_v6 = vld [vmem:[#allocation6 + $0x1d0] sm:$0xf] }
 0x394   : > { %v6826_v52 = vpack.c.bf16 %v2488_v27, %v2484_v12  ;;  %v2094_v16 = vadd.f32 %v2093_v62, %v2005_v17  ;;  %v5759_v62 = vld [vmem:[#allocation6 + $0x1d4] sm:$0xf0]  ;;  %3245 = vmatpush.bf16.msrb.mxu2 %v5376_v5 }
 0x395   : > { %v2140_v21 = vpop.f32.mrf.mxu1  ;;  %v2229_v53 = vpop.f32.mrf.mxu0 }
 0x396   : > { %v2559_v28 = vmax.f32 %v2094_v16, 0.0  ;;  %v2141_v30 = vadd.f32 %v2140_v21, %v6812_v58  ;;  %2322 = vmatmul.bf16.gmra.mxu2 %v6511_v44  ;;  %v5440_v44 = vor.u32 %v5759_v62, %v5439_v6 }
 0x397   : > { %2411 = vmatmul.bf16.gmra.mxu3 %v6513_v45 }
 0x398   : > { %v2230_v29 = vadd.f32 %v2229_v53, %v2141_v30  ;;  %2179 = vmatmul.bf16.gmra.mxu1 %v6602_v18  ;;  %2268 = vmatmul.bf16.gmra.mxu0 %v6604_v20  ;;  %v6833_v39 = vpack.c.bf16 %v2559_v28, %v2555_v2 }
 0x399   : > { %v2007_v14 = vpop.f32.mrf.mxu2  ;;  %3334 = vmatpush.bf16.msrb.mxu3 %v5440_v44 }
 0x39a   : > { %7781 = vst [vmem:[#allocation29_spill] sm:$0xff] %v6833_v39  ;;  %v2096_v15 = vpop.f32.mrf.mxu3  ;;  %v2008_v35 = vadd.f32 %v2007_v14, %v6706_v32  ;;  %v2492_v2 = vmax.f32 %v2230_v29, 0.0 }
 0x39c   : > { %v2097_v12 = vadd.f32 %v2096_v15, %v2008_v35 }
 0x39d   : > { %v2142_v27 = vpop.f32.mrf.mxu1  ;;  %v2231_v45 = vpop.f32.mrf.mxu0 }
 0x39e   : > { %v2143_v17 = vadd.f32 %v2142_v27, %v6812_v58  ;;  %v2563_v15 = vmax.f32 %v2097_v12, 0.0  ;;  %v5703_v12 = vld [vmem:[#allocation6 + $0x14] sm:$0xf0] }
 0x3a0   : > { %v2232_v16 = vadd.f32 %v2231_v45, %v2143_v17  ;;  %v5215_v45 = vld [vmem:[#allocation6 + $0x10] sm:$0xf] }
 0x3a1   : > { %v2009_v21 = vpop.f32.mrf.mxu2  ;;  %v5216_v17 = vor.u32 %v5703_v12, %v5215_v45 }
 0x3a2   : > { %v2098_v53 = vpop.f32.mrf.mxu3  ;;  %v2496_v28 = vmax.f32 %v2232_v16, 0.0  ;;  %v2010_v30 = vadd.f32 %v2009_v21, %v6706_v32 }
 0x3a3   : > { %3071 = vmatpush.bf16.msrb.mxu1 %v5216_v17 }
 0x3a4   : > { %v2099_v14 = vadd.f32 %v2098_v53, %v2010_v30  ;;  %v6838_v33 = vpack.c.bf16 %v2496_v28, %v2492_v2  ;;  %v5719_v2 = vld [vmem:[#allocation6 + $0x94] sm:$0xf0] }
 0x3a5   : > { %v2145_v23 = vpop.f32.mrf.mxu1  ;;  %v2234_v31 = vpop.f32.mrf.mxu0 }
 0x3a6   : > { %7782 = vst [vmem:[#allocation30_spill] sm:$0xff] %v6838_v33  ;;  %v2567_v35 = vmax.f32 %v2099_v14, 0.0  ;;  %v2146_v6 = vadd.f32 %v2145_v23, %v6812_v58  ;;  %2327 = vmatmul.bf16.gmra.mxu2 %v6523_v9 }
 0x3a7   : > { %2416 = vmatmul.bf16.gmra.mxu3 %v6525_v10  ;;  %v5279_v10 = vld [vmem:[#allocation6 + $0x90] sm:$0xf] }
 0x3a8   : > { %v2235_v5 = vadd.f32 %v2234_v31, %v2146_v6  ;;  %2184 = vmatmul.bf16.gmra.mxu1 %v6618_v0  ;;  %2273 = vmatmul.bf16.gmra.mxu0 %v6620_v1  ;;  %v6845_v29 = vpack.c.bf16 %v2567_v35, %v2563_v15  ;;  %v5280_v28 = vor.u32 %v5719_v2, %v5279_v10  ;;  %v5367_v2 = vld [vmem:[#allocation6 + $0x140] sm:$0xf] }
 0x3a9   : > { %v2012_v62 = vpop.f32.mrf.mxu2 }
 0x3aa   : > { %7783 = vst [vmem:[#allocation31_spill] sm:$0xff] %v6845_v29  ;;  %v2101_v44 = vpop.f32.mrf.mxu3  ;;  %v2013_v27 = vadd.f32 %v2012_v62, %v6706_v32  ;;  %3160 = vmatpush.bf16.msrb.mxu0 %v5280_v28  ;;  %v2500_v31 = vmax.f32 %v2235_v5, 0.0 }
 0x3ac   : > { %v2102_v16 = vadd.f32 %v2101_v44, %v2013_v27 }
 0x3ad   : > { %v2147_v21 = vpop.f32.mrf.mxu1  ;;  %v2236_v53 = vpop.f32.mrf.mxu0 }
 0x3ae   : > { %v2148_v9 = vadd.f32 %v2147_v21, %v6812_v58  ;;  %v2571_v45 = vmax.f32 %v2102_v16, 0.0  ;;  %v5741_v16 = vld [vmem:[#allocation6 + $0x144] sm:$0xf0] }
 0x3af   : > { %v5368_v28 = vor.u32 %v5741_v16, %v5367_v2 }
 0x3b0   : > { %v2237_v30 = vadd.f32 %v2236_v53, %v2148_v9 }
 0x3b1   : > { %v2014_v14 = vpop.f32.mrf.mxu2  ;;  %3246 = vmatpush.bf16.msrb.mxu2 %v5368_v28 }
 0x3b2   : > { %v2103_v23 = vpop.f32.mrf.mxu3  ;;  %v2504_v15 = vmax.f32 %v2237_v30, 0.0  ;;  %v2015_v35 = vadd.f32 %v2014_v14, %v6706_v32  ;;  %v5431_v30 = vld [vmem:[#allocation6 + $0x1c0] sm:$0xf]  ;;  %v5757_v14 = vld [vmem:[#allocation6 + $0x1c4] sm:$0xf0] }
 0x3b4   : > { %v2104_v6 = vadd.f32 %v2103_v23, %v2015_v35  ;;  %v6850_v62 = vpack.c.bf16 %v2504_v15, %v2500_v31 }
 0x3b5   : > { %v2150_v44 = vpop.f32.mrf.mxu1  ;;  %v2239_v27 = vpop.f32.mrf.mxu0 }
 0x3b6   : > { %7784 = vst [vmem:[#allocation32_spill] sm:$0xff] %v6850_v62  ;;  %v2575_v12 = vmax.f32 %v2104_v6, 0.0  ;;  %v2151_v17 = vadd.f32 %v2150_v44, %v6812_v58  ;;  %2332 = vmatmul.bf16.gmra.mxu2 %v6535_v41  ;;  %v5432_v41 = vor.u32 %v5757_v14, %v5431_v30 }
 0x3b7   : > { %2421 = vmatmul.bf16.gmra.mxu3 %v6537_v42 }
 0x3b8   : > { %v2240_v21 = vadd.f32 %v2239_v27, %v2151_v17  ;;  %2189 = vmatmul.bf16.gmra.mxu1 %v6634_v56  ;;  %2278 = vmatmul.bf16.gmra.mxu0 %v6636_v57  ;;  %v6857_v5 = vpack.c.bf16 %v2575_v12, %v2571_v45 }
 0x3b9   : > { %v2017_v53 = vpop.f32.mrf.mxu2  ;;  %3335 = vmatpush.bf16.msrb.mxu3 %v5432_v41 }
 0x3ba   : > { %7785 = vst [vmem:[#allocation33_spill] sm:$0xff] %v6857_v5  ;;  %v2106_v9 = vpop.f32.mrf.mxu3  ;;  %v2018_v10 = vadd.f32 %v2017_v53, %v6706_v32  ;;  %v2508_v27 = vmax.f32 %v2240_v21, 0.0 }
 0x3bc   : > { %v2107_v23 = vadd.f32 %v2106_v9, %v2018_v10 }
 0x3bd   : > { %v2152_v31 = vpop.f32.mrf.mxu1  ;;  %v2241_v42 = vpop.f32.mrf.mxu0 }
 0x3be   : > { %v2153_v15 = vadd.f32 %v2152_v31, %v6812_v58  ;;  %v2579_v9 = vmax.f32 %v2107_v23, 0.0  ;;  %v5701_v23 = vld [vmem:[#allocation6 + $0x4] sm:$0xf0] }
 0x3c0   : > { %v2242_v35 = vadd.f32 %v2241_v42, %v2153_v15  ;;  %v5207_v42 = vld [vmem:[#allocation6] sm:$0xf] }
 0x3c1   : > { %v2019_v6 = vpop.f32.mrf.mxu2  ;;  %v5208_v15 = vor.u32 %v5701_v23, %v5207_v42 }
 0x3c2   : > { %v2108_v44 = vpop.f32.mrf.mxu3  ;;  %v2512_v45 = vmax.f32 %v2242_v35, 0.0  ;;  %v2020_v12 = vadd.f32 %v2019_v6, %v6706_v32 }
 0x3c3   : > { %3072 = vmatpush.bf16.msrb.mxu1 %v5208_v15 }
 0x3c4   : > { %v2109_v17 = vadd.f32 %v2108_v44, %v2020_v12  ;;  %v6862_v53 = vpack.c.bf16 %v2512_v45, %v2508_v27  ;;  %v5717_v27 = vld [vmem:[#allocation6 + $0x84] sm:$0xf0] }
 0x3c5   : > { %v2155_v2 = vpop.f32.mrf.mxu1  ;;  %v2244_v16 = vpop.f32.mrf.mxu0 }
 0x3c6   : > { %7786 = vst [vmem:[#allocation34_spill] sm:$0xff] %v6862_v53  ;;  %v2583_v10 = vmax.f32 %v2109_v17, 0.0  ;;  %v2156_v30 = vadd.f32 %v2155_v2, %v6812_v58  ;;  %2337 = vmatmul.bf16.gmra.mxu2 %v6547_v8 }
 0x3c7   : > { %2426 = vmatmul.bf16.gmra.mxu3 %v6549_v11  ;;  %v5271_v11 = vld [vmem:[#allocation6 + $0x80] sm:$0xf] }
 0x3c8   : > { %v2245_v28 = vadd.f32 %v2244_v16, %v2156_v30  ;;  %2194 = vmatmul.bf16.gmra.mxu1 %v6650_v49  ;;  %2283 = vmatmul.bf16.gmra.mxu0 %v6652_v50  ;;  %v6869_v21 = vpack.c.bf16 %v2583_v10, %v2579_v9  ;;  %v5272_v45 = vor.u32 %v5717_v27, %v5271_v11  ;;  %v5359_v27 = vld [vmem:[#allocation6 + $0x130] sm:$0xf] }
 0x3c9   : > { %v2022_v14 = vpop.f32.mrf.mxu2 }
 0x3ca   : > { %7787 = vst [vmem:[#allocation35_spill] sm:$0xff] %v6869_v21  ;;  %v2111_v41 = vpop.f32.mrf.mxu3  ;;  %v2023_v31 = vadd.f32 %v2022_v14, %v6706_v32  ;;  %3161 = vmatpush.bf16.msrb.mxu0 %v5272_v45  ;;  %v2516_v16 = vmax.f32 %v2245_v28, 0.0 }
 0x3cc   : > { %v2112_v35 = vadd.f32 %v2111_v41, %v2023_v31 }
 0x3cd   : > { %v2157_v6 = vpop.f32.mrf.mxu1  ;;  %v2246_v44 = vpop.f32.mrf.mxu0 }
 0x3ce   : > { %v2158_v8 = vadd.f32 %v2157_v6, %v6812_v58  ;;  %v2587_v42 = vmax.f32 %v2112_v35, 0.0  ;;  %v5739_v35 = vld [vmem:[#allocation6 + $0x134] sm:$0xf0] }
 0x3cf   : > { %v5360_v45 = vor.u32 %v5739_v35, %v5359_v27 }
 0x3d0   : > { %v2247_v12 = vadd.f32 %v2246_v44, %v2158_v8 }
 0x3d1   : > { %v2024_v17 = vpop.f32.mrf.mxu2  ;;  %3247 = vmatpush.bf16.msrb.mxu2 %v5360_v45 }
 0x3d2   : > { %v2113_v2 = vpop.f32.mrf.mxu3  ;;  %v2520_v9 = vmax.f32 %v2247_v12, 0.0  ;;  %v2025_v10 = vadd.f32 %v2024_v17, %v6706_v32  ;;  %v5423_v12 = vld [vmem:[#allocation6 + $0x1b0] sm:$0xf]  ;;  %v5755_v17 = vld [vmem:[#allocation6 + $0x1b4] sm:$0xf0] }
 0x3d4   : > { %v2114_v30 = vadd.f32 %v2113_v2, %v2025_v10  ;;  %v6874_v14 = vpack.c.bf16 %v2520_v9, %v2516_v16 }
 0x3d5   : > { %v2160_v41 = vpop.f32.mrf.mxu1  ;;  %v2249_v31 = vpop.f32.mrf.mxu0 }
 0x3d6   : > { %7788 = vst [vmem:[#allocation36_spill] sm:$0xff] %v6874_v14  ;;  %v2591_v23 = vmax.f32 %v2114_v30, 0.0  ;;  %v2161_v15 = vadd.f32 %v2160_v41, %v6812_v58  ;;  %2342 = vmatmul.bf16.gmra.mxu2 %v6559_v46  ;;  %v5424_v46 = vor.u32 %v5755_v17, %v5423_v12 }
 0x3d7   : > { %2431 = vmatmul.bf16.gmra.mxu3 %v6561_v48 }
 0x3d8   : > { %v2250_v6 = vadd.f32 %v2249_v31, %v2161_v15  ;;  %2199 = vmatmul.bf16.gmra.mxu1 %v6666_v47  ;;  %2288 = vmatmul.bf16.gmra.mxu0 %v6668_v54  ;;  %v6881_v28 = vpack.c.bf16 %v2591_v23, %v2587_v42 }
 0x3d9   : > { %v2027_v44 = vpop.f32.mrf.mxu2  ;;  %3336 = vmatpush.bf16.msrb.mxu3 %v5424_v46 }
 0x3da   : > { %7789 = vst [vmem:[#allocation37_spill] sm:$0xff] %v6881_v28  ;;  %v2116_v8 = vpop.f32.mrf.mxu3  ;;  %v2028_v11 = vadd.f32 %v2027_v44, %v6706_v32  ;;  %v2524_v31 = vmax.f32 %v2250_v6, 0.0 }
 0x3dc   : > { %v2117_v2 = vadd.f32 %v2116_v8, %v2028_v11 }
 0x3dd   : > { %v2162_v16 = vpop.f32.mrf.mxu1  ;;  %v2251_v48 = vpop.f32.mrf.mxu0 }
 0x3de   : > { %v2163_v9 = vadd.f32 %v2162_v16, %v6812_v58  ;;  %v2595_v8 = vmax.f32 %v2117_v2, 0.0  ;;  %v5265_v2 = vld [vmem:[#allocation6 + $0x78] sm:$0xf0] }
 0x3e0   : > { %v2252_v10 = vadd.f32 %v2251_v48, %v2163_v9  ;;  %v5714_v48 = vld [vmem:[#allocation6 + $0x74] sm:$0xf] }
 0x3e1   : > { %v2029_v30 = vpop.f32.mrf.mxu2  ;;  %v5268_v9 = vor.u32 %v5714_v48, %v5265_v2 }
 0x3e2   : > { %v2118_v41 = vpop.f32.mrf.mxu3  ;;  %v2528_v42 = vmax.f32 %v2252_v10, 0.0  ;;  %v2030_v23 = vadd.f32 %v2029_v30, %v6706_v32 }
 0x3e3   : > { %3421 = vmatpush.bf16.msra.mxu1 %v5268_v9 }
 0x3e4   : > { %v2119_v15 = vadd.f32 %v2118_v41, %v2030_v23  ;;  %v6886_v44 = vpack.c.bf16 %v2528_v42, %v2524_v31  ;;  %v5329_v31 = vld [vmem:[#allocation6 + $0xf8] sm:$0xf0] }
 0x3e5   : > { %v2165_v27 = vpop.f32.mrf.mxu1  ;;  %v2254_v35 = vpop.f32.mrf.mxu0 }
 0x3e6   : > { %7790 = vst [vmem:[#allocation38_spill] sm:$0xff] %v6886_v44  ;;  %v2599_v11 = vmax.f32 %v2119_v15, 0.0  ;;  %v2166_v12 = vadd.f32 %v2165_v27, %v6812_v58  ;;  %2347 = vmatmul.bf16.gmra.mxu2 %v6569_v4 }
 0x3e7   : > { %2436 = vmatmul.bf16.gmra.mxu3 %v6571_v22  ;;  %v5730_v22 = vld [vmem:[#allocation6 + $0xf4] sm:$0xf] }
 0x3e8   : > { %v2255_v45 = vadd.f32 %v2254_v35, %v2166_v12  ;;  %2204 = vmatmul.bf16.gmra.mxu1 %v6682_v59  ;;  %2293 = vmatmul.bf16.gmra.mxu0 %v6684_v60  ;;  %v6893_v6 = vpack.c.bf16 %v2599_v11, %v2595_v8  ;;  %v5332_v42 = vor.u32 %v5730_v22, %v5329_v31  ;;  %v5351_v22 = vld [vmem:[#allocation6 + $0x120] sm:$0xf]  ;;  %v5737_v31 = vld [vmem:[#allocation6 + $0x124] sm:$0xf0] }
 0x3e9   : > { %v2032_v17 = vpop.f32.mrf.mxu2 }
 0x3ea   : > { %7791 = vst [vmem:[#allocation39_spill] sm:$0xff] %v6893_v6  ;;  %v2121_v46 = vpop.f32.mrf.mxu3  ;;  %v2033_v16 = vadd.f32 %v2032_v17, %v6706_v32  ;;  %3510 = vmatpush.bf16.msra.mxu0 %v5332_v42  ;;  %v2532_v35 = vmax.f32 %v2255_v45, 0.0  ;;  %v5352_v42 = vor.u32 %v5737_v31, %v5351_v22 }
 0x3ec   : > { %v2122_v10 = vadd.f32 %v2121_v46, %v2033_v16  ;;  %3248 = vmatpush.bf16.msrb.mxu2 %v5352_v42 }
 0x3ed   : > { %v2167_v30 = vpop.f32.mrf.mxu1  ;;  %v2256_v41 = vpop.f32.mrf.mxu0 }
 0x3ee   : > { %v2168_v4 = vadd.f32 %v2167_v30, %v6812_v58  ;;  %v2603_v48 = vmax.f32 %v2122_v10, 0.0  ;;  %v6904_v30 = vperm.slane %v6809_v26, 3 }
 0x3f0   : > { %v2257_v23 = vadd.f32 %v2256_v41, %v2168_v4 }
 0x3f1   : > { %v2034_v15 = vpop.f32.mrf.mxu2 }
 0x3f2   : > { %v2123_v27 = vpop.f32.mrf.mxu3  ;;  %v2536_v8 = vmax.f32 %v2257_v23, 0.0  ;;  %v2035_v11 = vadd.f32 %v2034_v15, %v6706_v32  ;;  %v5753_v23 = vld [vmem:[#allocation6 + $0x1a4] sm:$0xf0] }
 0x3f4   : > { %v2124_v12 = vadd.f32 %v2123_v27, %v2035_v11  ;;  %v6898_v17 = vpack.c.bf16 %v2536_v8, %v2532_v35 }
 0x3f5   : > { %v2170_v46 = vpop.f32.mrf.mxu1  ;;  %v2259_v16 = vpop.f32.mrf.mxu0 }
 0x3f6   : > { %7792 = vst [vmem:[#allocation40_spill] sm:$0xff] %v6898_v17  ;;  %v2607_v2 = vmax.f32 %v2124_v12, 0.0  ;;  %v2171_v9 = vadd.f32 %v2170_v46, %v6812_v58  ;;  %2352 = vmatmul.bf16.gmra.mxu2 %v6586_v36  ;;  %v5415_v36 = vld [vmem:[#allocation6 + $0x1a0] sm:$0xf] }
 0x3f7   : > { %2441 = vmatmul.bf16.gmra.mxu3 %v6588_v37  ;;  %v5416_v15 = vor.u32 %v5753_v23, %v5415_v36 }
 0x3f8   : > { %v2260_v45 = vadd.f32 %v2259_v16, %v2171_v9  ;;  %2209 = vmatmul.bf16.gmra.mxu1 %v6698_v13  ;;  %2298 = vmatmul.bf16.gmra.mxu0 %v6700_v3  ;;  %v6908_v32 = vpack.c.bf16 %v2607_v2, %v2603_v48 }
 0x3f9   : > { %v2313_v41 = vpop.f32.mrf.mxu2  ;;  %3337 = vmatpush.bf16.msrb.mxu3 %v5416_v15 }
 0x3fa   : > { %7793 = vst [vmem:[#allocation41_spill] sm:$0xff] %v6908_v32  ;;  %v2402_v4 = vpop.f32.mrf.mxu3  ;;  %v2314_v10 = vadd.f32 %v2313_v41, %v6904_v30  ;;  %v2540_v46 = vmax.f32 %v2260_v45, 0.0 }
 0x3fc   : > { %v2403_v37 = vadd.f32 %v2402_v4, %v2314_v10 }
 0x3fd   : > { %v2172_v26 = vpop.f32.mrf.mxu1  ;;  %v2261_v27 = vpop.f32.mrf.mxu0 }
 0x3fe   : > { %v2173_v35 = vadd.f32 %v2172_v26, %v6812_v58  ;;  %v2485_v4 = vmax.f32 %v2403_v37, 0.0  ;;  %v5712_v26 = vld [vmem:[#allocation6 + $0x64] sm:$0xf]  ;;  %v5257_v37 = vld [vmem:[#allocation6 + $0x68] sm:$0xf0] }
 0x400   : > { %v2262_v8 = vadd.f32 %v2261_v27, %v2173_v35  ;;  %v5260_v27 = vor.u32 %v5712_v26, %v5257_v37 }
 0x401   : > { %v2315_v11 = vpop.f32.mrf.mxu2 }
 0x402   : > { %v2404_v12 = vpop.f32.mrf.mxu3  ;;  %v2544_v16 = vmax.f32 %v2262_v8, 0.0  ;;  %v2316_v48 = vadd.f32 %v2315_v11, %v6904_v30  ;;  %3422 = vmatpush.bf16.msra.mxu1 %v5260_v27 }
 0x404   : > { %v2405_v2 = vadd.f32 %v2404_v12, %v2316_v48  ;;  %v6913_v9 = vpack.c.bf16 %v2544_v16, %v2540_v46  ;;  %v5321_v12 = vld [vmem:[#allocation6 + $0xe8] sm:$0xf0] }
 0x405   : > { %v2175_v41 = vpop.f32.mrf.mxu1  ;;  %v2264_v22 = vpop.f32.mrf.mxu0 }
 0x406   : > { %v2489_v10 = vmax.f32 %v2405_v2, 0.0  ;;  %v2176_v31 = vadd.f32 %v2175_v41, %v6812_v58  ;;  %2357 = vmatmul.bf16.gmra.mxu2 %v6602_v18 }
 0x407   : > { %2446 = vmatmul.bf16.gmra.mxu3 %v6604_v20  ;;  %v5728_v20 = vld [vmem:[#allocation6 + $0xe4] sm:$0xf] }
 0x408   : > { %v6918_v42 = vpack.c.bf16 %v2489_v10, %v2485_v4  ;;  %v2265_v36 = vadd.f32 %v2264_v22, %v2176_v31  ;;  %3073 = vmatmul.bf16.vlgmr.msrb.gmra.mxu1 %v6600_v7  ;;  %3162 = vmatmul.bf16.vlgmr.msrb.gmra.mxu0 %v6718_v24  ;;  %v5324_v46 = vor.u32 %v5728_v20, %v5321_v12  ;;  %v5343_v20 = vld [vmem:[#allocation6 + $0x110] sm:$0xf] }
 0x409   : > { %v2318_v45 = vpop.f32.mrf.mxu2 }
 0x40a   : > { %7794 = vst [vmem:[#allocation42_spill] sm:$0xff] %v6918_v42  ;;  %v2407_v23 = vpop.f32.mrf.mxu3  ;;  %v2319_v15 = vadd.f32 %v2318_v45, %v6904_v30  ;;  %3511 = vmatpush.bf16.msra.mxu0 %v5324_v46  ;;  %v2548_v41 = vmax.f32 %v2265_v36, 0.0  ;;  %v5407_v46 = vld [vmem:[#allocation6 + $0x190] sm:$0xf] }
 0x40c   : > { %v2408_v35 = vadd.f32 %v2407_v23, %v2319_v15 }
 0x40d   : > { %v2177_v8 = vpop.f32.mrf.mxu1  ;;  %v2266_v11 = vpop.f32.mrf.mxu0 }
 0x40e   : > { %v2178_v18 = vadd.f32 %v2177_v8, %v6812_v58  ;;  %v2493_v15 = vmax.f32 %v2408_v35, 0.0  ;;  %v5735_v35 = vld [vmem:[#allocation6 + $0x114] sm:$0xf0] }
 0x40f   : > { %v5344_v12 = vor.u32 %v5735_v35, %v5343_v20 }
 0x410   : > { %v2267_v16 = vadd.f32 %v2266_v11, %v2178_v18 }
 0x411   : > { %v2320_v48 = vpop.f32.mrf.mxu2  ;;  %3249 = vmatpush.bf16.msrb.mxu2 %v5344_v12 }
 0x412   : > { %v2409_v2 = vpop.f32.mrf.mxu3  ;;  %v2552_v22 = vmax.f32 %v2267_v16, 0.0  ;;  %v2321_v4 = vadd.f32 %v2320_v48, %v6904_v30  ;;  %v5751_v16 = vld [vmem:[#allocation6 + $0x194] sm:$0xf0] }
 0x414   : > { %v2410_v10 = vadd.f32 %v2409_v2, %v2321_v4  ;;  %v6925_v31 = vpack.c.bf16 %v2552_v22, %v2548_v41 }
 0x415   : > { %v2180_v45 = vpop.f32.mrf.mxu1  ;;  %v2269_v23 = vpop.f32.mrf.mxu0 }
 0x416   : > { %7795 = vst [vmem:[#allocation43_spill] sm:$0xff] %v6925_v31  ;;  %v2497_v26 = vmax.f32 %v2410_v10, 0.0  ;;  %v2181_v37 = vadd.f32 %v2180_v45, %v6812_v58  ;;  %2362 = vmatmul.bf16.gmra.mxu2 %v6618_v0  ;;  %v5408_v0 = vor.u32 %v5751_v16, %v5407_v46 }
 0x417   : > { %2451 = vmatmul.bf16.gmra.mxu3 %v6620_v1 }
 0x418   : > { %v2270_v27 = vadd.f32 %v2269_v23, %v2181_v37  ;;  %3078 = vmatmul.bf16.gmra.mxu1 %v6616_v61  ;;  %3167 = vmatmul.bf16.gmra.mxu0 %v6732_v25  ;;  %v6932_v36 = vpack.c.bf16 %v2497_v26, %v2493_v15 }
 0x419   : > { %v2323_v8 = vpop.f32.mrf.mxu2  ;;  %3338 = vmatpush.bf16.msrb.mxu3 %v5408_v0 }
 0x41a   : > { %7796 = vst [vmem:[#allocation44_spill] sm:$0xff] %v6932_v36  ;;  %v2412_v11 = vpop.f32.mrf.mxu3  ;;  %v2324_v18 = vadd.f32 %v2323_v8, %v6904_v30  ;;  %v2556_v45 = vmax.f32 %v2270_v27, 0.0 }
 0x41c   : > { %v2413_v48 = vadd.f32 %v2412_v11, %v2324_v18 }
 0x41d   : > { %v2182_v2 = vpop.f32.mrf.mxu1  ;;  %v2271_v1 = vpop.f32.mrf.mxu0 }
 0x41e   : > { %v2183_v41 = vadd.f32 %v2182_v2, %v6812_v58  ;;  %v2501_v11 = vmax.f32 %v2413_v48, 0.0  ;;  %v5710_v2 = vld [vmem:[#allocation6 + $0x54] sm:$0xf]  ;;  %v5249_v48 = vld [vmem:[#allocation6 + $0x58] sm:$0xf0] }
 0x420   : > { %v2272_v22 = vadd.f32 %v2271_v1, %v2183_v41  ;;  %v5252_v1 = vor.u32 %v5710_v2, %v5249_v48 }
 0x421   : > { %v2325_v4 = vpop.f32.mrf.mxu2 }
 0x422   : > { %v2414_v10 = vpop.f32.mrf.mxu3  ;;  %v2560_v23 = vmax.f32 %v2272_v22, 0.0  ;;  %v2326_v15 = vadd.f32 %v2325_v4, %v6904_v30  ;;  %3423 = vmatpush.bf16.msra.mxu1 %v5252_v1 }
 0x424   : > { %v2415_v26 = vadd.f32 %v2414_v10, %v2326_v15  ;;  %v6937_v37 = vpack.c.bf16 %v2560_v23, %v2556_v45  ;;  %v5313_v10 = vld [vmem:[#allocation6 + $0xd8] sm:$0xf0] }
 0x425   : > { %v2185_v8 = vpop.f32.mrf.mxu1  ;;  %v2274_v20 = vpop.f32.mrf.mxu0 }
 0x426   : > { %v2505_v18 = vmax.f32 %v2415_v26, 0.0  ;;  %v2186_v35 = vadd.f32 %v2185_v8, %v6812_v58  ;;  %2367 = vmatmul.bf16.gmra.mxu2 %v6634_v56 }
 0x427   : > { %2456 = vmatmul.bf16.gmra.mxu3 %v6636_v57  ;;  %v5726_v57 = vld [vmem:[#allocation6 + $0xd4] sm:$0xf] }
 0x428   : > { %v2275_v12 = vadd.f32 %v2274_v20, %v2186_v35  ;;  %3083 = vmatmul.bf16.gmra.mxu1 %v6632_v51  ;;  %3172 = vmatmul.bf16.gmra.mxu0 %v6744_v19  ;;  %v6944_v27 = vpack.c.bf16 %v2505_v18, %v2501_v11  ;;  %v5316_v45 = vor.u32 %v5726_v57, %v5313_v10  ;;  %v5335_v57 = vld [vmem:[#allocation6 + $0x100] sm:$0xf] }
 0x429   : > { %v2328_v46 = vpop.f32.mrf.mxu2 }
 0x42a   : > { %7797 = vst [vmem:[#allocation45_spill] sm:$0xff] %v6944_v27  ;;  %v2417_v16 = vpop.f32.mrf.mxu3  ;;  %v2329_v0 = vadd.f32 %v2328_v46, %v6904_v30  ;;  %3512 = vmatpush.bf16.msra.mxu0 %v5316_v45  ;;  %v2564_v8 = vmax.f32 %v2275_v12, 0.0  ;;  %v5399_v45 = vld [vmem:[#allocation6 + $0x180] sm:$0xf] }
 0x42c   : > { %v2418_v41 = vadd.f32 %v2417_v16, %v2329_v0 }
 0x42d   : > { %v2187_v22 = vpop.f32.mrf.mxu1  ;;  %v2276_v4 = vpop.f32.mrf.mxu0 }
 0x42e   : > { %v2188_v56 = vadd.f32 %v2187_v22, %v6812_v58  ;;  %v2509_v0 = vmax.f32 %v2418_v41, 0.0  ;;  %v5733_v41 = vld [vmem:[#allocation6 + $0x104] sm:$0xf0] }
 0x42f   : > { %v5336_v10 = vor.u32 %v5733_v41, %v5335_v57 }
 0x430   : > { %v2277_v23 = vadd.f32 %v2276_v4, %v2188_v56 }
 0x431   : > { %v2330_v15 = vpop.f32.mrf.mxu2  ;;  %3250 = vmatpush.bf16.msrb.mxu2 %v5336_v10 }
 0x432   : > { %v2419_v26 = vpop.f32.mrf.mxu3  ;;  %v2568_v20 = vmax.f32 %v2277_v23, 0.0  ;;  %v2331_v11 = vadd.f32 %v2330_v15, %v6904_v30  ;;  %v5749_v23 = vld [vmem:[#allocation6 + $0x184] sm:$0xf0] }
 0x434   : > { %v2420_v18 = vadd.f32 %v2419_v26, %v2331_v11  ;;  %v6949_v35 = vpack.c.bf16 %v2568_v20, %v2564_v8 }
 0x435   : > { %v2190_v46 = vpop.f32.mrf.mxu1  ;;  %v2279_v16 = vpop.f32.mrf.mxu0 }
 0x436   : > { %v2513_v2 = vmax.f32 %v2420_v18, 0.0  ;;  %v2191_v48 = vadd.f32 %v2190_v46, %v6812_v58  ;;  %2372 = vmatmul.bf16.gmra.mxu2 %v6650_v49  ;;  %v5400_v49 = vor.u32 %v5749_v23, %v5399_v45 }
 0x437   : > { %2461 = vmatmul.bf16.gmra.mxu3 %v6652_v50 }
 0x438   : > { %v2280_v1 = vadd.f32 %v2279_v16, %v2191_v48  ;;  %3088 = vmatmul.bf16.gmra.mxu1 %v6648_v40  ;;  %3177 = vmatmul.bf16.gmra.mxu0 %v6756_v63  ;;  %v6956_v12 = vpack.c.bf16 %v2513_v2, %v2509_v0 }
 0x439   : > { %v2333_v22 = vpop.f32.mrf.mxu2  ;;  %3339 = vmatpush.bf16.msrb.mxu3 %v5400_v49 }
 0x43a   : > { %7798 = vst [vmem:[#allocation46_spill] sm:$0xff] %v6956_v12  ;;  %v2422_v4 = vpop.f32.mrf.mxu3  ;;  %v2334_v56 = vadd.f32 %v2333_v22, %v6904_v30  ;;  %v2572_v46 = vmax.f32 %v2280_v1, 0.0  ;;  %v7799_v1 = vld [vmem:[#allocation20_spill] sm:$0xff] }
 0x43c   : > { %v2423_v15 = vadd.f32 %v2422_v4, %v2334_v56 }
 0x43d   : > { %v2192_v26 = vpop.f32.mrf.mxu1  ;;  %v2281_v50 = vpop.f32.mrf.mxu0 }
 0x43e   : > { %v2193_v8 = vadd.f32 %v2192_v26, %v6812_v58  ;;  %v2517_v4 = vmax.f32 %v2423_v15, 0.0  ;;  %v5241_v15 = vld [vmem:[#allocation6 + $0x48] sm:$0xf0] }
 0x440   : > { %v2282_v20 = vadd.f32 %v2281_v50, %v2193_v8  ;;  %v5708_v50 = vld [vmem:[#allocation6 + $0x44] sm:$0xf] }
 0x441   : > { %v2335_v11 = vpop.f32.mrf.mxu2  ;;  %v5244_v8 = vor.u32 %v5708_v50, %v5241_v15 }
 0x442   : > { %v2424_v18 = vpop.f32.mrf.mxu3  ;;  %v2576_v16 = vmax.f32 %v2282_v20, 0.0  ;;  %v2336_v0 = vadd.f32 %v2335_v11, %v6904_v30 }
 0x443   : > { %3424 = vmatpush.bf16.msra.mxu1 %v5244_v8 }
 0x444   : > { %v2425_v2 = vadd.f32 %v2424_v18, %v2336_v0  ;;  %v6961_v48 = vpack.c.bf16 %v2576_v16, %v2572_v46  ;;  %v5305_v46 = vld [vmem:[#allocation6 + $0xc8] sm:$0xf0] }
 0x445   : > { %v2195_v22 = vpop.f32.mrf.mxu1  ;;  %v2284_v57 = vpop.f32.mrf.mxu0 }
 0x446   : > { %v2521_v56 = vmax.f32 %v2425_v2, 0.0  ;;  %v2196_v41 = vadd.f32 %v2195_v22, %v6812_v58  ;;  %2377 = vmatmul.bf16.gmra.mxu2 %v6666_v47 }
 0x447   : > { %2466 = vmatmul.bf16.gmra.mxu3 %v6668_v54  ;;  %v5724_v54 = vld [vmem:[#allocation6 + $0xc4] sm:$0xf] }
 0x448   : > { %v2285_v10 = vadd.f32 %v2284_v57, %v2196_v41  ;;  %3093 = vmatmul.bf16.gmra.mxu1 %v6664_v38  ;;  %3182 = vmatmul.bf16.gmra.mxu0 %v7799_v1  ;;  %v6968_v45 = vpack.c.bf16 %v2521_v56, %v2517_v4  ;;  %v5308_v16 = vor.u32 %v5724_v54, %v5305_v46 }
 0x449   : > { %v2338_v23 = vpop.f32.mrf.mxu2 }
 0x44a   : > { %7800 = vst [vmem:[#allocation20_spill] sm:$0xff] %v6968_v45  ;;  %v2427_v49 = vpop.f32.mrf.mxu3  ;;  %v2339_v26 = vadd.f32 %v2338_v23, %v6904_v30  ;;  %3513 = vmatpush.bf16.msra.mxu0 %v5308_v16  ;;  %v2580_v57 = vmax.f32 %v2285_v10, 0.0  ;;  %v7802_v10 = vld [vmem:[#allocation22_spill] sm:$0xff] }
 0x44c   : > { %v2428_v20 = vadd.f32 %v2427_v49, %v2339_v26 }
 0x44d   : > { %v2197_v11 = vpop.f32.mrf.mxu1  ;;  %v2286_v18 = vpop.f32.mrf.mxu0 }
 0x44e   : > { %v2198_v47 = vadd.f32 %v2197_v11, %v6812_v58  ;;  %v2525_v50 = vmax.f32 %v2428_v20, 0.0  ;;  %v5393_v20 = vld [vmem:[#allocation6 + $0x178] sm:$0xf0] }
 0x450   : > { %v2287_v0 = vadd.f32 %v2286_v18, %v2198_v47  ;;  %v7801_v18 = vld [vmem:[#allocation13_spill] sm:$0xff] }
 0x451   : > { %v2340_v2 = vpop.f32.mrf.mxu2 }
 0x452   : > { %v2429_v22 = vpop.f32.mrf.mxu3  ;;  %v2584_v4 = vmax.f32 %v2287_v0, 0.0  ;;  %v2341_v56 = vadd.f32 %v2340_v2, %v6904_v30  ;;  %v5746_v0 = vld [vmem:[#allocation6 + $0x174] sm:$0xf] }
 0x453   : > { %v5396_v2 = vor.u32 %v5746_v0, %v5393_v20 }
 0x454   : > { %v2430_v41 = vadd.f32 %v2429_v22, %v2341_v56  ;;  %v6973_v23 = vpack.c.bf16 %v2584_v4, %v2580_v57  ;;  %v5762_v22 = vld [vmem:[#allocation6 + $0x1f4] sm:$0xf]  ;;  %v5457_v57 = vld [vmem:[#allocation6 + $0x1f8] sm:$0xf0] }
 0x455   : > { %v2200_v49 = vpop.f32.mrf.mxu1  ;;  %v2289_v26 = vpop.f32.mrf.mxu0  ;;  %3599 = vmatpush.bf16.msra.mxu2 %v5396_v2 }
 0x456   : > { %v2529_v15 = vmax.f32 %v2430_v41, 0.0  ;;  %v2201_v8 = vadd.f32 %v2200_v49, %v6812_v58  ;;  %2382 = vmatmul.bf16.gmra.mxu2 %v6682_v59  ;;  %v5460_v59 = vor.u32 %v5762_v22, %v5457_v57  ;;  %v7804_v57 = vld [vmem:[#allocation14_spill] sm:$0xff] }
 0x457   : > { %2471 = vmatmul.bf16.gmra.mxu3 %v6684_v60 }
 0x458   : > { %v2290_v11 = vadd.f32 %v2289_v26, %v2201_v8  ;;  %3098 = vmatmul.bf16.gmra.mxu1 %v7801_v18  ;;  %3187 = vmatmul.bf16.gmra.mxu0 %v7802_v10  ;;  %v6980_v47 = vpack.c.bf16 %v2529_v15, %v2525_v50 }
 0x459   : > { %v2343_v54 = vpop.f32.mrf.mxu2  ;;  %3688 = vmatpush.bf16.msra.mxu3 %v5460_v59  ;;  %v5706_v59 = vld [vmem:[#allocation6 + $0x34] sm:$0xf] }
 0x45a   : > { %7803 = vst [vmem:[#allocation47_spill] sm:$0xff] %v6980_v47  ;;  %v2432_v46 = vpop.f32.mrf.mxu3  ;;  %v2344_v16 = vadd.f32 %v2343_v54, %v6904_v30  ;;  %v2588_v15 = vmax.f32 %v2290_v11, 0.0  ;;  %v7805_v11 = vld [vmem:[#allocation24_spill] sm:$0xff] }
 0x45c   : > { %v2433_v4 = vadd.f32 %v2432_v46, %v2344_v16 }
 0x45d   : > { %v2202_v56 = vpop.f32.mrf.mxu1  ;;  %v2291_v60 = vpop.f32.mrf.mxu0 }
 0x45e   : > { %v2203_v41 = vadd.f32 %v2202_v56, %v6812_v58  ;;  %v2533_v46 = vmax.f32 %v2433_v4, 0.0  ;;  %v5233_v56 = vld [vmem:[#allocation6 + $0x38] sm:$0xf0] }
 0x460   : > { %v2292_v49 = vadd.f32 %v2291_v60, %v2203_v41 }
 0x461   : > { %v2345_v26 = vpop.f32.mrf.mxu2 }
 0x462   : > { %v2434_v50 = vpop.f32.mrf.mxu3  ;;  %v2592_v8 = vmax.f32 %v2292_v49, 0.0  ;;  %v2346_v54 = vadd.f32 %v2345_v26, %v6904_v30  ;;  %v5236_v26 = vor.u32 %v5706_v59, %v5233_v56 }
 0x464   : > { %v2435_v10 = vadd.f32 %v2434_v50, %v2346_v54  ;;  %v6985_v18 = vpack.c.bf16 %v2592_v8, %v2588_v15  ;;  %3425 = vmatpush.bf16.msra.mxu1 %v5236_v26  ;;  %v5722_v15 = vld [vmem:[#allocation6 + $0xb4] sm:$0xf]  ;;  %v5297_v8 = vld [vmem:[#allocation6 + $0xb8] sm:$0xf0] }
 0x465   : > { %v2205_v0 = vpop.f32.mrf.mxu1  ;;  %v2294_v20 = vpop.f32.mrf.mxu0  ;;  %v5300_v54 = vor.u32 %v5722_v15, %v5297_v8  ;;  %v5385_v15 = vld [vmem:[#allocation6 + $0x168] sm:$0xf0] }
 0x466   : > { %v2537_v16 = vmax.f32 %v2435_v10, 0.0  ;;  %v2206_v22 = vadd.f32 %v2205_v0, %v6812_v58  ;;  %2387 = vmatmul.bf16.gmra.mxu2 %v6698_v13 }
 0x467   : > { %2476 = vmatmul.bf16.gmra.mxu3 %v6700_v3  ;;  %3514 = vmatpush.bf16.msra.mxu0 %v5300_v54 }
 0x468   : > { %v2295_v2 = vadd.f32 %v2294_v20, %v2206_v22  ;;  %3103 = vmatmul.bf16.gmra.mxu1 %v7804_v57  ;;  %3192 = vmatmul.bf16.gmra.mxu0 %v7805_v11  ;;  %v6992_v60 = vpack.c.bf16 %v2537_v16, %v2533_v46 }
 0x469   : > { %v2348_v41 = vpop.f32.mrf.mxu2 }
 0x46a   : > { %7806 = vst [vmem:[#allocation14_spill] sm:$0xff] %v6992_v60  ;;  %v2437_v49 = vpop.f32.mrf.mxu3  ;;  %v2349_v10 = vadd.f32 %v2348_v41, %v6904_v30  ;;  %v2596_v46 = vmax.f32 %v2295_v2, 0.0  ;;  %v5744_v2 = vld [vmem:[#allocation6 + $0x164] sm:$0xf] }
 0x46c   : > { %v2438_v4 = vadd.f32 %v2437_v49, %v2349_v10 }
 0x46d   : > { %v2207_v50 = vpop.f32.mrf.mxu1  ;;  %v2296_v13 = vpop.f32.mrf.mxu0 }
 0x46e   : > { %v2208_v3 = vadd.f32 %v2207_v50, %v6812_v58  ;;  %v2541_v26 = vmax.f32 %v2438_v4, 0.0  ;;  %v5388_v4 = vor.u32 %v5744_v2, %v5385_v15 }
 0x470   : > { %v2297_v0 = vadd.f32 %v2296_v13, %v2208_v3  ;;  %v7807_v3 = vld [vmem:[#allocation15_spill] sm:$0xff]  ;;  %3600 = vmatpush.bf16.msra.mxu2 %v5388_v4 }
 0x471   : > { %v2350_v20 = vpop.f32.mrf.mxu2 }
 0x472   : > { %v2439_v22 = vpop.f32.mrf.mxu3  ;;  %v2600_v16 = vmax.f32 %v2297_v0, 0.0  ;;  %v2351_v11 = vadd.f32 %v2350_v20, %v6904_v30  ;;  %v5449_v20 = vld [vmem:[#allocation6 + $0x1e8] sm:$0xf0] }
 0x474   : > { %v2440_v59 = vadd.f32 %v2439_v22, %v2351_v11  ;;  %v6997_v56 = vpack.c.bf16 %v2600_v16, %v2596_v46  ;;  %v5760_v11 = vld [vmem:[#allocation6 + $0x1e4] sm:$0xf] }
 0x475   : > { %v2210_v41 = vpop.f32.mrf.mxu1  ;;  %v2299_v49 = vpop.f32.mrf.mxu0  ;;  %v5452_v46 = vor.u32 %v5760_v11, %v5449_v20 }
 0x476   : > { %v2545_v10 = vmax.f32 %v2440_v59, 0.0  ;;  %v2211_v50 = vadd.f32 %v2210_v41, %v6812_v58  ;;  %3251 = vmatmul.bf16.vlgmr.msrb.gmra.mxu2 %v6826_v52 }
 0x477   : > { %3340 = vmatmul.bf16.vlgmr.msrb.gmra.mxu3 %v6918_v42 }
 0x478   : > { %v2300_v13 = vadd.f32 %v2299_v49, %v2211_v50  ;;  %3108 = vmatmul.bf16.gmra.mxu1 %v7807_v3  ;;  %3197 = vmatmul.bf16.gmra.mxu0 %v6804_v43  ;;  %v7004_v8 = vpack.c.bf16 %v2545_v10, %v2541_v26  ;;  %v7008_v50 = vld [vmem:[#allocation9 + $0x4] ss:$8 sm:$0x3] }
 0x479   : > { %v2353_v54 = vpop.f32.mrf.mxu2  ;;  %3689 = vmatpush.bf16.msra.mxu3 %v5452_v46  ;;  %7808 = vst [vmem:[#allocation48_spill] sm:$0xff] %v7008_v50  ;;  %v7012_v15 = vperm.slane %v7008_v50, 0  ;;  %v5225_v46 = vld [vmem:[#allocation6 + $0x28] sm:$0xf0] }
 0x47a   : > { %v2442_v0 = vpop.f32.mrf.mxu3  ;;  %v2354_v22 = vadd.f32 %v2353_v54, %v6904_v30  ;;  %v2604_v10 = vmax.f32 %v2300_v13, 0.0 }
 0x47c   : > { %v2443_v16 = vadd.f32 %v2442_v0, %v2354_v22 }
 0x47d   : > { %v2212_v59 = vpop.f32.mrf.mxu1  ;;  %v2301_v41 = vpop.f32.mrf.mxu0 }
 0x47e   : > { %v2213_v49 = vadd.f32 %v2212_v59, %v6812_v58  ;;  %v2549_v20 = vmax.f32 %v2443_v16, 0.0 }
 0x480   : > { %v2302_v43 = vadd.f32 %v2301_v41, %v2213_v49 }
 0x481   : > { %v2355_v3 = vpop.f32.mrf.mxu2 }
 0x482   : > { %v2444_v26 = vpop.f32.mrf.mxu3  ;;  %v2608_v42 = vmax.f32 %v2302_v43, 0.0  ;;  %v2356_v2 = vadd.f32 %v2355_v3, %v6904_v30  ;;  %v7809_v43 = vld [vmem:[#allocation16_spill] sm:$0xff]  ;;  %v5704_v3 = vld [vmem:[#allocation6 + $0x24] sm:$0xf] }
 0x483   : > { %v5228_v16 = vor.u32 %v5704_v3, %v5225_v46 }
 0x484   : > { %v2445_v11 = vadd.f32 %v2444_v26, %v2356_v2  ;;  %v7014_v54 = vpack.c.bf16 %v2608_v42, %v2604_v10 }
 0x485   : > { %v3074_v0 = vpop.f32.mrf.mxu1  ;;  %v3163_v4 = vpop.f32.mrf.mxu0  ;;  %3426 = vmatpush.bf16.msra.mxu1 %v5228_v16 }
 0x486   : > { %v2553_v22 = vmax.f32 %v2445_v11, 0.0  ;;  %v3075_v58 = vadd.f32 %v3074_v0, %v7012_v15  ;;  %3256 = vmatmul.bf16.gmra.mxu2 %v6838_v33  ;;  %v5720_v0 = vld [vmem:[#allocation6 + $0xa4] sm:$0xf] }
 0x487   : > { %3345 = vmatmul.bf16.gmra.mxu3 %v6932_v36 }
 0x488   : > { %v7019_v13 = vadd.f32 %v3163_v4, %v3075_v58  ;;  %3113 = vmatmul.bf16.gmra.mxu1 %v7809_v43  ;;  %3202 = vmatmul.bf16.gmra.mxu0 %v6821_v34  ;;  %v7023_v42 = vpack.c.bf16 %v2553_v22, %v2549_v20  ;;  %v5289_v4 = vld [vmem:[#allocation6 + $0xa8] sm:$0xf0] }
 0x489   : > { %v2358_v59 = vpop.f32.mrf.mxu2  ;;  %v5292_v58 = vor.u32 %v5720_v0, %v5289_v4 }
 0x48a   : > { %7810 = vst [vmem:[#allocation49_spill] sm:$0xff] %v7023_v42  ;;  %v2447_v41 = vpop.f32.mrf.mxu3  ;;  %v2359_v49 = vadd.f32 %v2358_v59, %v6904_v30 }
 0x48b   : > { %3515 = vmatpush.bf16.msra.mxu0 %v5292_v58  ;;  %v5441_v58 = vld [vmem:[#allocation6 + $0x1d8] sm:$0xf0] }
 0x48c   : > { %v2448_v26 = vadd.f32 %v2447_v41, %v2359_v49 }
 0x48d   : > { %v3076_v10 = vpop.f32.mrf.mxu1  ;;  %v3165_v2 = vpop.f32.mrf.mxu0 }
 0x48e   : > { %v3077_v11 = vadd.f32 %v3076_v10, %v7012_v15  ;;  %v2557_v59 = vmax.f32 %v2448_v26, 0.0  ;;  %v7811_v10 = vld [vmem:[#allocation17_spill] sm:$0xff] }
 0x490   : > { %v7027_v43 = vadd.f32 %v3165_v2, %v3077_v11  ;;  %v5742_v2 = vld [vmem:[#allocation6 + $0x154] sm:$0xf]  ;;  %v5377_v11 = vld [vmem:[#allocation6 + $0x158] sm:$0xf0] }
 0x491   : > { %v2360_v34 = vpop.f32.mrf.mxu2  ;;  %v5380_v4 = vor.u32 %v5742_v2, %v5377_v11 }
 0x492   : > { %v2449_v36 = vpop.f32.mrf.mxu3  ;;  %v2361_v20 = vadd.f32 %v2360_v34, %v6904_v30  ;;  %v5758_v34 = vld [vmem:[#allocation6 + $0x1d4] sm:$0xf] }
 0x493   : > { %3601 = vmatpush.bf16.msra.mxu2 %v5380_v4  ;;  %v5217_v4 = vld [vmem:[#allocation6 + $0x18] sm:$0xf0] }
 0x494   : > { %v2450_v22 = vadd.f32 %v2449_v36, %v2361_v20 }
 0x495   : > { %v3079_v3 = vpop.f32.mrf.mxu1  ;;  %v3168_v46 = vpop.f32.mrf.mxu0 }
 0x496   : > { %v2561_v16 = vmax.f32 %v2450_v22, 0.0  ;;  %v3080_v41 = vadd.f32 %v3079_v3, %v7012_v15  ;;  %3261 = vmatmul.bf16.gmra.mxu2 %v6850_v62  ;;  %v5444_v22 = vor.u32 %v5758_v34, %v5441_v58 }
 0x497   : > { %3350 = vmatmul.bf16.gmra.mxu3 %v6944_v27 }
 0x498   : > { %v7033_v49 = vadd.f32 %v3168_v46, %v3080_v41  ;;  %3118 = vmatmul.bf16.gmra.mxu1 %v7811_v10  ;;  %3207 = vmatmul.bf16.gmra.mxu0 %v6833_v39  ;;  %v7037_v36 = vpack.c.bf16 %v2561_v16, %v2557_v59 }
 0x499   : > { %v2363_v0 = vpop.f32.mrf.mxu2  ;;  %3690 = vmatpush.bf16.msra.mxu3 %v5444_v22 }
 0x49a   : > { %v2452_v26 = vpop.f32.mrf.mxu3  ;;  %v2364_v20 = vadd.f32 %v2363_v0, %v6904_v30 }
 0x49c   : > { %v2453_v3 = vadd.f32 %v2452_v26, %v2364_v20  ;;  %v7812_v26 = vld [vmem:[#allocation18_spill] sm:$0xff] }
 0x49d   : > { %v3081_v46 = vpop.f32.mrf.mxu1  ;;  %v3170_v41 = vpop.f32.mrf.mxu0 }
 0x49e   : > { %v3082_v10 = vadd.f32 %v3081_v46, %v7012_v15  ;;  %v2565_v11 = vmax.f32 %v2453_v3, 0.0 }
 0x4a0   : > { %v7041_v39 = vadd.f32 %v3170_v41, %v3082_v10  ;;  %v5702_v10 = vld [vmem:[#allocation6 + $0x14] sm:$0xf] }
 0x4a1   : > { %v2365_v27 = vpop.f32.mrf.mxu2  ;;  %v5220_v20 = vor.u32 %v5702_v10, %v5217_v4 }
 0x4a2   : > { %v2454_v62 = vpop.f32.mrf.mxu3  ;;  %v2366_v59 = vadd.f32 %v2365_v27, %v6904_v30 }
 0x4a3   : > { %3427 = vmatpush.bf16.msra.mxu1 %v5220_v20 }
 0x4a4   : > { %v2455_v16 = vadd.f32 %v2454_v62, %v2366_v59  ;;  %v5718_v59 = vld [vmem:[#allocation6 + $0x94] sm:$0xf] }
 0x4a5   : > { %v3084_v33 = vpop.f32.mrf.mxu1  ;;  %v3173_v2 = vpop.f32.mrf.mxu0 }
 0x4a6   : > { %v2569_v50 = vmax.f32 %v2455_v16, 0.0  ;;  %v3085_v34 = vadd.f32 %v3084_v33, %v7012_v15  ;;  %3266 = vmatmul.bf16.gmra.mxu2 %v6862_v53  ;;  %v5281_v16 = vld [vmem:[#allocation6 + $0x98] sm:$0xf0] }
 0x4a7   : > { %3355 = vmatmul.bf16.gmra.mxu3 %v6956_v12 }
 0x4a8   : > { %v7047_v0 = vadd.f32 %v3173_v2, %v3085_v34  ;;  %3123 = vmatmul.bf16.gmra.mxu1 %v7812_v26  ;;  %3212 = vmatmul.bf16.gmra.mxu0 %v6845_v29  ;;  %v7051_v27 = vpack.c.bf16 %v2569_v50, %v2565_v11  ;;  %v5284_v2 = vor.u32 %v5718_v59, %v5281_v16 }
 0x4a9   : > { %v2368_v62 = vpop.f32.mrf.mxu2 }
 0x4aa   : > { %v2457_v58 = vpop.f32.mrf.mxu3  ;;  %v2369_v22 = vadd.f32 %v2368_v62, %v6904_v30  ;;  %3516 = vmatpush.bf16.msra.mxu0 %v5284_v2  ;;  %v5433_v2 = vld [vmem:[#allocation6 + $0x1c8] sm:$0xf0] }
 0x4ac   : > { %v2458_v33 = vadd.f32 %v2457_v58, %v2369_v22 }
 0x4ad   : > { %v3086_v3 = vpop.f32.mrf.mxu1  ;;  %v3175_v46 = vpop.f32.mrf.mxu0 }
 0x4ae   : > { %v3087_v41 = vadd.f32 %v3086_v3, %v7012_v15  ;;  %v2573_v62 = vmax.f32 %v2458_v33, 0.0  ;;  %v7813_v3 = vld [vmem:[#allocation19_spill] sm:$0xff] }
 0x4b0   : > { %v7055_v34 = vadd.f32 %v3175_v46, %v3087_v41  ;;  %v5740_v46 = vld [vmem:[#allocation6 + $0x144] sm:$0xf]  ;;  %v5369_v41 = vld [vmem:[#allocation6 + $0x148] sm:$0xf0] }
 0x4b1   : > { %v2370_v29 = vpop.f32.mrf.mxu2  ;;  %v5372_v16 = vor.u32 %v5740_v46, %v5369_v41 }
 0x4b2   : > { %v2459_v26 = vpop.f32.mrf.mxu3  ;;  %v2371_v50 = vadd.f32 %v2370_v29, %v6904_v30  ;;  %v5756_v29 = vld [vmem:[#allocation6 + $0x1c4] sm:$0xf] }
 0x4b3   : > { %3602 = vmatpush.bf16.msra.mxu2 %v5372_v16  ;;  %v5209_v16 = vld [vmem:[#allocation6 + $0x8] sm:$0xf0] }
 0x4b4   : > { %v2460_v11 = vadd.f32 %v2459_v26, %v2371_v50 }
 0x4b5   : > { %v3089_v10 = vpop.f32.mrf.mxu1  ;;  %v3178_v4 = vpop.f32.mrf.mxu0 }
 0x4b6   : > { %v2577_v20 = vmax.f32 %v2460_v11, 0.0  ;;  %v3090_v58 = vadd.f32 %v3089_v10, %v7012_v15  ;;  %3271 = vmatmul.bf16.gmra.mxu2 %v6874_v14  ;;  %v5436_v11 = vor.u32 %v5756_v29, %v5433_v2 }
 0x4b7   : > { %3360 = vmatmul.bf16.gmra.mxu3 %v6968_v45 }
 0x4b8   : > { %v7061_v22 = vadd.f32 %v3178_v4, %v3090_v58  ;;  %3128 = vmatmul.bf16.gmra.mxu1 %v7813_v3  ;;  %3217 = vmatmul.bf16.gmra.mxu0 %v6857_v5  ;;  %v7065_v26 = vpack.c.bf16 %v2577_v20, %v2573_v62 }
 0x4b9   : > { %v2373_v59 = vpop.f32.mrf.mxu2  ;;  %3691 = vmatpush.bf16.msra.mxu3 %v5436_v11 }
 0x4ba   : > { %v2462_v33 = vpop.f32.mrf.mxu3  ;;  %v2374_v50 = vadd.f32 %v2373_v59, %v6904_v30 }
 0x4bc   : > { %v2463_v10 = vadd.f32 %v2462_v33, %v2374_v50  ;;  %v7814_v33 = vld [vmem:[#allocation21_spill] sm:$0xff] }
 0x4bd   : > { %v3091_v4 = vpop.f32.mrf.mxu1  ;;  %v3180_v58 = vpop.f32.mrf.mxu0 }
 0x4be   : > { %v3092_v3 = vadd.f32 %v3091_v4, %v7012_v15  ;;  %v2581_v41 = vmax.f32 %v2463_v10, 0.0 }
 0x4c0   : > { %v7069_v5 = vadd.f32 %v3180_v58, %v3092_v3  ;;  %v5700_v3 = vld [vmem:[#allocation6 + $0x4] sm:$0xf] }
 0x4c1   : > { %v2375_v45 = vpop.f32.mrf.mxu2  ;;  %v5212_v50 = vor.u32 %v5700_v3, %v5209_v16 }
 0x4c2   : > { %v2464_v14 = vpop.f32.mrf.mxu3  ;;  %v2376_v62 = vadd.f32 %v2375_v45, %v6904_v30 }
 0x4c3   : > { %3428 = vmatpush.bf16.msra.mxu1 %v5212_v50 }
 0x4c4   : > { %v2465_v20 = vadd.f32 %v2464_v14, %v2376_v62  ;;  %v5716_v62 = vld [vmem:[#allocation6 + $0x84] sm:$0xf] }
 0x4c5   : > { %v3094_v12 = vpop.f32.mrf.mxu1  ;;  %v3183_v46 = vpop.f32.mrf.mxu0 }
 0x4c6   : > { %v2585_v53 = vmax.f32 %v2465_v20, 0.0  ;;  %v3095_v29 = vadd.f32 %v3094_v12, %v7012_v15  ;;  %3276 = vmatmul.bf16.gmra.mxu2 %v6886_v44  ;;  %v5273_v20 = vld [vmem:[#allocation6 + $0x88] sm:$0xf0] }
 0x4c7   : > { %3365 = vmatmul.bf16.gmra.mxu3 %v6980_v47 }
 0x4c8   : > { %v7075_v59 = vadd.f32 %v3183_v46, %v3095_v29  ;;  %3133 = vmatmul.bf16.gmra.mxu1 %v7814_v33  ;;  %3222 = vmatmul.bf16.gmra.mxu0 %v6869_v21  ;;  %v7079_v45 = vpack.c.bf16 %v2585_v53, %v2581_v41  ;;  %v5276_v46 = vor.u32 %v5716_v62, %v5273_v20 }
 0x4c9   : > { %v2378_v14 = vpop.f32.mrf.mxu2 }
 0x4ca   : > { %v2467_v2 = vpop.f32.mrf.mxu3  ;;  %v2379_v11 = vadd.f32 %v2378_v14, %v6904_v30  ;;  %3517 = vmatpush.bf16.msra.mxu0 %v5276_v46  ;;  %v5425_v46 = vld [vmem:[#allocation6 + $0x1b8] sm:$0xf0] }
 0x4cc   : > { %v2468_v12 = vadd.f32 %v2467_v2, %v2379_v11 }
 0x4cd   : > { %v3096_v10 = vpop.f32.mrf.mxu1  ;;  %v3185_v4 = vpop.f32.mrf.mxu0 }
 0x4ce   : > { %v3097_v58 = vadd.f32 %v3096_v10, %v7012_v15  ;;  %v2589_v14 = vmax.f32 %v2468_v12, 0.0  ;;  %v7815_v10 = vld [vmem:[#allocation23_spill] sm:$0xff] }
 0x4d0   : > { %v7083_v29 = vadd.f32 %v3185_v4, %v3097_v58  ;;  %v5738_v4 = vld [vmem:[#allocation6 + $0x134] sm:$0xf]  ;;  %v5361_v58 = vld [vmem:[#allocation6 + $0x138] sm:$0xf0] }
 0x4d1   : > { %v2380_v21 = vpop.f32.mrf.mxu2  ;;  %v5364_v20 = vor.u32 %v5738_v4, %v5361_v58 }
 0x4d2   : > { %v2469_v33 = vpop.f32.mrf.mxu3  ;;  %v2381_v53 = vadd.f32 %v2380_v21, %v6904_v30  ;;  %v5754_v21 = vld [vmem:[#allocation6 + $0x1b4] sm:$0xf] }
 0x4d3   : > { %3603 = vmatpush.bf16.msra.mxu2 %v5364_v20 }
 0x4d4   : > { %v2470_v41 = vadd.f32 %v2469_v33, %v2381_v53 }
 0x4d5   : > { %v3099_v3 = vpop.f32.mrf.mxu1  ;;  %v3188_v16 = vpop.f32.mrf.mxu0 }
 0x4d6   : > { %v2593_v50 = vmax.f32 %v2470_v41, 0.0  ;;  %v3100_v2 = vadd.f32 %v3099_v3, %v7012_v15  ;;  %3281 = vmatmul.bf16.gmra.mxu2 %v6898_v17  ;;  %v5428_v41 = vor.u32 %v5754_v21, %v5425_v46 }
 0x4d7   : > { %3370 = vmatmul.bf16.gmra.mxu3 %v6992_v60 }
 0x4d8   : > { %v7089_v11 = vadd.f32 %v3188_v16, %v3100_v2  ;;  %3138 = vmatmul.bf16.gmra.mxu1 %v7815_v10  ;;  %3227 = vmatmul.bf16.gmra.mxu0 %v6881_v28  ;;  %v7093_v33 = vpack.c.bf16 %v2593_v50, %v2589_v14 }
 0x4d9   : > { %v2383_v62 = vpop.f32.mrf.mxu2  ;;  %3692 = vmatpush.bf16.msra.mxu3 %v5428_v41 }
 0x4da   : > { %v2472_v12 = vpop.f32.mrf.mxu3  ;;  %v2384_v53 = vadd.f32 %v2383_v62, %v6904_v30 }
 0x4dc   : > { %v2473_v3 = vadd.f32 %v2472_v12, %v2384_v53 }
 0x4dd   : > { %v3101_v16 = vpop.f32.mrf.mxu1  ;;  %v3190_v2 = vpop.f32.mrf.mxu0 }
 0x4de   : > { %v3102_v10 = vadd.f32 %v3101_v16, %v7012_v15  ;;  %v2597_v58 = vmax.f32 %v2473_v3, 0.0  ;;  %v5779_v3 = vld [vmem:[#allocation7 + $0x78] sm:$0xff] }
 0x4df   : > { %4091 = vmatpush.bf16.msrb.mxu0 %v5779_v3 }
 0x4e0   : > { %v7097_v28 = vadd.f32 %v3190_v2, %v3102_v10  ;;  %v5771_v10 = vld [vmem:[#allocation7 + $0x38] sm:$0xff] }
 0x4e1   : > { %v2385_v60 = vpop.f32.mrf.mxu2  ;;  %4002 = vmatpush.bf16.msrb.mxu1 %v5771_v10 }
 0x4e2   : > { %v2474_v17 = vpop.f32.mrf.mxu3  ;;  %v2386_v14 = vadd.f32 %v2385_v60, %v6904_v30 }
 0x4e4   : > { %v2475_v50 = vadd.f32 %v2474_v17, %v2386_v14 }
 0x4e5   : > { %v3104_v47 = vpop.f32.mrf.mxu1  ;;  %v3193_v4 = vpop.f32.mrf.mxu0 }
 0x4e6   : > { %v2601_v44 = vmax.f32 %v2475_v50, 0.0  ;;  %v3105_v21 = vadd.f32 %v3104_v47, %v7012_v15  ;;  %3286 = vmatmul.bf16.gmra.mxu2 %v6913_v9 }
 0x4e7   : > { %3375 = vmatmul.bf16.gmra.mxu3 %v7004_v8 }
 0x4e8   : > { %v7103_v62 = vadd.f32 %v3193_v4, %v3105_v21  ;;  %3143 = vmatmul.bf16.gmra.mxu1 %v6797_v55  ;;  %3232 = vmatmul.bf16.gmra.mxu0 %v6893_v6  ;;  %v7107_v12 = vpack.c.bf16 %v2601_v44, %v2597_v58 }
 0x4e9   : > { %v2388_v17 = vpop.f32.mrf.mxu2 }
 0x4ea   : > { %v2477_v60 = vpop.f32.mrf.mxu3  ;;  %v2389_v20 = vadd.f32 %v2388_v17, %v6904_v30 }
 0x4ec   : > { %v2478_v46 = vadd.f32 %v2477_v60, %v2389_v20  ;;  %v7816_v60 = vld [vmem:[#allocation27_spill] sm:$0xff]  ;;  %v5736_v20 = vld [vmem:[#allocation6 + $0x124] sm:$0xf] }
 0x4ed   : > { %v3106_v47 = vpop.f32.mrf.mxu1  ;;  %v3195_v53 = vpop.f32.mrf.mxu0 }
 0x4ee   : > { %v3107_v41 = vadd.f32 %v3106_v47, %v7012_v15  ;;  %v2605_v21 = vmax.f32 %v2478_v46, 0.0  ;;  %v5353_v47 = vld [vmem:[#allocation6 + $0x128] sm:$0xf0] }
 0x4ef   : > { %v5356_v3 = vor.u32 %v5736_v20, %v5353_v47 }
 0x4f0   : > { %v7111_v16 = vadd.f32 %v3195_v53, %v3107_v41 }
 0x4f1   : > { %v2390_v2 = vpop.f32.mrf.mxu2  ;;  %3604 = vmatpush.bf16.msra.mxu2 %v5356_v3 }
 0x4f2   : > { %v2479_v14 = vpop.f32.mrf.mxu3  ;;  %v2391_v50 = vadd.f32 %v2390_v2, %v6904_v30  ;;  %v5752_v30 = vld [vmem:[#allocation6 + $0x1a4] sm:$0xf]  ;;  %v5417_v2 = vld [vmem:[#allocation6 + $0x1a8] sm:$0xf0] }
 0x4f4   : > { %v2480_v44 = vadd.f32 %v2479_v14, %v2391_v50  ;;  %v5420_v50 = vor.u32 %v5752_v30, %v5417_v2 }
 0x4f5   : > { %v3109_v4 = vpop.f32.mrf.mxu1  ;;  %v3198_v58 = vpop.f32.mrf.mxu0 }
 0x4f6   : > { %v2609_v6 = vmax.f32 %v2480_v44, 0.0  ;;  %v3110_v10 = vadd.f32 %v3109_v4, %v7012_v15  ;;  %3291 = vmatmul.bf16.gmra.mxu2 %v6925_v31  ;;  %3693 = vmatpush.bf16.msra.mxu3 %v5420_v50  ;;  %v5778_v50 = vld [vmem:[#allocation7 + $0x70] sm:$0xff] }
 0x4f7   : > { %3380 = vmatmul.bf16.gmra.mxu3 %v7023_v42  ;;  %4092 = vmatpush.bf16.msrb.mxu0 %v5778_v50 }
 0x4f8   : > { %v7117_v17 = vadd.f32 %v3198_v58, %v3110_v10  ;;  %3148 = vmatmul.bf16.gmra.mxu1 %v7816_v60  ;;  %3237 = vmatmul.bf16.gmra.mxu0 %v6908_v32  ;;  %v7121_v53 = vpack.c.bf16 %v2609_v6, %v2605_v21 }
 0x4f9   : > { %v3252_v41 = vpop.f32.mrf.mxu2 }
 0x4fa   : > { %v3341_v46 = vpop.f32.mrf.mxu3  ;;  %v3253_v14 = vadd.f32 %v3252_v41, %v7019_v13 }
 0x4fc   : > { %v3342_v44 = vadd.f32 %v3341_v46, %v3253_v14 }
 0x4fd   : > { %v3111_v4 = vpop.f32.mrf.mxu1  ;;  %v3200_v58 = vpop.f32.mrf.mxu0 }
 0x4fe   : > { %v3112_v10 = vadd.f32 %v3111_v4, %v7012_v15  ;;  %v3777_v47 = vmax.f32 %v3342_v44, 0.0 }
 0x500   : > { %v7125_v32 = vadd.f32 %v3200_v58, %v3112_v10 }
 0x501   : > { %v3254_v60 = vpop.f32.mrf.mxu2 }
 0x502   : > { %v3343_v42 = vpop.f32.mrf.mxu3  ;;  %v3255_v6 = vadd.f32 %v3254_v60, %v7027_v43  ;;  %v5770_v43 = vld [vmem:[#allocation7 + $0x30] sm:$0xff] }
 0x503   : > { %4003 = vmatpush.bf16.msrb.mxu1 %v5770_v43 }
 0x504   : > { %v3344_v21 = vadd.f32 %v3343_v42, %v3255_v6 }
 0x505   : > { %v3114_v31 = vpop.f32.mrf.mxu1  ;;  %v3203_v20 = vpop.f32.mrf.mxu0 }
 0x506   : > { %v3779_v55 = vmax.f32 %v3344_v21, 0.0  ;;  %v3115_v13 = vadd.f32 %v3114_v31, %v7012_v15  ;;  %3296 = vmatmul.bf16.gmra.mxu2 %v6937_v37 }
 0x507   : > { %3385 = vmatmul.bf16.gmra.mxu3 %v7037_v36 }
 0x508   : > { %v7131_v30 = vpack.c.bf16 %v3779_v55, %v3777_v47  ;;  %v7133_v41 = vadd.f32 %v3203_v20, %v3115_v13  ;;  %3429 = vmatmul.bf16.vlgmr.msra.gmra.mxu1 %v6600_v7  ;;  %3518 = vmatmul.bf16.vlgmr.msra.gmra.mxu0 %v6718_v24  ;;  %v5734_v47 = vld [vmem:[#allocation6 + $0x114] sm:$0xf]  ;;  %v5345_v13 = vld [vmem:[#allocation6 + $0x118] sm:$0xf0] }
 0x509   : > { %v3257_v42 = vpop.f32.mrf.mxu2 }
 0x50a   : > { %v3346_v60 = vpop.f32.mrf.mxu3  ;;  %v3258_v46 = vadd.f32 %v3257_v42, %v7033_v49 }
 0x50c   : > { %v3347_v3 = vadd.f32 %v3346_v60, %v3258_v46  ;;  %v5348_v46 = vor.u32 %v5734_v47, %v5345_v13  ;;  %v5769_v13 = vld [vmem:[#allocation7 + $0x28] sm:$0xff] }
 0x50d   : > { %v3116_v31 = vpop.f32.mrf.mxu1  ;;  %v3205_v2 = vpop.f32.mrf.mxu0  ;;  %4004 = vmatpush.bf16.msrb.mxu1 %v5769_v13 }
 0x50e   : > { %v3117_v14 = vadd.f32 %v3116_v31, %v7012_v15  ;;  %v3781_v6 = vmax.f32 %v3347_v3, 0.0  ;;  %v5409_v3 = vld [vmem:[#allocation6 + $0x198] sm:$0xf0]  ;;  %3605 = vmatpush.bf16.msra.mxu2 %v5348_v46 }
 0x510   : > { %v7139_v55 = vadd.f32 %v3205_v2, %v3117_v14 }
 0x511   : > { %v3259_v44 = vpop.f32.mrf.mxu2 }
 0x512   : > { %v3348_v4 = vpop.f32.mrf.mxu3  ;;  %v3260_v7 = vadd.f32 %v3259_v44, %v7041_v39  ;;  %v5750_v39 = vld [vmem:[#allocation6 + $0x194] sm:$0xf] }
 0x513   : > { %v5412_v2 = vor.u32 %v5750_v39, %v5409_v3 }
 0x514   : > { %v3349_v24 = vadd.f32 %v3348_v4, %v3260_v7 }
 0x515   : > { %v3119_v58 = vpop.f32.mrf.mxu1  ;;  %v3208_v10 = vpop.f32.mrf.mxu0  ;;  %3694 = vmatpush.bf16.msra.mxu3 %v5412_v2 }
 0x516   : > { %v3783_v21 = vmax.f32 %v3349_v24, 0.0  ;;  %v3120_v49 = vadd.f32 %v3119_v58, %v7012_v15  ;;  %3301 = vmatmul.bf16.gmra.mxu2 %v6949_v35 }
 0x517   : > { %3390 = vmatmul.bf16.gmra.mxu3 %v7051_v27 }
 0x518   : > { %v7145_v20 = vadd.f32 %v3208_v10, %v3120_v49  ;;  %3434 = vmatmul.bf16.gmra.mxu1 %v6616_v61  ;;  %3523 = vmatmul.bf16.gmra.mxu0 %v6732_v25  ;;  %v7149_v43 = vpack.c.bf16 %v3783_v21, %v3781_v6 }
 0x519   : > { %v3262_v42 = vpop.f32.mrf.mxu2 }
 0x51a   : > { %v3351_v60 = vpop.f32.mrf.mxu3  ;;  %v3263_v31 = vadd.f32 %v3262_v42, %v7047_v0 }
 0x51c   : > { %v3352_v14 = vadd.f32 %v3351_v60, %v3263_v31 }
 0x51d   : > { %v3121_v50 = vpop.f32.mrf.mxu1  ;;  %v3210_v44 = vpop.f32.mrf.mxu0 }
 0x51e   : > { %v3122_v61 = vadd.f32 %v3121_v50, %v7012_v15  ;;  %v3785_v21 = vmax.f32 %v3352_v14, 0.0  ;;  %v5777_v14 = vld [vmem:[#allocation7 + $0x68] sm:$0xff] }
 0x51f   : > { %4093 = vmatpush.bf16.msrb.mxu0 %v5777_v14 }
 0x520   : > { %v7153_v25 = vadd.f32 %v3210_v44, %v3122_v61 }
 0x521   : > { %v3264_v4 = vpop.f32.mrf.mxu2 }
 0x522   : > { %v3353_v7 = vpop.f32.mrf.mxu3  ;;  %v3265_v24 = vadd.f32 %v3264_v4, %v7055_v34 }
 0x524   : > { %v3354_v58 = vadd.f32 %v3353_v7, %v3265_v24 }
 0x525   : > { %v3124_v10 = vpop.f32.mrf.mxu1  ;;  %v3213_v6 = vpop.f32.mrf.mxu0 }
 0x526   : > { %v3787_v49 = vmax.f32 %v3354_v58, 0.0  ;;  %v3125_v0 = vadd.f32 %v3124_v10, %v7012_v15  ;;  %3306 = vmatmul.bf16.gmra.mxu2 %v6961_v48 }
 0x527   : > { %3395 = vmatmul.bf16.gmra.mxu3 %v7065_v26 }
 0x528   : > { %v7159_v47 = vadd.f32 %v3213_v6, %v3125_v0  ;;  %3439 = vmatmul.bf16.gmra.mxu1 %v6632_v51  ;;  %3528 = vmatmul.bf16.gmra.mxu0 %v6744_v19  ;;  %v7163_v39 = vpack.c.bf16 %v3787_v49, %v3785_v21  ;;  %v5732_v6 = vld [vmem:[#allocation6 + $0x104] sm:$0xf]  ;;  %v5337_v21 = vld [vmem:[#allocation6 + $0x108] sm:$0xf0] }
 0x529   : > { %v3267_v34 = vpop.f32.mrf.mxu2 }
 0x52a   : > { %v3356_v42 = vpop.f32.mrf.mxu3  ;;  %v3268_v60 = vadd.f32 %v3267_v34, %v7061_v22  ;;  %v5340_v34 = vor.u32 %v5732_v6, %v5337_v21 }
 0x52c   : > { %v3357_v46 = vadd.f32 %v3356_v42, %v3268_v60  ;;  %v5401_v42 = vld [vmem:[#allocation6 + $0x188] sm:$0xf0]  ;;  %3606 = vmatpush.bf16.msra.mxu2 %v5340_v34 }
 0x52d   : > { %v3126_v3 = vpop.f32.mrf.mxu1  ;;  %v3215_v31 = vpop.f32.mrf.mxu0 }
 0x52e   : > { %v3127_v2 = vadd.f32 %v3126_v3, %v7012_v15  ;;  %v3789_v24 = vmax.f32 %v3357_v46, 0.0 }
 0x530   : > { %v7167_v50 = vadd.f32 %v3215_v31, %v3127_v2 }
 0x531   : > { %v3269_v51 = vpop.f32.mrf.mxu2 }
 0x532   : > { %v3358_v44 = vpop.f32.mrf.mxu3  ;;  %v3270_v19 = vadd.f32 %v3269_v51, %v7069_v5  ;;  %v5748_v5 = vld [vmem:[#allocation6 + $0x184] sm:$0xf] }
 0x533   : > { %v5404_v46 = vor.u32 %v5748_v5, %v5401_v42 }
 0x534   : > { %v3359_v61 = vadd.f32 %v3358_v44, %v3270_v19 }
 0x535   : > { %v3129_v4 = vpop.f32.mrf.mxu1  ;;  %v3218_v7 = vpop.f32.mrf.mxu0  ;;  %3695 = vmatpush.bf16.msra.mxu3 %v5404_v46 }
 0x536   : > { %v3791_v58 = vmax.f32 %v3359_v61, 0.0  ;;  %v3130_v22 = vadd.f32 %v3129_v4, %v7012_v15  ;;  %3311 = vmatmul.bf16.gmra.mxu2 %v6973_v23 }
 0x537   : > { %3400 = vmatmul.bf16.gmra.mxu3 %v7079_v45 }
 0x538   : > { %v7173_v10 = vadd.f32 %v3218_v7, %v3130_v22  ;;  %3444 = vmatmul.bf16.gmra.mxu1 %v6648_v40  ;;  %3533 = vmatmul.bf16.gmra.mxu0 %v6756_v63  ;;  %v7177_v49 = vpack.c.bf16 %v3791_v58, %v3789_v24  ;;  %v5768_v22 = vld [vmem:[#allocation7 + $0x20] sm:$0xff] }
 0x539   : > { %v3272_v0 = vpop.f32.mrf.mxu2  ;;  %4005 = vmatpush.bf16.msrb.mxu1 %v5768_v22 }
 0x53a   : > { %v3361_v13 = vpop.f32.mrf.mxu3  ;;  %v3273_v60 = vadd.f32 %v3272_v0, %v7075_v59 }
 0x53c   : > { %v3362_v3 = vadd.f32 %v3361_v13, %v3273_v60  ;;  %v5776_v60 = vld [vmem:[#allocation7 + $0x60] sm:$0xff] }
 0x53d   : > { %v3131_v31 = vpop.f32.mrf.mxu1  ;;  %v3220_v2 = vpop.f32.mrf.mxu0  ;;  %4094 = vmatpush.bf16.msrb.mxu0 %v5776_v60 }
 0x53e   : > { %v3132_v40 = vadd.f32 %v3131_v31, %v7012_v15  ;;  %v3793_v7 = vmax.f32 %v3362_v3, 0.0 }
 0x540   : > { %v7181_v63 = vadd.f32 %v3220_v2, %v3132_v40 }
 0x541   : > { %v3274_v14 = vpop.f32.mrf.mxu2 }
 0x542   : > { %v3363_v51 = vpop.f32.mrf.mxu3  ;;  %v3275_v44 = vadd.f32 %v3274_v14, %v7083_v29 }
 0x544   : > { %v3364_v19 = vadd.f32 %v3363_v51, %v3275_v44 }
 0x545   : > { %v3134_v61 = vpop.f32.mrf.mxu1  ;;  %v3223_v4 = vpop.f32.mrf.mxu0 }
 0x546   : > { %v3795_v24 = vmax.f32 %v3364_v19, 0.0  ;;  %v3135_v59 = vadd.f32 %v3134_v61, %v7012_v15  ;;  %3316 = vmatmul.bf16.gmra.mxu2 %v6985_v18  ;;  %v7817_v19 = vld [vmem:[#allocation13_spill] sm:$0xff]  ;;  %v7818_v61 = vld [vmem:[#allocation22_spill] sm:$0xff] }
 0x547   : > { %3405 = vmatmul.bf16.gmra.mxu3 %v7093_v33 }
 0x548   : > { %v7187_v58 = vadd.f32 %v3223_v4, %v3135_v59  ;;  %3449 = vmatmul.bf16.gmra.mxu1 %v6664_v38  ;;  %3538 = vmatmul.bf16.gmra.mxu0 %v7799_v1  ;;  %v7191_v6 = vpack.c.bf16 %v3795_v24, %v3793_v7 }
 0x549   : > { %v3277_v29 = vpop.f32.mrf.mxu2 }
 0x54a   : > { %v3366_v21 = vpop.f32.mrf.mxu3  ;;  %v3278_v5 = vadd.f32 %v3277_v29, %v7089_v11 }
 0x54c   : > { %v3367_v0 = vadd.f32 %v3366_v21, %v3278_v5 }
 0x54d   : > { %v3136_v13 = vpop.f32.mrf.mxu1  ;;  %v3225_v34 = vpop.f32.mrf.mxu0 }
 0x54e   : > { %v3137_v42 = vadd.f32 %v3136_v13, %v7012_v15  ;;  %v3797_v14 = vmax.f32 %v3367_v0, 0.0 }
 0x550   : > { %v7195_v46 = vadd.f32 %v3225_v34, %v3137_v42 }
 0x551   : > { %v3279_v38 = vpop.f32.mrf.mxu2 }
 0x552   : > { %v3368_v3 = vpop.f32.mrf.mxu3  ;;  %v3280_v1 = vadd.f32 %v3279_v38, %v7097_v28 }
 0x554   : > { %v3369_v31 = vadd.f32 %v3368_v3, %v3280_v1 }
 0x555   : > { %v3139_v2 = vpop.f32.mrf.mxu1  ;;  %v3228_v40 = vpop.f32.mrf.mxu0 }
 0x556   : > { %v3799_v51 = vmax.f32 %v3369_v31, 0.0  ;;  %v3140_v11 = vadd.f32 %v3139_v2, %v7012_v15  ;;  %3321 = vmatmul.bf16.gmra.mxu2 %v6997_v56  ;;  %v7819_v2 = vld [vmem:[#allocation24_spill] sm:$0xff] }
 0x557   : > { %3410 = vmatmul.bf16.gmra.mxu3 %v7107_v12 }
 0x558   : > { %v7201_v44 = vadd.f32 %v3228_v40, %v3140_v11  ;;  %3454 = vmatmul.bf16.gmra.mxu1 %v7817_v19  ;;  %3543 = vmatmul.bf16.gmra.mxu0 %v7818_v61  ;;  %v7205_v4 = vpack.c.bf16 %v3799_v51, %v3797_v14  ;;  %v5767_v40 = vld [vmem:[#allocation7 + $0x18] sm:$0xff] }
 0x559   : > { %v3282_v28 = vpop.f32.mrf.mxu2  ;;  %4006 = vmatpush.bf16.msrb.mxu1 %v5767_v40 }
 0x55a   : > { %v3371_v7 = vpop.f32.mrf.mxu3  ;;  %v3283_v24 = vadd.f32 %v3282_v28, %v7103_v62 }
 0x55c   : > { %v3372_v59 = vadd.f32 %v3371_v7, %v3283_v24  ;;  %v5775_v24 = vld [vmem:[#allocation7 + $0x58] sm:$0xff] }
 0x55d   : > { %v3141_v22 = vpop.f32.mrf.mxu1  ;;  %v3230_v29 = vpop.f32.mrf.mxu0  ;;  %4095 = vmatpush.bf16.msrb.mxu0 %v5775_v24 }
 0x55e   : > { %v3142_v21 = vadd.f32 %v3141_v22, %v7012_v15  ;;  %v3801_v3 = vmax.f32 %v3372_v59, 0.0 }
 0x560   : > { %v7209_v5 = vadd.f32 %v3230_v29, %v3142_v21 }
 0x561   : > { %v3284_v0 = vpop.f32.mrf.mxu2 }
 0x562   : > { %v3373_v13 = vpop.f32.mrf.mxu3  ;;  %v3285_v34 = vadd.f32 %v3284_v0, %v7111_v16 }
 0x564   : > { %v3374_v42 = vadd.f32 %v3373_v13, %v3285_v34 }
 0x565   : > { %v3144_v60 = vpop.f32.mrf.mxu1  ;;  %v3233_v38 = vpop.f32.mrf.mxu0 }
 0x566   : > { %v3803_v1 = vmax.f32 %v3374_v42, 0.0  ;;  %v3145_v31 = vadd.f32 %v3144_v60, %v7012_v15  ;;  %3326 = vmatmul.bf16.gmra.mxu2 %v7014_v54  ;;  %v7820_v60 = vld [vmem:[#allocation42_spill] sm:$0xff] }
 0x567   : > { %3415 = vmatmul.bf16.gmra.mxu3 %v7121_v53 }
 0x568   : > { %v7215_v62 = vadd.f32 %v3233_v38, %v3145_v31  ;;  %3459 = vmatmul.bf16.gmra.mxu1 %v7804_v57  ;;  %3548 = vmatmul.bf16.gmra.mxu0 %v7819_v2  ;;  %v7219_v14 = vpack.c.bf16 %v3803_v1, %v3801_v3  ;;  %v7821_v3 = vld [vmem:[#allocation15_spill] sm:$0xff]  ;;  %v7822_v1 = vld [vmem:[#allocation26_spill] sm:$0xff] }
 0x569   : > { %v3287_v16 = vpop.f32.mrf.mxu2 }
 0x56a   : > { %v3376_v51 = vpop.f32.mrf.mxu3  ;;  %v3288_v11 = vadd.f32 %v3287_v16, %v7117_v17 }
 0x56c   : > { %v3377_v19 = vadd.f32 %v3376_v51, %v3288_v11 }
 0x56d   : > { %v3146_v61 = vpop.f32.mrf.mxu1  ;;  %v3235_v28 = vpop.f32.mrf.mxu0 }
 0x56e   : > { %v3147_v7 = vadd.f32 %v3146_v61, %v7012_v15  ;;  %v3805_v34 = vmax.f32 %v3377_v19, 0.0 }
 0x570   : > { %v7223_v59 = vadd.f32 %v3235_v28, %v3147_v7 }
 0x571   : > { %v3289_v57 = vpop.f32.mrf.mxu2 }
 0x572   : > { %v3378_v22 = vpop.f32.mrf.mxu3  ;;  %v3290_v29 = vadd.f32 %v3289_v57, %v7125_v32  ;;  %v5787_v32 = vld [vmem:[%s7708_s7 + $0x38] sm:$0xff] }
 0x573   : > { %4293 = vmatpush.bf16.msrb.mxu2 %v5787_v32  ;;  %v7823_v57 = vld [vmem:[#allocation48_spill] sm:$0xff] }
 0x574   : > { %v3379_v21 = vadd.f32 %v3378_v22, %v3290_v29  ;;  %v7244_v22 = vperm.slane %v7823_v57, 1 }
 0x575   : > { %v3149_v0 = vpop.f32.mrf.mxu1  ;;  %v3238_v13 = vpop.f32.mrf.mxu0 }
 0x576   : > { %v3807_v42 = vmax.f32 %v3379_v21, 0.0  ;;  %v3150_v17 = vadd.f32 %v3149_v0, %v7012_v15  ;;  %3607 = vmatmul.bf16.vlgmr.msra.gmra.mxu2 %v6826_v52 }
 0x577   : > { %3696 = vmatmul.bf16.vlgmr.msra.gmra.mxu3 %v7820_v60  ;;  %v7826_v60 = vld [vmem:[#allocation16_spill] sm:$0xff] }
 0x578   : > { %v7229_v38 = vadd.f32 %v3238_v13, %v3150_v17  ;;  %3464 = vmatmul.bf16.gmra.mxu1 %v7821_v3  ;;  %3553 = vmatmul.bf16.gmra.mxu0 %v7822_v1  ;;  %v7236_v31 = vpack.c.bf16 %v3807_v42, %v3805_v34  ;;  %v7824_v42 = vld [vmem:[#allocation30_spill] sm:$0xff]  ;;  %v7825_v17 = vld [vmem:[#allocation44_spill] sm:$0xff] }
 0x579   : > { %v3292_v2 = vpop.f32.mrf.mxu2  ;;  %v7827_v3 = vld [vmem:[#allocation28_spill] sm:$0xff] }
 0x57a   : > { %v3381_v40 = vpop.f32.mrf.mxu3  ;;  %v3293_v16 = vadd.f32 %v3292_v2, %v7133_v41 }
 0x57c   : > { %v3382_v52 = vadd.f32 %v3381_v40, %v3293_v16 }
 0x57d   : > { %v3151_v51 = vpop.f32.mrf.mxu1  ;;  %v3240_v11 = vpop.f32.mrf.mxu0 }
 0x57e   : > { %v3152_v19 = vadd.f32 %v3151_v51, %v7012_v15  ;;  %v3809_v13 = vmax.f32 %v3382_v52, 0.0 }
 0x580   : > { %v7240_v61 = vadd.f32 %v3240_v11, %v3152_v19  ;;  %v5774_v19 = vld [vmem:[#allocation7 + $0x50] sm:$0xff] }
 0x581   : > { %v3294_v28 = vpop.f32.mrf.mxu2  ;;  %4096 = vmatpush.bf16.msrb.mxu0 %v5774_v19 }
 0x582   : > { %v3383_v7 = vpop.f32.mrf.mxu3  ;;  %v3295_v24 = vadd.f32 %v3294_v28, %v7139_v55  ;;  %v5766_v55 = vld [vmem:[#allocation7 + $0x10] sm:$0xff] }
 0x583   : > { %4007 = vmatpush.bf16.msrb.mxu1 %v5766_v55 }
 0x584   : > { %v3384_v29 = vadd.f32 %v3383_v7, %v3295_v24 }
 0x585   : > { %v3430_v21 = vpop.f32.mrf.mxu1  ;;  %v3519_v0 = vpop.f32.mrf.mxu0 }
 0x586   : > { %v3811_v41 = vmax.f32 %v3384_v29, 0.0  ;;  %v3431_v34 = vadd.f32 %v3430_v21, %v7244_v22  ;;  %3612 = vmatmul.bf16.gmra.mxu2 %v7824_v42  ;;  %v7829_v42 = vld [vmem:[#allocation45_spill] sm:$0xff] }
 0x587   : > { %3701 = vmatmul.bf16.gmra.mxu3 %v7825_v17 }
 0x588   : > { %v7249_v15 = vadd.f32 %v3519_v0, %v3431_v34  ;;  %3469 = vmatmul.bf16.gmra.mxu1 %v7826_v60  ;;  %3558 = vmatmul.bf16.gmra.mxu0 %v7827_v3  ;;  %v7253_v1 = vpack.c.bf16 %v3811_v41, %v3809_v13  ;;  %v7828_v34 = vld [vmem:[#allocation32_spill] sm:$0xff]  ;;  %v7830_v60 = vld [vmem:[#allocation17_spill] sm:$0xff] }
 0x589   : > { %v3297_v32 = vpop.f32.mrf.mxu2  ;;  %v7831_v3 = vld [vmem:[#allocation29_spill] sm:$0xff] }
 0x58a   : > { %v3386_v2 = vpop.f32.mrf.mxu3  ;;  %v3298_v40 = vadd.f32 %v3297_v32, %v7145_v20 }
 0x58c   : > { %v3387_v16 = vadd.f32 %v3386_v2, %v3298_v40 }
 0x58d   : > { %v3432_v52 = vpop.f32.mrf.mxu1  ;;  %v3521_v51 = vpop.f32.mrf.mxu0 }
 0x58e   : > { %v3433_v11 = vadd.f32 %v3432_v52, %v7244_v22  ;;  %v3813_v13 = vmax.f32 %v3387_v16, 0.0 }
 0x590   : > { %v7257_v28 = vadd.f32 %v3521_v51, %v3433_v11 }
 0x591   : > { %v3299_v7 = vpop.f32.mrf.mxu2 }
 0x592   : > { %v3388_v24 = vpop.f32.mrf.mxu3  ;;  %v3300_v57 = vadd.f32 %v3299_v7, %v7153_v25  ;;  %v5786_v25 = vld [vmem:[%s7708_s7 + $0x30] sm:$0xff] }
 0x593   : > { %4294 = vmatpush.bf16.msrb.mxu2 %v5786_v25  ;;  %v5765_v25 = vld [vmem:[#allocation7 + $0x8] sm:$0xff] }
 0x594   : > { %v3389_v29 = vadd.f32 %v3388_v24, %v3300_v57  ;;  %4008 = vmatpush.bf16.msrb.mxu1 %v5765_v25  ;;  %v7838_v25 = vld [vmem:[#allocation19_spill] sm:$0xff] }
 0x595   : > { %v3435_v21 = vpop.f32.mrf.mxu1  ;;  %v3524_v0 = vpop.f32.mrf.mxu0 }
 0x596   : > { %v3815_v41 = vmax.f32 %v3389_v29, 0.0  ;;  %v3436_v20 = vadd.f32 %v3435_v21, %v7244_v22  ;;  %3617 = vmatmul.bf16.gmra.mxu2 %v7828_v34  ;;  %v7833_v34 = vld [vmem:[#allocation46_spill] sm:$0xff] }
 0x597   : > { %3706 = vmatmul.bf16.gmra.mxu3 %v7829_v42 }
 0x598   : > { %v7263_v17 = vadd.f32 %v3524_v0, %v3436_v20  ;;  %3474 = vmatmul.bf16.gmra.mxu1 %v7830_v60  ;;  %3563 = vmatmul.bf16.gmra.mxu0 %v7831_v3  ;;  %v7270_v55 = vpack.c.bf16 %v3815_v41, %v3813_v13  ;;  %v7834_v60 = vld [vmem:[#allocation18_spill] sm:$0xff]  ;;  %v7835_v3 = vld [vmem:[#allocation31_spill] sm:$0xff] }
 0x599   : > { %v3302_v32 = vpop.f32.mrf.mxu2 }
 0x59a   : > { %v3391_v2 = vpop.f32.mrf.mxu3  ;;  %v3303_v40 = vadd.f32 %v3302_v32, %v7159_v47  ;;  %v7832_v47 = vld [vmem:[#allocation34_spill] sm:$0xff] }
 0x59c   : > { %v3392_v16 = vadd.f32 %v3391_v2, %v3303_v40 }
 0x59d   : > { %v3437_v52 = vpop.f32.mrf.mxu1  ;;  %v3526_v51 = vpop.f32.mrf.mxu0 }
 0x59e   : > { %v3438_v11 = vadd.f32 %v3437_v52, %v7244_v22  ;;  %v3817_v13 = vmax.f32 %v3392_v16, 0.0 }
 0x5a0   : > { %v7274_v19 = vadd.f32 %v3526_v51, %v3438_v11 }
 0x5a1   : > { %v3304_v7 = vpop.f32.mrf.mxu2 }
 0x5a2   : > { %v3393_v24 = vpop.f32.mrf.mxu3  ;;  %v3305_v57 = vadd.f32 %v3304_v7, %v7167_v50  ;;  %v5773_v7 = vld [vmem:[#allocation7 + $0x48] sm:$0xff] }
 0x5a3   : > { %4097 = vmatpush.bf16.msrb.mxu0 %v5773_v7 }
 0x5a4   : > { %v3394_v29 = vadd.f32 %v3393_v24, %v3305_v57 }
 0x5a5   : > { %v3440_v21 = vpop.f32.mrf.mxu1  ;;  %v3529_v0 = vpop.f32.mrf.mxu0 }
 0x5a6   : > { %v3819_v41 = vmax.f32 %v3394_v29, 0.0  ;;  %v3441_v20 = vadd.f32 %v3440_v21, %v7244_v22  ;;  %3622 = vmatmul.bf16.gmra.mxu2 %v7832_v47 }
 0x5a7   : > { %3711 = vmatmul.bf16.gmra.mxu3 %v7833_v34  ;;  %v7836_v34 = vld [vmem:[#allocation36_spill] sm:$0xff] }
 0x5a8   : > { %v7280_v42 = vadd.f32 %v3529_v0, %v3441_v20  ;;  %3479 = vmatmul.bf16.gmra.mxu1 %v7834_v60  ;;  %3568 = vmatmul.bf16.gmra.mxu0 %v7835_v3  ;;  %v7284_v32 = vpack.c.bf16 %v3819_v41, %v3817_v13  ;;  %v7837_v60 = vld [vmem:[#allocation20_spill] sm:$0xff] }
 0x5a9   : > { %v3307_v50 = vpop.f32.mrf.mxu2 }
 0x5aa   : > { %v3396_v2 = vpop.f32.mrf.mxu3  ;;  %v3308_v40 = vadd.f32 %v3307_v50, %v7173_v10  ;;  %v7839_v50 = vld [vmem:[#allocation33_spill] sm:$0xff] }
 0x5ac   : > { %v3397_v16 = vadd.f32 %v3396_v2, %v3308_v40 }
 0x5ad   : > { %v3442_v52 = vpop.f32.mrf.mxu1  ;;  %v3531_v51 = vpop.f32.mrf.mxu0 }
 0x5ae   : > { %v3443_v11 = vadd.f32 %v3442_v52, %v7244_v22  ;;  %v3821_v20 = vmax.f32 %v3397_v16, 0.0 }
 0x5b0   : > { %v7288_v24 = vadd.f32 %v3531_v51, %v3443_v11 }
 0x5b1   : > { %v3309_v57 = vpop.f32.mrf.mxu2 }
 0x5b2   : > { %v3398_v29 = vpop.f32.mrf.mxu3  ;;  %v3310_v21 = vadd.f32 %v3309_v57, %v7181_v63  ;;  %v5785_v63 = vld [vmem:[%s7708_s7 + $0x28] sm:$0xff] }
 0x5b3   : > { %4295 = vmatpush.bf16.msrb.mxu2 %v5785_v63  ;;  %v7842_v63 = vld [vmem:[#allocation21_spill] sm:$0xff] }
 0x5b4   : > { %v3399_v0 = vadd.f32 %v3398_v29, %v3310_v21 }
 0x5b5   : > { %v3445_v13 = vpop.f32.mrf.mxu1  ;;  %v3534_v41 = vpop.f32.mrf.mxu0 }
 0x5b6   : > { %v3823_v47 = vmax.f32 %v3399_v0, 0.0  ;;  %v3446_v10 = vadd.f32 %v3445_v13, %v7244_v22  ;;  %3627 = vmatmul.bf16.gmra.mxu2 %v7836_v34 }
 0x5b7   : > { %3716 = vmatmul.bf16.gmra.mxu3 %v7837_v60 }
 0x5b8   : > { %v7294_v3 = vadd.f32 %v3534_v41, %v3446_v10  ;;  %3484 = vmatmul.bf16.gmra.mxu1 %v7838_v25  ;;  %3573 = vmatmul.bf16.gmra.mxu0 %v7839_v50  ;;  %v7301_v2 = vpack.c.bf16 %v3823_v47, %v3821_v20  ;;  %v7841_v25 = vld [vmem:[#allocation47_spill] sm:$0xff] }
 0x5b9   : > { %v3312_v40 = vpop.f32.mrf.mxu2 }
 0x5ba   : > { %v3401_v16 = vpop.f32.mrf.mxu3  ;;  %v3313_v52 = vadd.f32 %v3312_v40, %v7187_v58  ;;  %v7840_v58 = vld [vmem:[#allocation38_spill] sm:$0xff]  ;;  %v7843_v40 = vld [vmem:[#allocation35_spill] sm:$0xff] }
 0x5bc   : > { %v3402_v51 = vadd.f32 %v3401_v16, %v3313_v52  ;;  %v5764_v16 = vld [vmem:[#allocation7] sm:$0xff] }
 0x5bd   : > { %v3447_v11 = vpop.f32.mrf.mxu1  ;;  %v3536_v7 = vpop.f32.mrf.mxu0  ;;  %4009 = vmatpush.bf16.msrb.mxu1 %v5764_v16  ;;  %v7845_v16 = vld [vmem:[#allocation14_spill] sm:$0xff] }
 0x5be   : > { %v3448_v57 = vadd.f32 %v3447_v11, %v7244_v22  ;;  %v3825_v47 = vmax.f32 %v3402_v51, 0.0 }
 0x5c0   : > { %v7305_v29 = vadd.f32 %v3536_v7, %v3448_v57 }
 0x5c1   : > { %v3314_v21 = vpop.f32.mrf.mxu2 }
 0x5c2   : > { %v3403_v0 = vpop.f32.mrf.mxu3  ;;  %v3315_v13 = vadd.f32 %v3314_v21, %v7195_v46 }
 0x5c4   : > { %v3404_v41 = vadd.f32 %v3403_v0, %v3315_v13  ;;  %v5772_v13 = vld [vmem:[#allocation7 + $0x40] sm:$0xff] }
 0x5c5   : > { %v3450_v10 = vpop.f32.mrf.mxu1  ;;  %v3539_v20 = vpop.f32.mrf.mxu0  ;;  %4098 = vmatpush.bf16.msrb.mxu0 %v5772_v13 }
 0x5c6   : > { %v3827_v34 = vmax.f32 %v3404_v41, 0.0  ;;  %v3451_v60 = vadd.f32 %v3450_v10, %v7244_v22  ;;  %3632 = vmatmul.bf16.gmra.mxu2 %v7840_v58 }
 0x5c7   : > { %3721 = vmatmul.bf16.gmra.mxu3 %v7841_v25 }
 0x5c8   : > { %v7311_v50 = vadd.f32 %v3539_v20, %v3451_v60  ;;  %3489 = vmatmul.bf16.gmra.mxu1 %v7842_v63  ;;  %3578 = vmatmul.bf16.gmra.mxu0 %v7843_v40  ;;  %v7315_v52 = vpack.c.bf16 %v3827_v34, %v3825_v47  ;;  %v7844_v40 = vld [vmem:[#allocation40_spill] sm:$0xff] }
 0x5c9   : > { %v3317_v46 = vpop.f32.mrf.mxu2 }
 0x5ca   : > { %v3406_v11 = vpop.f32.mrf.mxu3  ;;  %v3318_v51 = vadd.f32 %v3317_v46, %v7201_v44 }
 0x5cc   : > { %v3407_v7 = vadd.f32 %v3406_v11, %v3318_v51  ;;  %v7846_v11 = vld [vmem:[#allocation23_spill] sm:$0xff]  ;;  %v7847_v51 = vld [vmem:[#allocation37_spill] sm:$0xff] }
 0x5cd   : > { %v3452_v57 = vpop.f32.mrf.mxu1  ;;  %v3541_v21 = vpop.f32.mrf.mxu0 }
 0x5ce   : > { %v3453_v0 = vadd.f32 %v3452_v57, %v7244_v22  ;;  %v3829_v25 = vmax.f32 %v3407_v7, 0.0 }
 0x5d0   : > { %v7319_v41 = vadd.f32 %v3541_v21, %v3453_v0 }
 0x5d1   : > { %v3319_v10 = vpop.f32.mrf.mxu2 }
 0x5d2   : > { %v3408_v20 = vpop.f32.mrf.mxu3  ;;  %v3320_v60 = vadd.f32 %v3319_v10, %v7209_v5  ;;  %v5784_v5 = vld [vmem:[%s7708_s7 + $0x20] sm:$0xff] }
 0x5d3   : > { %4296 = vmatpush.bf16.msrb.mxu2 %v5784_v5  ;;  %v7848_v5 = vld [vmem:[#allocation25_spill] sm:$0xff] }
 0x5d4   : > { %v3409_v47 = vadd.f32 %v3408_v20, %v3320_v60 }
 0x5d5   : > { %v3455_v34 = vpop.f32.mrf.mxu1  ;;  %v3544_v58 = vpop.f32.mrf.mxu0 }
 0x5d6   : > { %v3831_v63 = vmax.f32 %v3409_v47, 0.0  ;;  %v3456_v44 = vadd.f32 %v3455_v34, %v7244_v22  ;;  %3637 = vmatmul.bf16.gmra.mxu2 %v7844_v40 }
 0x5d7   : > { %3726 = vmatmul.bf16.gmra.mxu3 %v7845_v16 }
 0x5d8   : > { %v7325_v46 = vadd.f32 %v3544_v58, %v3456_v44  ;;  %3494 = vmatmul.bf16.gmra.mxu1 %v7846_v11  ;;  %3583 = vmatmul.bf16.gmra.mxu0 %v7847_v51  ;;  %v7332_v57 = vpack.c.bf16 %v3831_v63, %v3829_v25 }
 0x5d9   : > { %v3322_v7 = vpop.f32.mrf.mxu2 }
 0x5da   : > { %v3411_v21 = vpop.f32.mrf.mxu3  ;;  %v3323_v0 = vadd.f32 %v3322_v7, %v7215_v62  ;;  %v7849_v7 = vld [vmem:[#allocation39_spill] sm:$0xff] }
 0x5dc   : > { %v3412_v13 = vadd.f32 %v3411_v21, %v3323_v0 }
 0x5dd   : > { %v3457_v10 = vpop.f32.mrf.mxu1  ;;  %v3546_v20 = vpop.f32.mrf.mxu0 }
 0x5de   : > { %v3458_v60 = vadd.f32 %v3457_v10, %v7244_v22  ;;  %v3833_v63 = vmax.f32 %v3412_v13, 0.0 }
 0x5e0   : > { %v7336_v47 = vadd.f32 %v3546_v20, %v3458_v60 }
 0x5e1   : > { %v3324_v34 = vpop.f32.mrf.mxu2 }
 0x5e2   : > { %v3413_v58 = vpop.f32.mrf.mxu3  ;;  %v3325_v44 = vadd.f32 %v3324_v34, %v7223_v59 }
 0x5e4   : > { %v3414_v40 = vadd.f32 %v3413_v58, %v3325_v44 }
 0x5e5   : > { %v3460_v16 = vpop.f32.mrf.mxu1  ;;  %v3549_v25 = vpop.f32.mrf.mxu0 }
 0x5e6   : > { %v3835_v11 = vmax.f32 %v3414_v40, 0.0  ;;  %v3461_v51 = vadd.f32 %v3460_v16, %v7244_v22  ;;  %3642 = vmatmul.bf16.gmra.mxu2 %v6913_v9 }
 0x5e7   : > { %3731 = vmatmul.bf16.gmra.mxu3 %v7004_v8 }
 0x5e8   : > { %v7342_v62 = vadd.f32 %v3549_v25, %v3461_v51  ;;  %3499 = vmatmul.bf16.gmra.mxu1 %v7848_v5  ;;  %3588 = vmatmul.bf16.gmra.mxu0 %v7849_v7  ;;  %v7346_v21 = vpack.c.bf16 %v3835_v11, %v3833_v63  ;;  %v7850_v5 = vld [vmem:[#allocation43_spill] sm:$0xff] }
 0x5e9   : > { %v3327_v59 = vpop.f32.mrf.mxu2 }
 0x5ea   : > { %v3416_v0 = vpop.f32.mrf.mxu3  ;;  %v3328_v10 = vadd.f32 %v3327_v59, %v7229_v38  ;;  %v7851_v38 = vld [vmem:[#allocation49_spill] sm:$0xff]  ;;  %v7852_v59 = vld [vmem:[#allocation27_spill] sm:$0xff] }
 0x5ec   : > { %v3417_v13 = vadd.f32 %v3416_v0, %v3328_v10  ;;  %v7853_v0 = vld [vmem:[#allocation41_spill] sm:$0xff] }
 0x5ed   : > { %v3462_v20 = vpop.f32.mrf.mxu1  ;;  %v3551_v60 = vpop.f32.mrf.mxu0 }
 0x5ee   : > { %v3463_v34 = vadd.f32 %v3462_v20, %v7244_v22  ;;  %v3837_v63 = vmax.f32 %v3417_v13, 0.0 }
 0x5f0   : > { %v7350_v9 = vadd.f32 %v3551_v60, %v3463_v34 }
 0x5f1   : > { %v3329_v8 = vpop.f32.mrf.mxu2 }
 0x5f2   : > { %v3418_v58 = vpop.f32.mrf.mxu3  ;;  %v3330_v44 = vadd.f32 %v3329_v8, %v7240_v61  ;;  %v5783_v61 = vld [vmem:[%s7708_s7 + $0x18] sm:$0xff] }
 0x5f3   : > { %4297 = vmatpush.bf16.msrb.mxu2 %v5783_v61 }
 0x5f4   : > { %v3419_v40 = vadd.f32 %v3418_v58, %v3330_v44 }
 0x5f5   : > { %v3465_v16 = vpop.f32.mrf.mxu1  ;;  %v3554_v25 = vpop.f32.mrf.mxu0 }
 0x5f6   : > { %v3839_v11 = vmax.f32 %v3419_v40, 0.0  ;;  %v3466_v51 = vadd.f32 %v3465_v16, %v7244_v22  ;;  %3647 = vmatmul.bf16.gmra.mxu2 %v7850_v5 }
 0x5f7   : > { %3736 = vmatmul.bf16.gmra.mxu3 %v7851_v38 }
 0x5f8   : > { %v7356_v7 = vadd.f32 %v3554_v25, %v3466_v51  ;;  %3504 = vmatmul.bf16.gmra.mxu1 %v7852_v59  ;;  %3593 = vmatmul.bf16.gmra.mxu0 %v7853_v0  ;;  %v7363_v10 = vpack.c.bf16 %v3839_v11, %v3837_v63 }
 0x5f9   : > { %v3608_v13 = vpop.f32.mrf.mxu2 }
 0x5fa   : > { %v3697_v20 = vpop.f32.mrf.mxu3  ;;  %v3609_v8 = vadd.f32 %v3608_v13, %v7249_v15 }
 0x5fc   : > { %v3698_v25 = vadd.f32 %v3697_v20, %v3609_v8 }
 0x5fd   : > { %v3467_v60 = vpop.f32.mrf.mxu1  ;;  %v3556_v34 = vpop.f32.mrf.mxu0 }
 0x5fe   : > { %v3468_v58 = vadd.f32 %v3467_v60, %v7244_v22  ;;  %v3778_v11 = vmax.f32 %v3698_v25, 0.0 }
 0x600   : > { %v7367_v44 = vadd.f32 %v3556_v34, %v3468_v58 }
 0x601   : > { %v3610_v40 = vpop.f32.mrf.mxu2 }
 0x602   : > { %v3699_v16 = vpop.f32.mrf.mxu3  ;;  %v3611_v51 = vadd.f32 %v3610_v40, %v7257_v28  ;;  %v5791_v28 = vld [vmem:[%s7709_s8 + $0x18] sm:$0xff] }
 0x603   : > { %4515 = vmatpush.bf16.msrb.mxu3 %v5791_v28 }
 0x604   : > { %v3700_v5 = vadd.f32 %v3699_v16, %v3611_v51 }
 0x605   : > { %v3470_v38 = vpop.f32.mrf.mxu1  ;;  %v3559_v63 = vpop.f32.mrf.mxu0 }
 0x606   : > { %v3780_v59 = vmax.f32 %v3700_v5, 0.0  ;;  %v3471_v0 = vadd.f32 %v3470_v38, %v7244_v22  ;;  %3652 = vmatmul.bf16.gmra.mxu2 %v6937_v37 }
 0x607   : > { %3741 = vmatmul.bf16.gmra.mxu3 %v7037_v36 }
 0x608   : > { %v3842_v15 = vpack.c.bf16 %v3780_v59, %v3778_v11  ;;  %v7373_v61 = vadd.f32 %v3559_v63, %v3471_v0  ;;  %4010 = vmatmul.bf16.vlgmr.msrb.gmra.mxu1 %v7131_v30 }
 0x609   : > { %v3613_v13 = vpop.f32.mrf.mxu2 }
 0x60a   : > { %v3702_v20 = vpop.f32.mrf.mxu3  ;;  %4099 = vmatmul.bf16.vlgmr.msrb.gmra.mxu0 %v3842_v15  ;;  %v3614_v8 = vadd.f32 %v3613_v13, %v7263_v17 }
 0x60c   : > { %v3703_v16 = vadd.f32 %v3702_v20, %v3614_v8 }
 0x60d   : > { %v3472_v60 = vpop.f32.mrf.mxu1  ;;  %v3561_v34 = vpop.f32.mrf.mxu0 }
 0x60e   : > { %v3473_v37 = vadd.f32 %v3472_v60, %v7244_v22  ;;  %v3782_v38 = vmax.f32 %v3703_v16, 0.0 }
 0x610   : > { %v7381_v36 = vadd.f32 %v3561_v34, %v3473_v37 }
 0x611   : > { %v3615_v58 = vpop.f32.mrf.mxu2 }
 0x612   : > { %v3704_v40 = vpop.f32.mrf.mxu3  ;;  %v3616_v30 = vadd.f32 %v3615_v58, %v7274_v19  ;;  %v5782_v19 = vld [vmem:[%s7708_s7 + $0x10] sm:$0xff] }
 0x613   : > { %4298 = vmatpush.bf16.msrb.mxu2 %v5782_v19 }
 0x614   : > { %v3705_v25 = vadd.f32 %v3704_v40, %v3616_v30 }
 0x615   : > { %v3475_v51 = vpop.f32.mrf.mxu1  ;;  %v3564_v5 = vpop.f32.mrf.mxu0 }
 0x616   : > { %v3784_v63 = vmax.f32 %v3705_v25, 0.0  ;;  %v3476_v11 = vadd.f32 %v3475_v51, %v7244_v22  ;;  %3657 = vmatmul.bf16.gmra.mxu2 %v6949_v35 }
 0x617   : > { %3746 = vmatmul.bf16.gmra.mxu3 %v7051_v27 }
 0x618   : > { %v7387_v17 = vadd.f32 %v3564_v5, %v3476_v11  ;;  %4015 = vmatmul.bf16.gmra.mxu1 %v7149_v43  ;;  %v3844_v59 = vpack.c.bf16 %v3784_v63, %v3782_v38 }
 0x619   : > { %v3618_v0 = vpop.f32.mrf.mxu2 }
 0x61a   : > { %v3707_v15 = vpop.f32.mrf.mxu3  ;;  %4104 = vmatmul.bf16.gmra.mxu0 %v3844_v59  ;;  %v3619_v20 = vadd.f32 %v3618_v0, %v7280_v42 }
 0x61c   : > { %v3708_v43 = vadd.f32 %v3707_v15, %v3619_v20 }
 0x61d   : > { %v3477_v28 = vpop.f32.mrf.mxu1  ;;  %v3566_v13 = vpop.f32.mrf.mxu0 }
 0x61e   : > { %v3478_v35 = vadd.f32 %v3477_v28, %v7244_v22  ;;  %v3786_v16 = vmax.f32 %v3708_v43, 0.0 }
 0x620   : > { %v7395_v27 = vadd.f32 %v3566_v13, %v3478_v35 }
 0x621   : > { %v3620_v60 = vpop.f32.mrf.mxu2 }
 0x622   : > { %v3709_v34 = vpop.f32.mrf.mxu3  ;;  %v3621_v8 = vadd.f32 %v3620_v60, %v7288_v24 }
 0x624   : > { %v3710_v37 = vadd.f32 %v3709_v34, %v3621_v8 }
 0x625   : > { %v3480_v58 = vpop.f32.mrf.mxu1  ;;  %v3569_v40 = vpop.f32.mrf.mxu0 }
 0x626   : > { %v3788_v30 = vmax.f32 %v3710_v37, 0.0  ;;  %v3481_v25 = vadd.f32 %v3480_v58, %v7244_v22  ;;  %3662 = vmatmul.bf16.gmra.mxu2 %v6961_v48 }
 0x627   : > { %3751 = vmatmul.bf16.gmra.mxu3 %v7065_v26 }
 0x628   : > { %v7401_v42 = vadd.f32 %v3569_v40, %v3481_v25  ;;  %4020 = vmatmul.bf16.gmra.mxu1 %v7163_v39  ;;  %v3846_v51 = vpack.c.bf16 %v3788_v30, %v3786_v16 }
 0x629   : > { %v3623_v5 = vpop.f32.mrf.mxu2 }
 0x62a   : > { %v3712_v38 = vpop.f32.mrf.mxu3  ;;  %4109 = vmatmul.bf16.gmra.mxu0 %v3846_v51  ;;  %v3624_v11 = vadd.f32 %v3623_v5, %v7294_v3 }
 0x62c   : > { %v3713_v15 = vadd.f32 %v3712_v38, %v3624_v11 }
 0x62d   : > { %v3482_v24 = vpop.f32.mrf.mxu1  ;;  %v3571_v63 = vpop.f32.mrf.mxu0 }
 0x62e   : > { %v3483_v59 = vadd.f32 %v3482_v24, %v7244_v22  ;;  %v3790_v20 = vmax.f32 %v3713_v15, 0.0 }
 0x630   : > { %v7406_v19 = vadd.f32 %v3571_v63, %v3483_v59 }
 0x631   : > { %v3625_v0 = vpop.f32.mrf.mxu2 }
 0x632   : > { %v3714_v48 = vpop.f32.mrf.mxu3  ;;  %v3626_v26 = vadd.f32 %v3625_v0, %v7305_v29  ;;  %v5781_v29 = vld [vmem:[%s7708_s7 + $0x8] sm:$0xff] }
 0x633   : > { %4299 = vmatpush.bf16.msrb.mxu2 %v5781_v29 }
 0x634   : > { %v3715_v28 = vadd.f32 %v3714_v48, %v3626_v26 }
 0x635   : > { %v3485_v13 = vpop.f32.mrf.mxu1  ;;  %v3574_v39 = vpop.f32.mrf.mxu0 }
 0x636   : > { %v3792_v35 = vmax.f32 %v3715_v28, 0.0  ;;  %v3486_v60 = vadd.f32 %v3485_v13, %v7244_v22  ;;  %3667 = vmatmul.bf16.gmra.mxu2 %v6973_v23 }
 0x637   : > { %3756 = vmatmul.bf16.gmra.mxu3 %v7079_v45 }
 0x638   : > { %v7412_v3 = vadd.f32 %v3574_v39, %v3486_v60  ;;  %4025 = vmatmul.bf16.gmra.mxu1 %v7177_v49  ;;  %v3848_v34 = vpack.c.bf16 %v3792_v35, %v3790_v20 }
 0x639   : > { %v3628_v43 = vpop.f32.mrf.mxu2 }
 0x63a   : > { %v3717_v8 = vpop.f32.mrf.mxu3  ;;  %4114 = vmatmul.bf16.gmra.mxu0 %v3848_v34  ;;  %v3629_v40 = vadd.f32 %v3628_v43, %v7311_v50 }
 0x63c   : > { %v3718_v49 = vadd.f32 %v3717_v8, %v3629_v40 }
 0x63d   : > { %v3487_v37 = vpop.f32.mrf.mxu1  ;;  %v3576_v58 = vpop.f32.mrf.mxu0 }
 0x63e   : > { %v3488_v23 = vadd.f32 %v3487_v37, %v7244_v22  ;;  %v3794_v24 = vmax.f32 %v3718_v49, 0.0 }
 0x640   : > { %v7420_v45 = vadd.f32 %v3576_v58, %v3488_v23 }
 0x641   : > { %v3630_v16 = vpop.f32.mrf.mxu2 }
 0x642   : > { %v3719_v30 = vpop.f32.mrf.mxu3  ;;  %v3631_v25 = vadd.f32 %v3630_v16, %v7319_v41  ;;  %v5790_v41 = vld [vmem:[%s7709_s8 + $0x10] sm:$0xff] }
 0x643   : > { %4516 = vmatpush.bf16.msrb.mxu3 %v5790_v41 }
 0x644   : > { %v3720_v51 = vadd.f32 %v3719_v30, %v3631_v25 }
 0x645   : > { %v3490_v5 = vpop.f32.mrf.mxu1  ;;  %v3579_v38 = vpop.f32.mrf.mxu0 }
 0x646   : > { %v3796_v63 = vmax.f32 %v3720_v51, 0.0  ;;  %v3491_v11 = vadd.f32 %v3490_v5, %v7244_v22  ;;  %3672 = vmatmul.bf16.gmra.mxu2 %v6985_v18 }
 0x647   : > { %3761 = vmatmul.bf16.gmra.mxu3 %v7093_v33 }
 0x648   : > { %v7426_v50 = vadd.f32 %v3579_v38, %v3491_v11  ;;  %4030 = vmatmul.bf16.gmra.mxu1 %v7191_v6  ;;  %v3850_v59 = vpack.c.bf16 %v3796_v63, %v3794_v24 }
 0x649   : > { %v3633_v0 = vpop.f32.mrf.mxu2 }
 0x64a   : > { %v3722_v48 = vpop.f32.mrf.mxu3  ;;  %4119 = vmatmul.bf16.gmra.mxu0 %v3850_v59  ;;  %v3634_v28 = vadd.f32 %v3633_v0, %v7325_v46 }
 0x64c   : > { %v3723_v6 = vadd.f32 %v3722_v48, %v3634_v28 }
 0x64d   : > { %v3492_v15 = vpop.f32.mrf.mxu1  ;;  %v3581_v26 = vpop.f32.mrf.mxu0 }
 0x64e   : > { %v3493_v18 = vadd.f32 %v3492_v15, %v7244_v22  ;;  %v3798_v29 = vmax.f32 %v3723_v6, 0.0 }
 0x650   : > { %v7434_v33 = vadd.f32 %v3581_v26, %v3493_v18 }
 0x651   : > { %v3635_v13 = vpop.f32.mrf.mxu2 }
 0x652   : > { %v3724_v39 = vpop.f32.mrf.mxu3  ;;  %v3636_v20 = vadd.f32 %v3635_v13, %v7336_v47  ;;  %v5780_v47 = vld [vmem:[%s7708_s7] sm:$0xff] }
 0x653   : > { %4300 = vmatpush.bf16.msrb.mxu2 %v5780_v47 }
 0x654   : > { %v3725_v35 = vadd.f32 %v3724_v39, %v3636_v20 }
 0x655   : > { %v3495_v60 = vpop.f32.mrf.mxu1  ;;  %v3584_v34 = vpop.f32.mrf.mxu0 }
 0x656   : > { %v3800_v43 = vmax.f32 %v3725_v35, 0.0  ;;  %v3496_v8 = vadd.f32 %v3495_v60, %v7244_v22  ;;  %3677 = vmatmul.bf16.gmra.mxu2 %v6997_v56 }
 0x657   : > { %3766 = vmatmul.bf16.gmra.mxu3 %v7107_v12 }
 0x658   : > { %v7440_v46 = vadd.f32 %v3584_v34, %v3496_v8  ;;  %4035 = vmatmul.bf16.gmra.mxu1 %v7205_v4  ;;  %v3852_v37 = vpack.c.bf16 %v3800_v43, %v3798_v29 }
 0x659   : > { %v3638_v58 = vpop.f32.mrf.mxu2 }
 0x65a   : > { %v3727_v40 = vpop.f32.mrf.mxu3  ;;  %4124 = vmatmul.bf16.gmra.mxu0 %v3852_v37  ;;  %v3639_v30 = vadd.f32 %v3638_v58, %v7342_v62 }
 0x65c   : > { %v3728_v4 = vadd.f32 %v3727_v40, %v3639_v30 }
 0x65d   : > { %v3497_v23 = vpop.f32.mrf.mxu1  ;;  %v3586_v16 = vpop.f32.mrf.mxu0 }
 0x65e   : > { %v3498_v56 = vadd.f32 %v3497_v23, %v7244_v22  ;;  %v3802_v63 = vmax.f32 %v3728_v4, 0.0 }
 0x660   : > { %v7448_v12 = vadd.f32 %v3586_v16, %v3498_v56 }
 0x661   : > { %v3640_v49 = vpop.f32.mrf.mxu2 }
 0x662   : > { %v3729_v25 = vpop.f32.mrf.mxu3  ;;  %v3641_v51 = vadd.f32 %v3640_v49, %v7350_v9 }
 0x664   : > { %v3730_v5 = vadd.f32 %v3729_v25, %v3641_v51  ;;  %v7471_v51 = vld [vmem:[#allocation9 + $0x5] ss:$0 sm:$0xff] }
 0x665   : > { %v3500_v38 = vpop.f32.mrf.mxu1  ;;  %v3589_v24 = vpop.f32.mrf.mxu0 }
 0x666   : > { %v3804_v11 = vmax.f32 %v3730_v5, 0.0  ;;  %v3501_v59 = vadd.f32 %v3500_v38, %v7244_v22  ;;  %3682 = vmatmul.bf16.gmra.mxu2 %v7014_v54 }
 0x667   : > { %3771 = vmatmul.bf16.gmra.mxu3 %v7121_v53 }
 0x668   : > { %v7454_v62 = vadd.f32 %v3589_v24, %v3501_v59  ;;  %4040 = vmatmul.bf16.gmra.mxu1 %v7219_v14  ;;  %v3854_v41 = vpack.c.bf16 %v3804_v11, %v3802_v63  ;;  %v5789_v63 = vld [vmem:[%s7709_s8 + $0x8] sm:$0xff] }
 0x669   : > { %v3643_v0 = vpop.f32.mrf.mxu2  ;;  %4517 = vmatpush.bf16.msrb.mxu3 %v5789_v63 }
 0x66a   : > { %v3732_v48 = vpop.f32.mrf.mxu3  ;;  %4129 = vmatmul.bf16.gmra.mxu0 %v3854_v41  ;;  %v3644_v26 = vadd.f32 %v3643_v0, %v7356_v7 }
 0x66c   : > { %v3733_v39 = vadd.f32 %v3732_v48, %v3644_v26 }
 0x66d   : > { %v3502_v9 = vpop.f32.mrf.mxu1  ;;  %v3591_v15 = vpop.f32.mrf.mxu0 }
 0x66e   : > { %v3503_v28 = vadd.f32 %v3502_v9, %v7244_v22  ;;  %v3806_v35 = vmax.f32 %v3733_v39, 0.0 }
 0x670   : > { %v7459_v18 = vadd.f32 %v3591_v15, %v3503_v28 }
 0x671   : > { %v3645_v13 = vpop.f32.mrf.mxu2 }
 0x672   : > { %v3734_v54 = vpop.f32.mrf.mxu3  ;;  %v3646_v53 = vadd.f32 %v3645_v13, %v7367_v44 }
 0x674   : > { %v3735_v6 = vadd.f32 %v3734_v54, %v3646_v53 }
 0x675   : > { %v3505_v20 = vpop.f32.mrf.mxu1  ;;  %v3594_v14 = vpop.f32.mrf.mxu0 }
 0x676   : > { %v3808_v60 = vmax.f32 %v3735_v6, 0.0  ;;  %v3506_v34 = vadd.f32 %v3505_v20, %v7244_v22 }
 0x678   : > { %v7463_v29 = vadd.f32 %v3594_v14, %v3506_v34  ;;  %4045 = vmatmul.bf16.gmra.mxu1 %v7236_v31  ;;  %v3856_v7 = vpack.c.bf16 %v3808_v60, %v3806_v35 }
 0x679   : > { %v3648_v43 = vpop.f32.mrf.mxu2 }
 0x67a   : > { %v3737_v8 = vpop.f32.mrf.mxu3  ;;  %4134 = vmatmul.bf16.gmra.mxu0 %v3856_v7  ;;  %v3649_v47 = vadd.f32 %v3648_v43, %v7373_v61 }
 0x67c   : > { %v3738_v30 = vadd.f32 %v3737_v8, %v3649_v47 }
 0x67d   : > { %v3507_v37 = vpop.f32.mrf.mxu1  ;;  %v3596_v58 = vpop.f32.mrf.mxu0 }
 0x67e   : > { %v3508_v44 = vadd.f32 %v3507_v37, %v7244_v22  ;;  %v3810_v31 = vmax.f32 %v3738_v30, 0.0 }
 0x680   : > { %v7468_v40 = vadd.f32 %v3596_v58, %v3508_v44 }
 0x681   : > { %v3650_v23 = vpop.f32.mrf.mxu2 }
 0x682   : > { %v3739_v16 = vpop.f32.mrf.mxu3  ;;  %v3651_v56 = vadd.f32 %v3650_v23, %v7381_v36 }
 0x684   : > { %v3740_v49 = vadd.f32 %v3739_v16, %v3651_v56 }
 0x685   : > { %v4011_v25 = vpop.f32.mrf.mxu1 }
 0x686   : > { %v3812_v4 = vmax.f32 %v3740_v49, 0.0  ;;  %v4012_v24 = vadd.f32 %v4011_v25, %v7471_v51 }
 0x687   : > { %v4100_v5 = vpop.f32.mrf.mxu0 }
 0x688   : > { %4050 = vmatmul.bf16.gmra.mxu1 %v7253_v1  ;;  %v3858_v61 = vpack.c.bf16 %v3812_v4, %v3810_v31  ;;  %v4101_v11 = vadd.f32 %v4100_v5, %v4012_v24 }
 0x689   : > { %v3653_v38 = vpop.f32.mrf.mxu2 }
 0x68a   : > { %v3742_v22 = vpop.f32.mrf.mxu3  ;;  %4139 = vmatmul.bf16.gmra.mxu0 %v3858_v61  ;;  %v3654_v59 = vadd.f32 %v3653_v38, %v7387_v17  ;;  %v4180_v15 = vmax.f32 %v4101_v11, 0.0 }
 0x68c   : > { %v3743_v26 = vadd.f32 %v3742_v22, %v3654_v59 }
 0x68d   : > { %v4013_v36 = vpop.f32.mrf.mxu1 }
 0x68e   : > { %v4014_v41 = vadd.f32 %v4013_v36, %v7471_v51  ;;  %v3814_v6 = vmax.f32 %v3743_v26, 0.0 }
 0x68f   : > { %v4102_v0 = vpop.f32.mrf.mxu0 }
 0x690   : > { %v4103_v48 = vadd.f32 %v4102_v0, %v4014_v41 }
 0x691   : > { %v3655_v1 = vpop.f32.mrf.mxu2 }
 0x692   : > { %v3744_v9 = vpop.f32.mrf.mxu3  ;;  %v4181_v28 = vmax.f32 %v4103_v48, 0.0  ;;  %v3656_v13 = vadd.f32 %v3655_v1, %v7395_v27 }
 0x694   : > { %v4212_v54 = vpack.c.bf16 %v4181_v28, %v4180_v15  ;;  %v3745_v39 = vadd.f32 %v3744_v9, %v3656_v13 }
 0x695   : > { %v4016_v53 = vpop.f32.mrf.mxu1 }
 0x696   : > { %v3816_v20 = vmax.f32 %v3745_v39, 0.0  ;;  %4301 = vmatmul.bf16.vlgmr.msrb.gmra.mxu2 %v4212_v54  ;;  %v4017_v34 = vadd.f32 %v4016_v53, %v7471_v51 }
 0x697   : > { %v4105_v14 = vpop.f32.mrf.mxu0 }
 0x698   : > { %4055 = vmatmul.bf16.gmra.mxu1 %v7270_v55  ;;  %v3860_v17 = vpack.c.bf16 %v3816_v20, %v3814_v6  ;;  %v4106_v43 = vadd.f32 %v4105_v14, %v4017_v34 }
 0x699   : > { %v3658_v35 = vpop.f32.mrf.mxu2 }
 0x69a   : > { %v3747_v60 = vpop.f32.mrf.mxu3  ;;  %4144 = vmatmul.bf16.gmra.mxu0 %v3860_v17  ;;  %v3659_v8 = vadd.f32 %v3658_v35, %v7401_v42  ;;  %v4182_v23 = vmax.f32 %v4106_v43, 0.0 }
 0x69c   : > { %v3748_v16 = vadd.f32 %v3747_v60, %v3659_v8 }
 0x69d   : > { %v4018_v7 = vpop.f32.mrf.mxu1 }
 0x69e   : > { %v4019_v27 = vadd.f32 %v4018_v7, %v7471_v51  ;;  %v3818_v31 = vmax.f32 %v3748_v16, 0.0 }
 0x69f   : > { %v4107_v37 = vpop.f32.mrf.mxu0 }
 0x6a0   : > { %v4108_v47 = vadd.f32 %v4107_v37, %v4019_v27 }
 0x6a1   : > { %v3660_v44 = vpop.f32.mrf.mxu2 }
 0x6a2   : > { %v3749_v58 = vpop.f32.mrf.mxu3  ;;  %v4183_v30 = vmax.f32 %v4108_v47, 0.0  ;;  %v3661_v55 = vadd.f32 %v3660_v44, %v7406_v19 }
 0x6a4   : > { %v3750_v56 = vadd.f32 %v3749_v58, %v3661_v55  ;;  %v4213_v49 = vpack.c.bf16 %v4183_v30, %v4182_v23 }
 0x6a5   : > { %v4021_v25 = vpop.f32.mrf.mxu1 }
 0x6a6   : > { %v3820_v4 = vmax.f32 %v3750_v56, 0.0  ;;  %4306 = vmatmul.bf16.gmra.mxu2 %v4213_v49  ;;  %v4022_v22 = vadd.f32 %v4021_v25, %v7471_v51  ;;  %v5788_v25 = vld [vmem:[%s7709_s8] sm:$0xff] }
 0x6a7   : > { %v4110_v5 = vpop.f32.mrf.mxu0  ;;  %4518 = vmatpush.bf16.msrb.mxu3 %v5788_v25 }
 0x6a8   : > { %4060 = vmatmul.bf16.gmra.mxu1 %v7284_v32  ;;  %v3862_v42 = vpack.c.bf16 %v3820_v4, %v3818_v31  ;;  %v4111_v63 = vadd.f32 %v4110_v5, %v4022_v22 }
 0x6a9   : > { %v3663_v61 = vpop.f32.mrf.mxu2 }
 0x6aa   : > { %v3752_v38 = vpop.f32.mrf.mxu3  ;;  %4149 = vmatmul.bf16.gmra.mxu0 %v3862_v42  ;;  %v3664_v36 = vadd.f32 %v3663_v61, %v7412_v3  ;;  %v4184_v48 = vmax.f32 %v4111_v63, 0.0 }
 0x6ac   : > { %v3753_v1 = vadd.f32 %v3752_v38, %v3664_v36 }
 0x6ad   : > { %v4023_v24 = vpop.f32.mrf.mxu1 }
 0x6ae   : > { %v4024_v19 = vadd.f32 %v4023_v24, %v7471_v51  ;;  %v3822_v13 = vmax.f32 %v3753_v1, 0.0 }
 0x6af   : > { %v4112_v11 = vpop.f32.mrf.mxu0 }
 0x6b0   : > { %v4113_v59 = vadd.f32 %v4112_v11, %v4024_v19 }
 0x6b1   : > { %v3665_v41 = vpop.f32.mrf.mxu2 }
 0x6b2   : > { %v3754_v0 = vpop.f32.mrf.mxu3  ;;  %v4185_v9 = vmax.f32 %v4113_v59, 0.0  ;;  %v3666_v32 = vadd.f32 %v3665_v41, %v7420_v45 }
 0x6b4   : > { %v3755_v15 = vadd.f32 %v3754_v0, %v3666_v32  ;;  %v4214_v26 = vpack.c.bf16 %v4185_v9, %v4184_v48 }
 0x6b5   : > { %v4026_v28 = vpop.f32.mrf.mxu1 }
 0x6b6   : > { %v3824_v54 = vmax.f32 %v3755_v15, 0.0  ;;  %4311 = vmatmul.bf16.gmra.mxu2 %v4214_v26  ;;  %v4027_v20 = vadd.f32 %v4026_v28, %v7471_v51 }
 0x6b7   : > { %v4115_v39 = vpop.f32.mrf.mxu0 }
 0x6b8   : > { %4065 = vmatmul.bf16.gmra.mxu1 %v7301_v2  ;;  %v3864_v3 = vpack.c.bf16 %v3824_v54, %v3822_v13  ;;  %v4116_v17 = vadd.f32 %v4115_v39, %v4027_v20 }
 0x6b9   : > { %v3668_v53 = vpop.f32.mrf.mxu2 }
 0x6ba   : > { %v3757_v6 = vpop.f32.mrf.mxu3  ;;  %4154 = vmatmul.bf16.gmra.mxu0 %v3864_v3  ;;  %v3669_v35 = vadd.f32 %v3668_v53, %v7426_v50  ;;  %v4186_v8 = vmax.f32 %v4116_v17, 0.0 }
 0x6bc   : > { %v3758_v27 = vadd.f32 %v3757_v6, %v3669_v35 }
 0x6bd   : > { %v4028_v14 = vpop.f32.mrf.mxu1 }
 0x6be   : > { %v4029_v45 = vadd.f32 %v4028_v14, %v7471_v51  ;;  %v3826_v23 = vmax.f32 %v3758_v27, 0.0 }
 0x6bf   : > { %v4117_v60 = vpop.f32.mrf.mxu0 }
 0x6c0   : > { %v4118_v34 = vadd.f32 %v4117_v60, %v4029_v45 }
 0x6c1   : > { %v3670_v7 = vpop.f32.mrf.mxu2 }
 0x6c2   : > { %v3759_v43 = vpop.f32.mrf.mxu3  ;;  %v4187_v37 = vmax.f32 %v4118_v34, 0.0  ;;  %v3671_v2 = vadd.f32 %v3670_v7, %v7434_v33 }
 0x6c4   : > { %v3760_v47 = vadd.f32 %v3759_v43, %v3671_v2  ;;  %v4215_v44 = vpack.c.bf16 %v4187_v37, %v4186_v8 }
 0x6c5   : > { %v4031_v58 = vpop.f32.mrf.mxu1 }
 0x6c6   : > { %v3828_v16 = vmax.f32 %v3760_v47, 0.0  ;;  %4316 = vmatmul.bf16.gmra.mxu2 %v4215_v44  ;;  %v4032_v49 = vadd.f32 %v4031_v58, %v7471_v51 }
 0x6c7   : > { %v4120_v30 = vpop.f32.mrf.mxu0 }
 0x6c8   : > { %4070 = vmatmul.bf16.gmra.mxu1 %v7315_v52  ;;  %v3866_v50 = vpack.c.bf16 %v3828_v16, %v3826_v23  ;;  %v4121_v31 = vadd.f32 %v4120_v30, %v4032_v49 }
 0x6c9   : > { %v3673_v55 = vpop.f32.mrf.mxu2 }
 0x6ca   : > { %v3762_v56 = vpop.f32.mrf.mxu3  ;;  %4159 = vmatmul.bf16.gmra.mxu0 %v3866_v50  ;;  %v3674_v4 = vadd.f32 %v3673_v55, %v7440_v46  ;;  %v4188_v22 = vmax.f32 %v4121_v31, 0.0 }
 0x6cc   : > { %v3763_v24 = vadd.f32 %v3762_v56, %v3674_v4 }
 0x6cd   : > { %v4033_v33 = vpop.f32.mrf.mxu1 }
 0x6ce   : > { %v4034_v5 = vadd.f32 %v4033_v33, %v7471_v51  ;;  %v3830_v41 = vmax.f32 %v3763_v24, 0.0 }
 0x6cf   : > { %v4122_v42 = vpop.f32.mrf.mxu0 }
 0x6d0   : > { %v4123_v61 = vadd.f32 %v4122_v42, %v4034_v5 }
 0x6d1   : > { %v3675_v52 = vpop.f32.mrf.mxu2 }
 0x6d2   : > { %v3764_v38 = vpop.f32.mrf.mxu3  ;;  %v4189_v63 = vmax.f32 %v4123_v61, 0.0  ;;  %v3676_v36 = vadd.f32 %v3675_v52, %v7448_v12 }
 0x6d4   : > { %v4216_v19 = vpack.c.bf16 %v4189_v63, %v4188_v22  ;;  %v3765_v11 = vadd.f32 %v3764_v38, %v3676_v36 }
 0x6d5   : > { %v4036_v59 = vpop.f32.mrf.mxu1 }
 0x6d6   : > { %v3832_v0 = vmax.f32 %v3765_v11, 0.0  ;;  %4321 = vmatmul.bf16.gmra.mxu2 %v4216_v19  ;;  %v4037_v32 = vadd.f32 %v4036_v59, %v7471_v51 }
 0x6d7   : > { %v4125_v48 = vpop.f32.mrf.mxu0 }
 0x6d8   : > { %4075 = vmatmul.bf16.gmra.mxu1 %v7332_v57  ;;  %v3868_v46 = vpack.c.bf16 %v3832_v0, %v3830_v41  ;;  %v4126_v26 = vadd.f32 %v4125_v48, %v4037_v32 }
 0x6d9   : > { %v3678_v1 = vpop.f32.mrf.mxu2 }
 0x6da   : > { %v3767_v9 = vpop.f32.mrf.mxu3  ;;  %4164 = vmatmul.bf16.gmra.mxu0 %v3868_v46  ;;  %v3679_v28 = vadd.f32 %v3678_v1, %v7454_v62  ;;  %v4190_v53 = vmax.f32 %v4126_v26, 0.0 }
 0x6dc   : > { %v3768_v6 = vadd.f32 %v3767_v9, %v3679_v28  ;;  %v7520_v28 = vld [vmem:[#allocation9 + $0x6] ss:$0 sm:$0xff] }
 0x6dd   : > { %v4038_v15 = vpop.f32.mrf.mxu1 }
 0x6de   : > { %v4039_v12 = vadd.f32 %v4038_v15, %v7471_v51  ;;  %v3834_v45 = vmax.f32 %v3768_v6, 0.0 }
 0x6df   : > { %v4127_v13 = vpop.f32.mrf.mxu0 }
 0x6e0   : > { %v4128_v54 = vadd.f32 %v4127_v13, %v4039_v12 }
 0x6e1   : > { %v3680_v39 = vpop.f32.mrf.mxu2 }
 0x6e2   : > { %v3769_v3 = vpop.f32.mrf.mxu3  ;;  %v4191_v20 = vmax.f32 %v4128_v54, 0.0  ;;  %v3681_v57 = vadd.f32 %v3680_v39, %v7459_v18 }
 0x6e4   : > { %v4217_v14 = vpack.c.bf16 %v4191_v20, %v4190_v53  ;;  %v3770_v17 = vadd.f32 %v3769_v3, %v3681_v57 }
 0x6e5   : > { %v4041_v35 = vpop.f32.mrf.mxu1 }
 0x6e6   : > { %v3836_v60 = vmax.f32 %v3770_v17, 0.0  ;;  %4326 = vmatmul.bf16.gmra.mxu2 %v4217_v14  ;;  %v4042_v8 = vadd.f32 %v4041_v35, %v7471_v51 }
 0x6e7   : > { %v4130_v34 = vpop.f32.mrf.mxu0 }
 0x6e8   : > { %4080 = vmatmul.bf16.gmra.mxu1 %v7346_v21  ;;  %v3870_v62 = vpack.c.bf16 %v3836_v60, %v3834_v45  ;;  %v4131_v37 = vadd.f32 %v4130_v34, %v4042_v8 }
 0x6e9   : > { %v3683_v7 = vpop.f32.mrf.mxu2 }
 0x6ea   : > { %v3772_v43 = vpop.f32.mrf.mxu3  ;;  %4169 = vmatmul.bf16.gmra.mxu0 %v3870_v62  ;;  %v3684_v2 = vadd.f32 %v3683_v7, %v7463_v29  ;;  %v4192_v23 = vmax.f32 %v4131_v37, 0.0 }
 0x6ec   : > { %v3773_v16 = vadd.f32 %v3772_v43, %v3684_v2 }
 0x6ed   : > { %v4043_v27 = vpop.f32.mrf.mxu1 }
 0x6ee   : > { %v4044_v18 = vadd.f32 %v4043_v27, %v7471_v51  ;;  %v3838_v25 = vmax.f32 %v3773_v16, 0.0 }
 0x6ef   : > { %v4132_v47 = vpop.f32.mrf.mxu0 }
 0x6f0   : > { %v4133_v44 = vadd.f32 %v4132_v47, %v4044_v18 }
 0x6f1   : > { %v3685_v58 = vpop.f32.mrf.mxu2 }
 0x6f2   : > { %v4193_v30 = vmax.f32 %v4133_v44, 0.0  ;;  %v3686_v21 = vadd.f32 %v3685_v58, %v7468_v40  ;;  %v3774_v50 = vpop.f32.mrf.mxu3 }
 0x6f4   : > { %v4218_v55 = vpack.c.bf16 %v4193_v30, %v4192_v23  ;;  %v3775_v56 = vadd.f32 %v3774_v50, %v3686_v21 }
 0x6f5   : > { %v4046_v49 = vpop.f32.mrf.mxu1 }
 0x6f6   : > { %v3840_v33 = vmax.f32 %v3775_v56, 0.0  ;;  %4331 = vmatmul.bf16.gmra.mxu2 %v4218_v55  ;;  %v4047_v4 = vadd.f32 %v4046_v49, %v7471_v51 }
 0x6f7   : > { %v4135_v31 = vpop.f32.mrf.mxu0 }
 0x6f8   : > { %4085 = vmatmul.bf16.gmra.mxu1 %v7363_v10  ;;  %v3872_v29 = vpack.c.bf16 %v3840_v33, %v3838_v25  ;;  %v4136_v42 = vadd.f32 %v4135_v31, %v4047_v4 }
 0x6fa   : > { %4174 = vmatmul.bf16.gmra.mxu0 %v3872_v29  ;;  %v4194_v38 = vmax.f32 %v4136_v42, 0.0 }
 0x6fd   : > { %v4048_v5 = vpop.f32.mrf.mxu1 }
 0x6fe   : > { %v4049_v61 = vadd.f32 %v4048_v5, %v7471_v51 }
 0x6ff   : > { %v4137_v52 = vpop.f32.mrf.mxu0 }
 0x700   : > { %v4138_v40 = vadd.f32 %v4137_v52, %v4049_v61 }
 0x702   : > { %v4195_v22 = vmax.f32 %v4138_v40, 0.0 }
 0x704   : > { %v4219_v24 = vpack.c.bf16 %v4195_v22, %v4194_v38 }
 0x705   : > { %v4051_v63 = vpop.f32.mrf.mxu1 }
 0x706   : > { %4336 = vmatmul.bf16.gmra.mxu2 %v4219_v24  ;;  %v4052_v19 = vadd.f32 %v4051_v63, %v7471_v51 }
 0x707   : > { %v4140_v36 = vpop.f32.mrf.mxu0 }
 0x708   : > { %v4141_v10 = vadd.f32 %v4140_v36, %v4052_v19 }
 0x70a   : > { %v4196_v48 = vmax.f32 %v4141_v10, 0.0 }
 0x70d   : > { %v4053_v11 = vpop.f32.mrf.mxu1 }
 0x70e   : > { %v4054_v59 = vadd.f32 %v4053_v11, %v7471_v51 }
 0x70f   : > { %v4142_v41 = vpop.f32.mrf.mxu0 }
 0x710   : > { %v4143_v0 = vadd.f32 %v4142_v41, %v4054_v59 }
 0x712   : > { %v4197_v46 = vmax.f32 %v4143_v0, 0.0 }
 0x714   : > { %v4220_v1 = vpack.c.bf16 %v4197_v46, %v4196_v48 }
 0x715   : > { %v4056_v9 = vpop.f32.mrf.mxu1 }
 0x716   : > { %4341 = vmatmul.bf16.gmra.mxu2 %v4220_v1  ;;  %v4057_v26 = vadd.f32 %v4056_v9, %v7471_v51 }
 0x717   : > { %v4145_v32 = vpop.f32.mrf.mxu0 }
 0x718   : > { %v4146_v13 = vadd.f32 %v4145_v32, %v4057_v26 }
 0x719   : > { %v4302_v15 = vpop.f32.mrf.mxu2 }
 0x71a   : > { %v4303_v3 = vadd.f32 %v4302_v15, %v7520_v28  ;;  %v4198_v20 = vmax.f32 %v4146_v13, 0.0 }
 0x71c   : > { %v4382_v17 = vmax.f32 %v4303_v3, 0.0 }
 0x71d   : > { %v4058_v12 = vpop.f32.mrf.mxu1 }
 0x71e   : > { %v4059_v54 = vadd.f32 %v4058_v12, %v7471_v51 }
 0x71f   : > { %v4147_v39 = vpop.f32.mrf.mxu0 }
 0x720   : > { %v4148_v53 = vadd.f32 %v4147_v39, %v4059_v54 }
 0x721   : > { %v4304_v6 = vpop.f32.mrf.mxu2 }
 0x722   : > { %v4199_v57 = vmax.f32 %v4148_v53, 0.0  ;;  %v4305_v14 = vadd.f32 %v4304_v6, %v7520_v28 }
 0x724   : > { %v4221_v35 = vpack.c.bf16 %v4199_v57, %v4198_v20  ;;  %v4383_v45 = vmax.f32 %v4305_v14, 0.0 }
 0x725   : > { %v4061_v60 = vpop.f32.mrf.mxu1 }
 0x726   : > { %v4414_v34 = vpack.c.bf16 %v4383_v45, %v4382_v17  ;;  %4346 = vmatmul.bf16.gmra.mxu2 %v4221_v35  ;;  %v4062_v43 = vadd.f32 %v4061_v60, %v7471_v51 }
 0x727   : > { %v4150_v62 = vpop.f32.mrf.mxu0 }
 0x728   : > { %5573 = vmatmul.msk.bf16.vlgmr.msrb.gmra.mxu3 %vm812_vm0, %v4414_v34  ;;  %v4151_v27 = vadd.f32 %v4150_v62, %v4062_v43 }
 0x729   : > { %v4307_v7 = vpop.f32.mrf.mxu2 }
 0x72a   : > { %v4308_v18 = vadd.f32 %v4307_v7, %v7520_v28  ;;  %v4200_v58 = vmax.f32 %v4151_v27, 0.0 }
 0x72c   : > { %v4384_v30 = vmax.f32 %v4308_v18, 0.0 }
 0x72d   : > { %v4063_v8 = vpop.f32.mrf.mxu1 }
 0x72e   : > { %v4064_v37 = vadd.f32 %v4063_v8, %v7471_v51 }
 0x72f   : > { %v4152_v2 = vpop.f32.mrf.mxu0 }
 0x730   : > { %v4153_v47 = vadd.f32 %v4152_v2, %v4064_v37 }
 0x731   : > { %v4309_v44 = vpop.f32.mrf.mxu2 }
 0x732   : > { %v4201_v23 = vmax.f32 %v4153_v47, 0.0  ;;  %v4310_v16 = vadd.f32 %v4309_v44, %v7520_v28 }
 0x734   : > { %v4222_v21 = vpack.c.bf16 %v4201_v23, %v4200_v58  ;;  %v4385_v50 = vmax.f32 %v4310_v16, 0.0 }
 0x735   : > { %v4066_v55 = vpop.f32.mrf.mxu1 }
 0x736   : > { %v4415_v56 = vpack.c.bf16 %v4385_v50, %v4384_v30  ;;  %4351 = vmatmul.bf16.gmra.mxu2 %v4222_v21  ;;  %v4067_v33 = vadd.f32 %v4066_v55, %v7471_v51 }
 0x737   : > { %v4155_v49 = vpop.f32.mrf.mxu0 }
 0x738   : > { %5574 = vmatmul.msk.bf16.gmra.mxu3 %vm812_vm0, %v4415_v56  ;;  %v4156_v29 = vadd.f32 %v4155_v49, %v4067_v33 }
 0x739   : > { %v4312_v25 = vpop.f32.mrf.mxu2 }
 0x73a   : > { %v4313_v42 = vadd.f32 %v4312_v25, %v7520_v28  ;;  %v4202_v40 = vmax.f32 %v4156_v29, 0.0 }
 0x73c   : > { %v4386_v24 = vmax.f32 %v4313_v42, 0.0 }
 0x73d   : > { %v4068_v31 = vpop.f32.mrf.mxu1 }
 0x73e   : > { %v4069_v4 = vadd.f32 %v4068_v31, %v7471_v51 }
 0x73f   : > { %v4157_v5 = vpop.f32.mrf.mxu0 }
 0x740   : > { %v4158_v61 = vadd.f32 %v4157_v5, %v4069_v4 }
 0x741   : > { %v4314_v52 = vpop.f32.mrf.mxu2 }
 0x742   : > { %v4203_v38 = vmax.f32 %v4158_v61, 0.0  ;;  %v4315_v22 = vadd.f32 %v4314_v52, %v7520_v28 }
 0x744   : > { %v4223_v63 = vpack.c.bf16 %v4203_v38, %v4202_v40  ;;  %v4387_v36 = vmax.f32 %v4315_v22, 0.0 }
 0x745   : > { %v4071_v19 = vpop.f32.mrf.mxu1 }
 0x746   : > { %v4416_v11 = vpack.c.bf16 %v4387_v36, %v4386_v24  ;;  %4356 = vmatmul.bf16.gmra.mxu2 %v4223_v63  ;;  %v4072_v41 = vadd.f32 %v4071_v19, %v7471_v51 }
 0x747   : > { %v4160_v10 = vpop.f32.mrf.mxu0 }
 0x748   : > { %5575 = vmatmul.msk.bf16.gmra.mxu3 %vm812_vm0, %v4416_v11  ;;  %v4161_v48 = vadd.f32 %v4160_v10, %v4072_v41 }
 0x749   : > { %v4317_v59 = vpop.f32.mrf.mxu2 }
 0x74a   : > { %v4318_v9 = vadd.f32 %v4317_v59, %v7520_v28  ;;  %v4204_v26 = vmax.f32 %v4161_v48, 0.0 }
 0x74c   : > { %v4388_v54 = vmax.f32 %v4318_v9, 0.0 }
 0x74d   : > { %v4073_v0 = vpop.f32.mrf.mxu1 }
 0x74e   : > { %v4074_v46 = vadd.f32 %v4073_v0, %v7471_v51 }
 0x74f   : > { %v4162_v1 = vpop.f32.mrf.mxu0 }
 0x750   : > { %v4163_v32 = vadd.f32 %v4162_v1, %v4074_v46 }
 0x751   : > { %v4319_v15 = vpop.f32.mrf.mxu2 }
 0x752   : > { %v4205_v12 = vmax.f32 %v4163_v32, 0.0  ;;  %v4320_v13 = vadd.f32 %v4319_v15, %v7520_v28 }
 0x754   : > { %v4224_v39 = vpack.c.bf16 %v4205_v12, %v4204_v26  ;;  %v4389_v3 = vmax.f32 %v4320_v13, 0.0 }
 0x755   : > { %v4076_v53 = vpop.f32.mrf.mxu1 }
 0x756   : > { %v4417_v6 = vpack.c.bf16 %v4389_v3, %v4388_v54  ;;  %4361 = vmatmul.bf16.gmra.mxu2 %v4224_v39  ;;  %v4077_v14 = vadd.f32 %v4076_v53, %v7471_v51 }
 0x757   : > { %v4165_v20 = vpop.f32.mrf.mxu0 }
 0x758   : > { %5576 = vmatmul.msk.bf16.gmra.mxu3 %vm812_vm0, %v4417_v6  ;;  %v4166_v35 = vadd.f32 %v4165_v20, %v4077_v14 }
 0x759   : > { %v4322_v57 = vpop.f32.mrf.mxu2 }
 0x75a   : > { %v4323_v34 = vadd.f32 %v4322_v57, %v7520_v28  ;;  %v4206_v43 = vmax.f32 %v4166_v35, 0.0 }
 0x75c   : > { %v4390_v37 = vmax.f32 %v4323_v34, 0.0 }
 0x75d   : > { %v4078_v17 = vpop.f32.mrf.mxu1 }
 0x75e   : > { %v4079_v45 = vadd.f32 %v4078_v17, %v7471_v51 }
 0x75f   : > { %v4167_v60 = vpop.f32.mrf.mxu0 }
 0x760   : > { %v4168_v62 = vadd.f32 %v4167_v60, %v4079_v45  ;;  %v7564_v45 = vld [vmem:[#allocation9 + $0x7] ss:$0 sm:$0xff] }
 0x761   : > { %v4324_v7 = vpop.f32.mrf.mxu2 }
 0x762   : > { %v4207_v8 = vmax.f32 %v4168_v62, 0.0  ;;  %v4325_v27 = vadd.f32 %v4324_v7, %v7520_v28 }
 0x764   : > { %v4225_v2 = vpack.c.bf16 %v4207_v8, %v4206_v43  ;;  %v4391_v18 = vmax.f32 %v4325_v27, 0.0 }
 0x765   : > { %v4081_v47 = vpop.f32.mrf.mxu1 }
 0x766   : > { %v4418_v44 = vpack.c.bf16 %v4391_v18, %v4390_v37  ;;  %4366 = vmatmul.bf16.gmra.mxu2 %v4225_v2  ;;  %v4082_v16 = vadd.f32 %v4081_v47, %v7471_v51 }
 0x767   : > { %v4170_v58 = vpop.f32.mrf.mxu0 }
 0x768   : > { %5577 = vmatmul.msk.bf16.gmra.mxu3 %vm812_vm0, %v4418_v44  ;;  %v4171_v21 = vadd.f32 %v4170_v58, %v4082_v16 }
 0x769   : > { %v4327_v23 = vpop.f32.mrf.mxu2 }
 0x76a   : > { %v4328_v56 = vadd.f32 %v4327_v23, %v7520_v28  ;;  %v4208_v33 = vmax.f32 %v4171_v21, 0.0 }
 0x76c   : > { %v4392_v4 = vmax.f32 %v4328_v56, 0.0 }
 0x76d   : > { %v4083_v30 = vpop.f32.mrf.mxu1 }
 0x76e   : > { %v4084_v50 = vadd.f32 %v4083_v30, %v7471_v51 }
 0x76f   : > { %v4172_v55 = vpop.f32.mrf.mxu0 }
 0x770   : > { %v4173_v49 = vadd.f32 %v4172_v55, %v4084_v50 }
 0x771   : > { %v4329_v25 = vpop.f32.mrf.mxu2 }
 0x772   : > { %v4209_v31 = vmax.f32 %v4173_v49, 0.0  ;;  %v4330_v29 = vadd.f32 %v4329_v25, %v7520_v28 }
 0x774   : > { %v4226_v5 = vpack.c.bf16 %v4209_v31, %v4208_v33  ;;  %v4393_v42 = vmax.f32 %v4330_v29, 0.0 }
 0x775   : > { %v4086_v61 = vpop.f32.mrf.mxu1 }
 0x776   : > { %v4419_v52 = vpack.c.bf16 %v4393_v42, %v4392_v4  ;;  %4371 = vmatmul.bf16.gmra.mxu2 %v4226_v5  ;;  %v4087_v22 = vadd.f32 %v4086_v61, %v7471_v51 }
 0x777   : > { %v4175_v40 = vpop.f32.mrf.mxu0 }
 0x778   : > { %5578 = vmatmul.msk.bf16.gmra.mxu3 %vm812_vm0, %v4419_v52  ;;  %v4176_v63 = vadd.f32 %v4175_v40, %v4087_v22 }
 0x779   : > { %v4332_v38 = vpop.f32.mrf.mxu2 }
 0x77a   : > { %v4333_v11 = vadd.f32 %v4332_v38, %v7520_v28  ;;  %v4210_v41 = vmax.f32 %v4176_v63, 0.0 }
 0x77c   : > { %v4394_v46 = vmax.f32 %v4333_v11, 0.0 }
 0x77d   : > { %v4088_v24 = vpop.f32.mrf.mxu1 }
 0x77e   : > { %v4089_v36 = vadd.f32 %v4088_v24, %v7471_v51 }
 0x77f   : > { %v4177_v19 = vpop.f32.mrf.mxu0 }
 0x780   : > { %v4178_v10 = vadd.f32 %v4177_v19, %v4089_v36 }
 0x781   : > { %v4334_v59 = vpop.f32.mrf.mxu2 }
 0x782   : > { %v4211_v0 = vmax.f32 %v4178_v10, 0.0  ;;  %v4335_v48 = vadd.f32 %v4334_v59, %v7520_v28 }
 0x784   : > { %v4227_v1 = vpack.c.bf16 %v4211_v0, %v4210_v41  ;;  %v4395_v9 = vmax.f32 %v4335_v48, 0.0 }
 0x786   : > { %v4420_v32 = vpack.c.bf16 %v4395_v9, %v4394_v46  ;;  %4376 = vmatmul.bf16.gmra.mxu2 %v4227_v1 }
 0x788   : > { %5579 = vmatmul.msk.bf16.gmra.mxu3 %vm812_vm0, %v4420_v32 }
 0x789   : > { %v4337_v15 = vpop.f32.mrf.mxu2 }
 0x78a   : > { %v4338_v51 = vadd.f32 %v4337_v15, %v7520_v28 }
 0x78c   : > { %v4396_v13 = vmax.f32 %v4338_v51, 0.0 }
 0x791   : > { %v4339_v26 = vpop.f32.mrf.mxu2 }
 0x792   : > { %v4340_v12 = vadd.f32 %v4339_v26, %v7520_v28 }
 0x794   : > { %v4397_v54 = vmax.f32 %v4340_v12, 0.0 }
 0x796   : > { %v4421_v39 = vpack.c.bf16 %v4397_v54, %v4396_v13 }
 0x798   : > { %5580 = vmatmul.msk.bf16.gmra.mxu3 %vm812_vm0, %v4421_v39 }
 0x799   : > { %v4342_v3 = vpop.f32.mrf.mxu2 }
 0x79a   : > { %v4343_v53 = vadd.f32 %v4342_v3, %v7520_v28 }
 0x79c   : > { %v4398_v57 = vmax.f32 %v4343_v53, 0.0 }
 0x7a1   : > { %v4344_v6 = vpop.f32.mrf.mxu2 }
 0x7a2   : > { %v4345_v20 = vadd.f32 %v4344_v6, %v7520_v28 }
 0x7a4   : > { %v4399_v14 = vmax.f32 %v4345_v20, 0.0 }
 0x7a6   : > { %v4422_v17 = vpack.c.bf16 %v4399_v14, %v4398_v57 }
 0x7a8   : > { %5581 = vmatmul.msk.bf16.gmra.mxu3 %vm812_vm0, %v4422_v17 }
 0x7a9   : > { %v4347_v35 = vpop.f32.mrf.mxu2 }
 0x7aa   : > { %v4348_v62 = vadd.f32 %v4347_v35, %v7520_v28 }
 0x7ab   : > { %v4520_v60 = vpop.f32.mrf.mxu3 }
 0x7ac   : > { %v4521_v34 = vadd.f32 %v4520_v60, %v7564_v45  ;;  %v4400_v27 = vmax.f32 %v4348_v62, 0.0 }
 0x7ae   : > { %4601 = vst.msk [vmem:[%s7569_s16] sm:$0xff] %vm4600_vm1, %v4521_v34 }
 0x7b1   : > { %v4349_v7 = vpop.f32.mrf.mxu2 }
 0x7b2   : > { %v4350_v43 = vadd.f32 %v4349_v7, %v7520_v28 }
 0x7b3   : > { %v4522_v8 = vpop.f32.mrf.mxu3 }
 0x7b4   : > { %v4401_v37 = vmax.f32 %v4350_v43, 0.0  ;;  %v4523_v2 = vadd.f32 %v4522_v8, %v7564_v45 }
 0x7b6   : > { %v4423_v18 = vpack.c.bf16 %v4401_v37, %v4400_v27  ;;  %4602 = vst.msk [vmem:[%s7569_s16 + $0x8] sm:$0xff] %vm4600_vm1, %v4523_v2 }
 0x7b8   : > { %5582 = vmatmul.msk.bf16.gmra.mxu3 %vm812_vm0, %v4423_v18 }
 0x7b9   : > { %v4352_v47 = vpop.f32.mrf.mxu2 }
 0x7ba   : > { %v4353_v23 = vadd.f32 %v4352_v47, %v7520_v28 }
 0x7bb   : > { %v4525_v44 = vpop.f32.mrf.mxu3 }
 0x7bc   : > { %v4526_v58 = vadd.f32 %v4525_v44, %v7564_v45  ;;  %v4402_v50 = vmax.f32 %v4353_v23, 0.0 }
 0x7be   : > { %4603 = vst.msk [vmem:[%s7569_s16 + $0x10] sm:$0xff] %vm4600_vm1, %v4526_v58 }
 0x7c1   : > { %v4354_v16 = vpop.f32.mrf.mxu2 }
 0x7c2   : > { %v4355_v30 = vadd.f32 %v4354_v16, %v7520_v28 }
 0x7c3   : > { %v4527_v21 = vpop.f32.mrf.mxu3 }
 0x7c4   : > { %v4403_v55 = vmax.f32 %v4355_v30, 0.0  ;;  %v4528_v56 = vadd.f32 %v4527_v21, %v7564_v45 }
 0x7c6   : > { %v4424_v49 = vpack.c.bf16 %v4403_v55, %v4402_v50  ;;  %4604 = vst.msk [vmem:[%s7569_s16 + $0x18] sm:$0xff] %vm4600_vm1, %v4528_v56 }
 0x7c8   : > { %5583 = vmatmul.msk.bf16.gmra.mxu3 %vm812_vm0, %v4424_v49 }
 0x7c9   : > { %v4357_v25 = vpop.f32.mrf.mxu2 }
 0x7ca   : > { %v4358_v29 = vadd.f32 %v4357_v25, %v7520_v28 }
 0x7cb   : > { %v4530_v33 = vpop.f32.mrf.mxu3 }
 0x7cc   : > { %v4531_v31 = vadd.f32 %v4530_v33, %v7564_v45  ;;  %v4404_v61 = vmax.f32 %v4358_v29, 0.0 }
 0x7ce   : > { %4605 = vst.msk [vmem:[%s7569_s16 + $0x20] sm:$0xff] %vm4600_vm1, %v4531_v31 }
 0x7d1   : > { %v4359_v4 = vpop.f32.mrf.mxu2 }
 0x7d2   : > { %v4360_v5 = vadd.f32 %v4359_v4, %v7520_v28 }
 0x7d3   : > { %v4532_v42 = vpop.f32.mrf.mxu3 }
 0x7d4   : > { %v4405_v52 = vmax.f32 %v4360_v5, 0.0  ;;  %v4533_v40 = vadd.f32 %v4532_v42, %v7564_v45 }
 0x7d6   : > { %v4425_v38 = vpack.c.bf16 %v4405_v52, %v4404_v61  ;;  %4606 = vst.msk [vmem:[%s7569_s16 + $0x28] sm:$0xff] %vm4600_vm1, %v4533_v40 }
 0x7d8   : > { %5584 = vmatmul.msk.bf16.gmra.mxu3 %vm812_vm0, %v4425_v38 }
 0x7d9   : > { %v4362_v22 = vpop.f32.mrf.mxu2 }
 0x7da   : > { %v4363_v36 = vadd.f32 %v4362_v22, %v7520_v28 }
 0x7db   : > { %v4535_v24 = vpop.f32.mrf.mxu3 }
 0x7dc   : > { %v4536_v63 = vadd.f32 %v4535_v24, %v7564_v45  ;;  %v4406_v59 = vmax.f32 %v4363_v36, 0.0 }
 0x7de   : > { %4607 = vst.msk [vmem:[%s7569_s16 + $0x30] sm:$0xff] %vm4600_vm1, %v4536_v63 }
 0x7e1   : > { %v4364_v19 = vpop.f32.mrf.mxu2 }
 0x7e2   : > { %v4365_v11 = vadd.f32 %v4364_v19, %v7520_v28 }
 0x7e3   : > { %v4537_v10 = vpop.f32.mrf.mxu3 }
 0x7e4   : > { %v4407_v41 = vmax.f32 %v4365_v11, 0.0  ;;  %v4538_v0 = vadd.f32 %v4537_v10, %v7564_v45 }
 0x7e6   : > { %v4426_v48 = vpack.c.bf16 %v4407_v41, %v4406_v59  ;;  %4608 = vst.msk [vmem:[%s7569_s16 + $0x38] sm:$0xff] %vm4600_vm1, %v4538_v0 }
 0x7e8   : > { %5585 = vmatmul.msk.bf16.gmra.mxu3 %vm812_vm0, %v4426_v48 }
 0x7e9   : > { %v4367_v46 = vpop.f32.mrf.mxu2 }
 0x7ea   : > { %v4368_v32 = vadd.f32 %v4367_v46, %v7520_v28 }
 0x7eb   : > { %v4540_v1 = vpop.f32.mrf.mxu3 }
 0x7ec   : > { %v4541_v9 = vadd.f32 %v4540_v1, %v7564_v45  ;;  %v4408_v12 = vmax.f32 %v4368_v32, 0.0 }
 0x7ee   : > { %4609 = vst.msk [vmem:[%s7569_s16 + $0x40] sm:$0xff] %vm4600_vm1, %v4541_v9 }
 0x7f1   : > { %v4369_v15 = vpop.f32.mrf.mxu2 }
 0x7f2   : > { %v4370_v51 = vadd.f32 %v4369_v15, %v7520_v28 }
 0x7f3   : > { %v4542_v26 = vpop.f32.mrf.mxu3 }
 0x7f4   : > { %v4409_v13 = vmax.f32 %v4370_v51, 0.0  ;;  %v4543_v54 = vadd.f32 %v4542_v26, %v7564_v45 }
 0x7f6   : > { %v4427_v39 = vpack.c.bf16 %v4409_v13, %v4408_v12  ;;  %4610 = vst.msk [vmem:[%s7569_s16 + $0x48] sm:$0xff] %vm4600_vm1, %v4543_v54 }
 0x7f8   : > { %5586 = vmatmul.msk.bf16.gmra.mxu3 %vm812_vm0, %v4427_v39 }
 0x7f9   : > { %v4372_v3 = vpop.f32.mrf.mxu2 }
 0x7fa   : > { %v4373_v20 = vadd.f32 %v4372_v3, %v7520_v28 }
 0x7fb   : > { %v4545_v53 = vpop.f32.mrf.mxu3 }
 0x7fc   : > { %v4546_v6 = vadd.f32 %v4545_v53, %v7564_v45  ;;  %v4410_v35 = vmax.f32 %v4373_v20, 0.0 }
 0x7fe   : > { %4611 = vst.msk [vmem:[%s7569_s16 + $0x50] sm:$0xff] %vm4600_vm1, %v4546_v6 }
 0x801   : > { %v4374_v57 = vpop.f32.mrf.mxu2 }
 0x802   : > { %v4375_v14 = vadd.f32 %v4374_v57, %v7520_v28 }
 0x803   : > { %v4547_v17 = vpop.f32.mrf.mxu3 }
 0x804   : > { %v4411_v60 = vmax.f32 %v4375_v14, 0.0  ;;  %v4548_v34 = vadd.f32 %v4547_v17, %v7564_v45 }
 0x806   : > { %v4428_v62 = vpack.c.bf16 %v4411_v60, %v4410_v35  ;;  %4612 = vst.msk [vmem:[%s7569_s16 + $0x58] sm:$0xff] %vm4600_vm1, %v4548_v34 }
 0x808   : > { %5587 = vmatmul.msk.bf16.gmra.mxu3 %vm812_vm0, %v4428_v62 }
 0x809   : > { %v4377_v7 = vpop.f32.mrf.mxu2 }
 0x80a   : > { %v4378_v27 = vadd.f32 %v4377_v7, %v7520_v28 }
 0x80b   : > { %v4550_v43 = vpop.f32.mrf.mxu3 }
 0x80c   : > { %v4551_v8 = vadd.f32 %v4550_v43, %v7564_v45  ;;  %v4412_v47 = vmax.f32 %v4378_v27, 0.0 }
 0x80e   : > { %4613 = vst.msk [vmem:[%s7569_s16 + $0x60] sm:$0xff] %vm4600_vm1, %v4551_v8 }
 0x811   : > { %v4379_v37 = vpop.f32.mrf.mxu2 }
 0x812   : > { %v4380_v2 = vadd.f32 %v4379_v37, %v7520_v28 }
 0x813   : > { %v4552_v18 = vpop.f32.mrf.mxu3 }
 0x814   : > { %v4413_v44 = vmax.f32 %v4380_v2, 0.0  ;;  %v4553_v58 = vadd.f32 %v4552_v18, %v7564_v45 }
 0x816   : > { %v4429_v23 = vpack.c.bf16 %v4413_v44, %v4412_v47  ;;  %4614 = vst.msk [vmem:[%s7569_s16 + $0x68] sm:$0xff] %vm4600_vm1, %v4553_v58 }
 0x818   : > { %5588 = vmatmul.msk.bf16.gmra.mxu3 %vm812_vm0, %v4429_v23 }
 0x81b   : > { %v4555_v16 = vpop.f32.mrf.mxu3 }
 0x81c   : > { %v4556_v30 = vadd.f32 %v4555_v16, %v7564_v45 }
 0x81e   : > { %4615 = vst.msk [vmem:[%s7569_s16 + $0x70] sm:$0xff] %vm4600_vm1, %v4556_v30 }
 0x823   : > { %v4557_v28 = vpop.f32.mrf.mxu3 }
 0x824   : > { %v4558_v21 = vadd.f32 %v4557_v28, %v7564_v45 }
 0x826   : > { %4616 = vst.msk [vmem:[%s7569_s16 + $0x78] sm:$0xff] %vm4600_vm1, %v4558_v21 }
 0x82b   : > { %v4560_v50 = vpop.f32.mrf.mxu3 }
 0x82c   : > { %v4561_v55 = vadd.f32 %v4560_v50, %v7564_v45 }
 0x82e   : > { %4617 = vst.msk [vmem:[%s7569_s16 + $0x80] sm:$0xff] %vm4600_vm1, %v4561_v55 }
 0x833   : > { %v4562_v56 = vpop.f32.mrf.mxu3 }
 0x834   : > { %v4563_v49 = vadd.f32 %v4562_v56, %v7564_v45 }
 0x836   : > { %4618 = vst.msk [vmem:[%s7569_s16 + $0x88] sm:$0xff] %vm4600_vm1, %v4563_v49 }
 0x83b   : > { %v4565_v25 = vpop.f32.mrf.mxu3 }
 0x83c   : > { %v4566_v33 = vadd.f32 %v4565_v25, %v7564_v45 }
 0x83e   : > { %4619 = vst.msk [vmem:[%s7569_s16 + $0x90] sm:$0xff] %vm4600_vm1, %v4566_v33 }
 0x843   : > { %v4567_v31 = vpop.f32.mrf.mxu3 }
 0x844   : > { %v4568_v29 = vadd.f32 %v4567_v31, %v7564_v45 }
 0x846   : > { %4620 = vst.msk [vmem:[%s7569_s16 + $0x98] sm:$0xff] %vm4600_vm1, %v4568_v29 }
 0x84b   : > { %v4570_v4 = vpop.f32.mrf.mxu3 }
 0x84c   : > { %v4571_v5 = vadd.f32 %v4570_v4, %v7564_v45 }
 0x84e   : > { %4621 = vst.msk [vmem:[%s7569_s16 + $0xa0] sm:$0xff] %vm4600_vm1, %v4571_v5 }
 0x853   : > { %v4572_v42 = vpop.f32.mrf.mxu3 }
 0x854   : > { %v4573_v61 = vadd.f32 %v4572_v42, %v7564_v45 }
 0x856   : > { %4622 = vst.msk [vmem:[%s7569_s16 + $0xa8] sm:$0xff] %vm4600_vm1, %v4573_v61 }
 0x85b   : > { %v4575_v52 = vpop.f32.mrf.mxu3 }
 0x85c   : > { %v4576_v40 = vadd.f32 %v4575_v52, %v7564_v45 }
 0x85e   : > { %4623 = vst.msk [vmem:[%s7569_s16 + $0xb0] sm:$0xff] %vm4600_vm1, %v4576_v40 }
 0x863   : > { %v4577_v38 = vpop.f32.mrf.mxu3 }
 0x864   : > { %v4578_v22 = vadd.f32 %v4577_v38, %v7564_v45 }
 0x866   : > { %4624 = vst.msk [vmem:[%s7569_s16 + $0xb8] sm:$0xff] %vm4600_vm1, %v4578_v22 }
 0x86b   : > { %v4580_v24 = vpop.f32.mrf.mxu3 }
 0x86c   : > { %v4581_v63 = vadd.f32 %v4580_v24, %v7564_v45 }
 0x86e   : > { %4625 = vst.msk [vmem:[%s7569_s16 + $0xc0] sm:$0xff] %vm4600_vm1, %v4581_v63 }
 0x873   : > { %v4582_v36 = vpop.f32.mrf.mxu3 }
 0x874   : > { %v4583_v19 = vadd.f32 %v4582_v36, %v7564_v45 }
 0x876   : > { %4626 = vst.msk [vmem:[%s7569_s16 + $0xc8] sm:$0xff] %vm4600_vm1, %v4583_v19 }
 0x87b   : > { %v4585_v11 = vpop.f32.mrf.mxu3 }
 0x87c   : > { %v4586_v10 = vadd.f32 %v4585_v11, %v7564_v45 }
 0x87e   : > { %4627 = vst.msk [vmem:[%s7569_s16 + $0xd0] sm:$0xff] %vm4600_vm1, %v4586_v10 }
 0x883   : > { %v4587_v59 = vpop.f32.mrf.mxu3 }
 0x884   : > { %v4588_v41 = vadd.f32 %v4587_v59, %v7564_v45 }
 0x886   : > { %4628 = vst.msk [vmem:[%s7569_s16 + $0xd8] sm:$0xff] %vm4600_vm1, %v4588_v41 }
 0x88b   : > { %v4590_v0 = vpop.f32.mrf.mxu3 }
 0x88c   : > { %v4591_v48 = vadd.f32 %v4590_v0, %v7564_v45 }
 0x88e   : > { %4629 = vst.msk [vmem:[%s7569_s16 + $0xe0] sm:$0xff] %vm4600_vm1, %v4591_v48 }
 0x893   : > { %v4592_v46 = vpop.f32.mrf.mxu3 }
 0x894   : > { %v4593_v1 = vadd.f32 %v4592_v46, %v7564_v45 }
 0x896   : > { %4630 = vst.msk [vmem:[%s7569_s16 + $0xe8] sm:$0xff] %vm4600_vm1, %v4593_v1 }
 0x89b   : > { %v4595_v9 = vpop.f32.mrf.mxu3 }
 0x89c   : > { %v4596_v32 = vadd.f32 %v4595_v9, %v7564_v45 }
 0x89e   : > { %4631 = vst.msk [vmem:[%s7569_s16 + $0xf0] sm:$0xff] %vm4600_vm1, %v4596_v32 }
 0x8a3   : > { %v4597_v15 = vpop.f32.mrf.mxu3 }
 0x8a4   : > { %v4598_v51 = vadd.f32 %v4597_v15, %v7564_v45 }
 0x8a6   : > { %4632 = vst.msk [vmem:[%s7569_s16 + $0xf8] sm:$0xff] %vm4600_vm1, %v4598_v51 }
 0x8a7 PF: > { %p22_p4 = scmp.ge.s32.totalorder %s6208_s22, 4   ;;  %s7855_s13 = smov %s6063_s14 }
 0x8a8   : > { %s7856_s14 = smov %s6067_s15  ;;  %s7857_s15 = smov %s6218_s20 }
 0x8a9   : > { %s7858_s16 = smov %s6208_s22  ;;  %24 = sbr.rel (!%p22_p4) target bundleno = 8 (0x8), region = 119 }
 0x8ae   :  { %4655 = vsyncpa [#allocation3], 1 }
 0x8af   :  { %4657 = vsyncpa [#allocation3 + $0x1], 1 }
 0x8b0   :  { %4658 = vsyncpa [#allocation5], 1 }
 0x8b1   :  { %4659 = vsyncpa [#allocation8], 1 }

</bundles_post_ra>
